<compile_context>
chip_gen: v7x
topology: tpu7x:2x2x1
jax: 0.10.0
libtpu: 0.0.40
codegen_flags: <defaults>
</compile_context>

<pallas_src>
import functools
import math

import jax
import jax.numpy as jnp
from jax.experimental import pallas as pl
from jax.experimental.pallas import tpu as pltpu


# ----------------------------------------------------------------------------
# Tiling helpers
# ----------------------------------------------------------------------------
def _round_up(x, m):
    return ((x + m - 1) // m) * m


def _tile_div(dim, cap, align):
    """Largest tile <= cap that is a multiple of `align` and divides `dim`;
    falls back to the full dimension (full-dim blocks are always legal)."""
    if dim <= cap:
        return dim
    t = (cap // align) * align
    while t >= align:
        if dim % t == 0:
            return t
        t -= align
    return dim


def _pick_tile(dim, cap, aligns):
    """Tile <= cap.  Prefers an aligned divisor of `dim` (256 first, then 128);
    if none exists the caller pads `dim` up to a multiple of the tile."""
    if dim <= cap:
        return dim
    for a in aligns:
        t = (cap // a) * a
        while t >= a:
            if dim % t == 0:
                return t
            t -= a
    return (cap // aligns[-1]) * aligns[-1]


def _vmem_limit(block_bytes, scratch_bytes=0):
    # double-buffered blocks + scratch + headroom, clamped to a cross-gen-safe
    # range (default scoped limit is 16/32 MiB; v7x physical VMEM is 64 MiB).
    est = 2 * block_bytes + scratch_bytes + (2 << 20)
    return int(min(max(est, 32 << 20), 56 << 20))


# ----------------------------------------------------------------------------
# Tiled linear (matmul + bias [+ ReLU]); accumulates directly into the f32
# output block across the K grid axis.
# ----------------------------------------------------------------------------
def _linear_kernel(x_ref, w_ref, b_ref, o_ref, *, activation):
    k = pl.program_id(2)

    @pl.when(k == 0)
    def _():
        o_ref[...] = jnp.zeros_like(o_ref)

    o_ref[...] += jnp.dot(x_ref[...], w_ref[...],
                          preferred_element_type=jnp.float32)

    @pl.when(k == pl.num_programs(2) - 1)
    def _():
        y = o_ref[...] + b_ref[...]
        if activation == "relu":
            y = jnp.maximum(y, 0.0)
        o_ref[...] = y


def linear(x2d, w, b, activation=None):
    M, Din = x2d.shape
    Dout = w.shape[1]
    tm = _pick_tile(M, 512, (8,))
    tn = _pick_tile(Dout, 512, (256, 128))
    tk = _pick_tile(Din, 512, (256, 128))
    Mp, Np, Kp = _round_up(M, tm), _round_up(Dout, tn), _round_up(Din, tk)
    if (Mp, Kp) != (M, Din):
        x2d = jnp.pad(x2d, ((0, Mp - M), (0, Kp - Din)))
    if (Kp, Np) != (Din, Dout):
        w = jnp.pad(w, ((0, Kp - Din), (0, Np - Dout)))
    if Np != Dout:
        b = jnp.pad(b, ((0, 0), (0, Np - Dout)))

    grid = (Mp // tm, Np // tn, Kp // tk)
    block_bytes = 4 * (tm * tk + tk * tn + tn + tm * tn)
    out = pl.pallas_call(
        functools.partial(_linear_kernel, activation=activation),
        out_shape=jax.ShapeDtypeStruct((Mp, Np), jnp.float32),
        grid=grid,
        in_specs=[
            pl.BlockSpec((tm, tk), lambda i, j, k: (i, k)),
            pl.BlockSpec((tk, tn), lambda i, j, k: (k, j)),
            pl.BlockSpec((1, tn), lambda i, j, k: (0, j)),
        ],
        out_specs=pl.BlockSpec((tm, tn), lambda i, j, k: (i, j)),
        compiler_params=pltpu.CompilerParams(
            dimension_semantics=("parallel", "parallel", "arbitrary"),
            vmem_limit_bytes=_vmem_limit(block_bytes)),
    )(x2d, w, b)
    if (Mp, Np) != (M, Dout):
        out = out[:M, :Dout]
    return out


# ----------------------------------------------------------------------------
# K-tiled linear with fused bias + residual + LayerNorm epilogue (used for the
# second FFN matmul; the output width is the model dim so the whole row is
# available for LayerNorm).
# ----------------------------------------------------------------------------
def _linear_res_ln_kernel(x_ref, w_ref, b_ref, res_ref, g_ref, bb_ref, o_ref,
                          *, eps):
    k = pl.program_id(1)

    @pl.when(k == 0)
    def _():
        o_ref[...] = jnp.zeros_like(o_ref)

    o_ref[...] += jnp.dot(x_ref[...], w_ref[...],
                          preferred_element_type=jnp.float32)

    @pl.when(k == pl.num_programs(1) - 1)
    def _():
        z = o_ref[...] + b_ref[...] + res_ref[...]
        mu = jnp.mean(z, axis=-1, keepdims=True)
        var = jnp.mean((z - mu) * (z - mu), axis=-1, keepdims=True)
        zn = (z - mu) * jax.lax.rsqrt(var + eps)
        o_ref[...] = zn * g_ref[...] + bb_ref[...]


def linear_res_ln(x2d, w, b, residual, gamma, beta, eps=1e-5):
    M, K = x2d.shape
    D = w.shape[1]
    tm = _pick_tile(M, 256, (8,))
    tk = _pick_tile(K, 512, (256, 128))
    Mp, Kp = _round_up(M, tm), _round_up(K, tk)
    if (Mp, Kp) != (M, K):
        x2d = jnp.pad(x2d, ((0, Mp - M), (0, Kp - K)))
    if Kp != K:
        w = jnp.pad(w, ((0, Kp - K), (0, 0)))
    if Mp != M:
        residual = jnp.pad(residual, ((0, Mp - M), (0, 0)))

    grid = (Mp // tm, Kp // tk)
    block_bytes = 4 * (tm * tk + tk * D + 4 * D + 2 * tm * D)
    out = pl.pallas_call(
        functools.partial(_linear_res_ln_kernel, eps=eps),
        out_shape=jax.ShapeDtypeStruct((Mp, D), jnp.float32),
        grid=grid,
        in_specs=[
            pl.BlockSpec((tm, tk), lambda i, k: (i, k)),
            pl.BlockSpec((tk, D), lambda i, k: (k, 0)),
            pl.BlockSpec((1, D), lambda i, k: (0, 0)),
            pl.BlockSpec((tm, D), lambda i, k: (i, 0)),
            pl.BlockSpec((1, D), lambda i, k: (0, 0)),
            pl.BlockSpec((1, D), lambda i, k: (0, 0)),
        ],
        out_specs=pl.BlockSpec((tm, D), lambda i, k: (i, 0)),
        compiler_params=pltpu.CompilerParams(
            dimension_semantics=("parallel", "arbitrary"),
            vmem_limit_bytes=_vmem_limit(block_bytes)),
    )(x2d, w, b, residual, gamma, beta)
    if Mp != M:
        out = out[:M]
    return out


def ffn_block(x2d, p_ff, gamma, beta):
    h = linear(x2d, p_ff["fc1_w"], p_ff["fc1_b"], activation="relu")
    return linear_res_ln(h, p_ff["fc2_w"], p_ff["fc2_b"], x2d, gamma, beta)


# ----------------------------------------------------------------------------
# Fused multi-head attention block (flash-style, head-batched):
#   grid = (B, Sq-tiles, Sk-tiles);  online softmax over Sk;  epilogue fuses
#   output projection + residual + LayerNorm.
# Q/K/V are static lane slices of the (fused) projection blocks.
# ----------------------------------------------------------------------------
def _attn_kernel(q_ref, kv_ref, kvalid_ref, res_ref, wo_ref, bo_ref,
                 g_ref, bb_ref, o_ref, m_sc, l_sc, acc_sc,
                 *, num_heads, d_model, q_off, k_off, v_off,
                 scale, causal, eps):
    qi = pl.program_id(1)
    kst = pl.program_id(2)

    @pl.when(kst == 0)
    def _():
        m_sc[...] = jnp.full_like(m_sc, -jnp.inf)
        l_sc[...] = jnp.zeros_like(l_sc)
        acc_sc[...] = jnp.zeros_like(acc_sc)

    D = d_model
    H = num_heads
    hd = D // H
    tq = q_ref.shape[0]
    tk = kv_ref.shape[0]

    q = q_ref[:, q_off:q_off + D]          # (tq, D)
    k = kv_ref[:, k_off:k_off + D]         # (tk, D)
    v = kv_ref[:, v_off:v_off + D]         # (tk, D)

    qh = q.reshape(tq, H, hd)
    kh = k.reshape(tk, H, hd)
    vh = v.reshape(tk, H, hd)

    # head-batched scores: (H, tq, tk)
    s = jnp.einsum('qhd,khd->hqk', qh, kh,
                   preferred_element_type=jnp.float32) * scale

    # mask: padded keys and (optionally) future positions (same -1e10 fill as
    # the PyTorch reference -> fully masked rows become uniform attention)
    masked = jnp.broadcast_to(kvalid_ref[...] == 0.0, (tq, tk))
    if causal:
        row = qi * tq + jax.lax.broadcasted_iota(jnp.int32, (tq, tk), 0)
        col = kst * tk + jax.lax.broadcasted_iota(jnp.int32, (tq, tk), 1)
        masked = jnp.logical_or(masked, col > row)
    s = jnp.where(masked[None, :, :], jnp.float32(-1e10), s)

    # online softmax accumulation
    m_prev = m_sc[...]
    m_new = jnp.maximum(m_prev, jnp.max(s, axis=-1, keepdims=True))
    alpha = jnp.exp(m_prev - m_new)
    p = jnp.exp(s - m_new)
    l_sc[...] = alpha * l_sc[...] + jnp.sum(p, axis=-1, keepdims=True)
    acc_sc[...] = alpha * acc_sc[...] + jnp.einsum(
        'hqk,khd->hqd', p, vh, preferred_element_type=jnp.float32)
    m_sc[...] = m_new

    @pl.when(kst == pl.num_programs(2) - 1)
    def _():
        ctx = acc_sc[...] / l_sc[...]                        # (H, tq, hd)
        ctx = jnp.transpose(ctx, (1, 0, 2)).reshape(tq, D)   # (tq, D)
        y = jnp.dot(ctx, wo_ref[...],
                    preferred_element_type=jnp.float32) + bo_ref[...]
        x = res_ref[...] + y
        mu = jnp.mean(x, axis=-1, keepdims=True)
        var = jnp.mean((x - mu) * (x - mu), axis=-1, keepdims=True)
        xn = (x - mu) * jax.lax.rsqrt(var + eps)
        o_ref[...] = xn * g_ref[...] + bb_ref[...]


def attention_block(q_arr, q_off, kv_arr, k_off, v_off, key_valid3, residual,
                    wo, bo, gamma, beta, num_heads, causal):
    B, Sq, Wq = q_arr.shape
    Sk, Wkv = kv_arr.shape[1], kv_arr.shape[2]
    D = residual.shape[2]
    hd = D // num_heads
    scale = 1.0 / math.sqrt(hd)

    tq = _tile_div(Sq, 256, 8)
    tk = _tile_div(Sk, 512, 128)
    grid = (B, Sq // tq, Sk // tk)

    block_bytes = 4 * (tq * Wq + tk * Wkv + tk + 2 * tq * D + D * D + 3 * D)
    scratch_bytes = 4 * num_heads * tq * (2 + hd)

    return pl.pallas_call(
        functools.partial(_attn_kernel, num_heads=num_heads, d_model=D,
                          q_off=q_off, k_off=k_off, v_off=v_off,
                          scale=scale, causal=causal, eps=1e-5),
        out_shape=jax.ShapeDtypeStruct((B, Sq, D), jnp.float32),
        grid=grid,
        in_specs=[
            pl.BlockSpec((None, tq, Wq), lambda b, i, k: (b, i, 0)),
            pl.BlockSpec((None, tk, Wkv), lambda b, i, k: (b, k, 0)),
            pl.BlockSpec((None, 1, tk), lambda b, i, k: (b, 0, k)),
            pl.BlockSpec((None, tq, D), lambda b, i, k: (b, i, 0)),
            pl.BlockSpec((D, D), lambda b, i, k: (0, 0)),
            pl.BlockSpec((1, D), lambda b, i, k: (0, 0)),
            pl.BlockSpec((1, D), lambda b, i, k: (0, 0)),
            pl.BlockSpec((1, D), lambda b, i, k: (0, 0)),
        ],
        out_specs=pl.BlockSpec((None, tq, D), lambda b, i, k: (b, i, 0)),
        scratch_shapes=[
            pltpu.VMEM((num_heads, tq, 1), jnp.float32),
            pltpu.VMEM((num_heads, tq, 1), jnp.float32),
            pltpu.VMEM((num_heads, tq, hd), jnp.float32),
        ],
        compiler_params=pltpu.CompilerParams(
            dimension_semantics=("parallel", "parallel", "arbitrary"),
            vmem_limit_bytes=_vmem_limit(block_bytes, scratch_bytes)),
    )(q_arr, kv_arr, key_valid3, residual, wo, bo, gamma, beta)


# ----------------------------------------------------------------------------
# Model glue (plain JAX orchestration around the kernels)
# ----------------------------------------------------------------------------
def encoder_layer(p, x, src_valid3, num_heads):
    B, S, D = x.shape
    x2d = x.reshape(B * S, D)
    qkv = linear(x2d, p["attn"]["wqkv_w"], p["attn"]["wqkv_b"]).reshape(B, S, 3 * D)
    # q/k/v sliced inside the kernel from the fused projection
    x = attention_block(qkv, 0, qkv, D, 2 * D, src_valid3, x,
                        p["attn"]["fo_w"], p["attn"]["fo_b"],
                        p["ln1_g"], p["ln1_b"], num_heads, causal=False)
    y2d = ffn_block(x.reshape(B * S, D), p["ff"], p["ln2_g"], p["ln2_b"])
    return y2d.reshape(B, S, D)


def decoder_layer(p, x, enc_out, src_valid3, tgt_valid3, num_heads):
    B, S, D = x.shape
    Se = enc_out.shape[1]
    x2d = x.reshape(B * S, D)

    # masked self-attention (fused QKV, causal + pad mask)
    qkv = linear(x2d, p["self_attn"]["wqkv_w"],
                 p["self_attn"]["wqkv_b"]).reshape(B, S, 3 * D)
    x = attention_block(qkv, 0, qkv, D, 2 * D, tgt_valid3, x,
                        p["self_attn"]["fo_w"], p["self_attn"]["fo_b"],
                        p["ln1_g"], p["ln1_b"], num_heads, causal=True)

    # cross-attention (Q from decoder, fused K/V from encoder output)
    q = linear(x.reshape(B * S, D), p["cross_attn"]["wq_w"],
               p["cross_attn"]["wq_b"]).reshape(B, S, D)
    kv = linear(enc_out.reshape(B * Se, D), p["cross_attn"]["wkv_w"],
                p["cross_attn"]["wkv_b"]).reshape(B, Se, 2 * D)
    x = attention_block(q, 0, kv, 0, D, src_valid3, x,
                        p["cross_attn"]["fo_w"], p["cross_attn"]["fo_b"],
                        p["ln2_g"], p["ln2_b"], num_heads, causal=False)

    y2d = ffn_block(x.reshape(B * S, D), p["ff"], p["ln3_g"], p["ln3_b"])
    return y2d.reshape(B, S, D)


def positional_encoding(model_dim, max_len):
    # Reproduces the (non-standard) PyTorch loop exactly.
    pos = jnp.arange(max_len, dtype=jnp.float32)[:, None]          # (L, 1)
    i = jnp.arange(0, model_dim, 2, dtype=jnp.float32)[None, :]    # (1, D/2)
    sin_part = jnp.sin(pos / jnp.power(10000.0, i / model_dim))
    cos_part = jnp.cos(pos / jnp.power(10000.0, (i + 1.0) / model_dim))
    pe = jnp.zeros((max_len, model_dim), dtype=jnp.float32)
    pe = pe.at[:, 0::2].set(sin_part)
    pe = pe.at[:, 1::2].set(cos_part)
    return pe


def transformer_forward(params, src, tgt, num_heads):
    B, S_src = src.shape
    _, S_tgt = tgt.shape
    D = params["enc_emb"].shape[1]

    # key-validity vectors; masks are built inside the attention kernel
    src_valid3 = (src != 0).astype(jnp.float32).reshape(B, 1, S_src)
    tgt_valid3 = (tgt != 0).astype(jnp.float32).reshape(B, 1, S_tgt)

    pe = params["pe"]

    # ----- encoder -----  (dropout: identity / eval mode)
    x = jnp.take(params["enc_emb"], src, axis=0) + pe[None, :S_src, :]
    for lp in params["enc_layers"]:
        x = encoder_layer(lp, x, src_valid3, num_heads)
    enc_out = x

    # ----- decoder -----
    y = jnp.take(params["dec_emb"], tgt, axis=0) + pe[None, :S_tgt, :]
    for lp in params["dec_layers"]:
        y = decoder_layer(lp, y, enc_out, src_valid3, tgt_valid3, num_heads)

    out = linear(y.reshape(B * S_tgt, D), params["out_w"], params["out_b"])
    return out.reshape(B, S_tgt, -1)


# ----------------------------------------------------------------------------
# Deterministic parameter initialization (Linear weights stored transposed
# (in, out); biases as (1, out); Q/K/V fused at init time).
# ----------------------------------------------------------------------------
def _init_linear(key, din, dout):
    kw, kb = jax.random.split(key)
    bound = 1.0 / math.sqrt(din)
    w = jax.random.uniform(kw, (din, dout), jnp.float32, -bound, bound)
    b = jax.random.uniform(kb, (1, dout), jnp.float32, -bound, bound)
    return w, b


def _init_mha(key, d):
    ks = jax.random.split(key, 4)
    wq_w, wq_b = _init_linear(ks[0], d, d)
    wk_w, wk_b = _init_linear(ks[1], d, d)
    wv_w, wv_b = _init_linear(ks[2], d, d)
    fo_w, fo_b = _init_linear(ks[3], d, d)
    return dict(
        wq_w=wq_w, wq_b=wq_b,
        wkv_w=jnp.concatenate([wk_w, wv_w], axis=1),
        wkv_b=jnp.concatenate([wk_b, wv_b], axis=1),
        wqkv_w=jnp.concatenate([wq_w, wk_w, wv_w], axis=1),
        wqkv_b=jnp.concatenate([wq_b, wk_b, wv_b], axis=1),
        fo_w=fo_w, fo_b=fo_b)


def _init_ff(key, d, ff):
    k1, k2 = jax.random.split(key)
    fc1_w, fc1_b = _init_linear(k1, d, ff)
    fc2_w, fc2_b = _init_linear(k2, ff, d)
    return dict(fc1_w=fc1_w, fc1_b=fc1_b, fc2_w=fc2_w, fc2_b=fc2_b)


def _ln_params(d):
    return jnp.ones((1, d), jnp.float32), jnp.zeros((1, d), jnp.float32)


def init_transformer(key, src_vocab, tgt_vocab, d, ff, n_enc, n_dec, max_len):
    keys = jax.random.split(key, 3 + n_enc + n_dec)
    params = {}
    params["enc_emb"] = jax.random.normal(keys[0], (src_vocab, d), jnp.float32)
    params["dec_emb"] = jax.random.normal(keys[1], (tgt_vocab, d), jnp.float32)
    params["pe"] = positional_encoding(d, max_len)

    enc_layers = []
    for li in range(n_enc):
        k = keys[2 + li]
        ka, kf = jax.random.split(k)
        g1, b1 = _ln_params(d)
        g2, b2 = _ln_params(d)
        enc_layers.append(dict(attn=_init_mha(ka, d), ff=_init_ff(kf, d, ff),
                               ln1_g=g1, ln1_b=b1, ln2_g=g2, ln2_b=b2))
    params["enc_layers"] = enc_layers

    dec_layers = []
    for li in range(n_dec):
        k = keys[2 + n_enc + li]
        ka, kc, kf = jax.random.split(k, 3)
        g1, b1 = _ln_params(d)
        g2, b2 = _ln_params(d)
        g3, b3 = _ln_params(d)
        dec_layers.append(dict(self_attn=_init_mha(ka, d),
                               cross_attn=_init_mha(kc, d),
                               ff=_init_ff(kf, d, ff),
                               ln1_g=g1, ln1_b=b1, ln2_g=g2, ln2_b=b2,
                               ln3_g=g3, ln3_b=b3))
    params["dec_layers"] = dec_layers

    out_w, out_b = _init_linear(keys[-1], d, tgt_vocab)
    params["out_w"] = out_w
    params["out_b"] = out_b
    return params


# ----------------------------------------------------------------------------
if __name__ == "__main__":
    # small config
    SRC_VOCAB = 50
    TGT_VOCAB = 50
    MODEL_DIM = 32
    NUM_HEADS = 4
    FF_DIM = 64
    NUM_ENC = 2
    NUM_DEC = 2
    MAX_SEQ = 64
    B, S_SRC, S_TGT = 2, 8, 8
    # dropout = 0.0  -> identity (matches eval-mode semantics)

    key = jax.random.PRNGKey(0)
    kp, ks, kt = jax.random.split(key, 3)

    params = init_transformer(kp, SRC_VOCAB, TGT_VOCAB, MODEL_DIM, FF_DIM,
                              NUM_ENC, NUM_DEC, MAX_SEQ)

    src = jax.random.randint(ks, (B, S_SRC), 0, SRC_VOCAB, dtype=jnp.int32)
    tgt = jax.random.randint(kt, (B, S_TGT), 0, TGT_VOCAB, dtype=jnp.int32)
    # make a couple of pad tokens so the masks are non-trivial
    src = src.at[0, -2:].set(0)
    tgt = tgt.at[1, -1].set(0)

    fwd = jax.jit(functools.partial(transformer_forward, num_heads=NUM_HEADS))
    out = fwd(params, src, tgt)
    out = jax.block_until_ready(out)

    assert out.shape == (B, S_TGT, TGT_VOCAB), out.shape
    assert bool(jnp.all(jnp.isfinite(out)))
    print("KERNEL_OK")
</pallas_src>

<mosaic_0001>
module attributes {stable_mosaic.version = 11 : i64} {
  func.func @_linear_kernel(%arg0: i32, %arg1: i32, %arg2: i32, %arg3: memref<16x32xf32, #tpu.memory_space<vmem>>, %arg4: memref<32x96xf32, #tpu.memory_space<vmem>>, %arg5: memref<1x96xf32, #tpu.memory_space<vmem>>, %arg6: memref<16x96xf32, #tpu.memory_space<vmem>>) attributes {dimension_semantics = [#tpu.dimension_semantics<parallel>, #tpu.dimension_semantics<parallel>, #tpu.dimension_semantics<arbitrary>], iteration_bounds = array<i64: 1, 1, 1>, scalar_prefetch = 0 : i64, scratch_operands = 0 : i64, tpu.core_type = #tpu.core_type<tc>, window_params = [{transform_indices = @transform_0, window_bounds = array<i64: 16, 32>}, {transform_indices = @transform_1, window_bounds = array<i64: 32, 96>}, {transform_indices = @transform_2, window_bounds = array<i64: 1, 96>}, {transform_indices = @transform_3, window_bounds = array<i64: 16, 96>}]} {
    %c0_i32 = arith.constant 0 : i32
    %0 = arith.cmpi eq, %arg2, %c0_i32 : i32
    %1 = arith.extui %0 : i1 to i32
    %c0_i32_0 = arith.constant 0 : i32
    %2 = arith.cmpi ne, %1, %c0_i32_0 : i32
    scf.if %2 {
      %cst_10 = arith.constant 0.000000e+00 : f32
      %12 = vector.broadcast %cst_10 : f32 to vector<16x96xf32>
      %c0_11 = arith.constant 0 : index
      %c0_12 = arith.constant 0 : index
      %13 = vector.load %arg6[%c0_11, %c0_12] : memref<16x96xf32, #tpu.memory_space<vmem>>, vector<16x96xf32>
      tpu.vector_store %arg6[%c0_11, %c0_12], %12 {strides = array<i32>} : memref<16x96xf32, #tpu.memory_space<vmem>>, vector<16x96xf32>,
    } else {
    }
    %c0 = arith.constant 0 : index
    %c0_1 = arith.constant 0 : index
    %3 = vector.load %arg6[%c0, %c0_1] : memref<16x96xf32, #tpu.memory_space<vmem>>, vector<16x96xf32>
    %c0_2 = arith.constant 0 : index
    %c0_3 = arith.constant 0 : index
    %4 = vector.load %arg3[%c0_2, %c0_3] : memref<16x32xf32, #tpu.memory_space<vmem>>, vector<16x32xf32>
    %c0_4 = arith.constant 0 : index
    %c0_5 = arith.constant 0 : index
    %5 = vector.load %arg4[%c0_4, %c0_5] : memref<32x96xf32, #tpu.memory_space<vmem>>, vector<32x96xf32>
    %cst = arith.constant dense<0.000000e+00> : vector<16x96xf32>
    %6 = tpu.matmul %4, %5, %cst {dimension_numbers = #tpu.dot_dimension_numbers<[1], [0], [0], [1], [0, 0, 1, 1], [], []>} : vector<16x32xf32>, vector<32x96xf32>, vector<16x96xf32> -> vector<16x96xf32>
    %7 = arith.addf %3, %6 : vector<16x96xf32>
    %c0_6 = arith.constant 0 : index
    %c0_7 = arith.constant 0 : index
    %8 = vector.load %arg6[%c0_6, %c0_7] : memref<16x96xf32, #tpu.memory_space<vmem>>, vector<16x96xf32>
    tpu.vector_store %arg6[%c0_6, %c0_7], %7 {strides = array<i32>} : memref<16x96xf32, #tpu.memory_space<vmem>>, vector<16x96xf32>,
    %c0_i32_8 = arith.constant 0 : i32
    %9 = arith.cmpi eq, %arg2, %c0_i32_8 : i32
    %10 = arith.extui %9 : i1 to i32
    %c0_i32_9 = arith.constant 0 : i32
    %11 = arith.cmpi ne, %10, %c0_i32_9 : i32
    scf.if %11 {
      %c0_10 = arith.constant 0 : index
      %c0_11 = arith.constant 0 : index
      %12 = vector.load %arg6[%c0_10, %c0_11] : memref<16x96xf32, #tpu.memory_space<vmem>>, vector<16x96xf32>
      %c0_12 = arith.constant 0 : index
      %c0_13 = arith.constant 0 : index
      %13 = vector.load %arg5[%c0_12, %c0_13] : memref<1x96xf32, #tpu.memory_space<vmem>>, vector<1x96xf32>
      %14 = vector.broadcast %13 : vector<1x96xf32> to vector<16x96xf32>
      %15 = arith.addf %12, %14 : vector<16x96xf32>
      %c0_14 = arith.constant 0 : index
      %c0_15 = arith.constant 0 : index
      %16 = vector.load %arg6[%c0_14, %c0_15] : memref<16x96xf32, #tpu.memory_space<vmem>>, vector<16x96xf32>
      tpu.vector_store %arg6[%c0_14, %c0_15], %15 {strides = array<i32>} : memref<16x96xf32, #tpu.memory_space<vmem>>, vector<16x96xf32>,
    } else {
    }
    return
  }
  func.func @transform_0(%arg0: i32, %arg1: i32, %arg2: i32) -> (i32, i32) {
    %c0_i32 = arith.constant 0 : i32
    return %arg0, %arg2 : i32, i32
  }
  func.func @transform_1(%arg0: i32, %arg1: i32, %arg2: i32) -> (i32, i32) {
    %c0_i32 = arith.constant 0 : i32
    return %arg2, %arg1 : i32, i32
  }
  func.func @transform_2(%arg0: i32, %arg1: i32, %arg2: i32) -> (i32, i32) {
    %c0_i32 = arith.constant 0 : i32
    %c0_i32_0 = arith.constant 0 : i32
    return %c0_i32, %arg1 : i32, i32
  }
  func.func @transform_3(%arg0: i32, %arg1: i32, %arg2: i32) -> (i32, i32) {
    %c0_i32 = arith.constant 0 : i32
    return %arg0, %arg1 : i32, i32
  }
}

module attributes {stable_mosaic.version = 11 : i64} {
  func.func @_attn_kernel(%arg0: i32, %arg1: i32, %arg2: i32, %arg3: memref<1x8x96xf32, #tpu.memory_space<vmem>>, %arg4: memref<1x8x96xf32, #tpu.memory_space<vmem>>, %arg5: memref<1x1x8xf32, #tpu.memory_space<vmem>>, %arg6: memref<1x8x32xf32, #tpu.memory_space<vmem>>, %arg7: memref<32x32xf32, #tpu.memory_space<vmem>>, %arg8: memref<1x32xf32, #tpu.memory_space<vmem>>, %arg9: memref<1x32xf32, #tpu.memory_space<vmem>>, %arg10: memref<1x32xf32, #tpu.memory_space<vmem>>, %arg11: memref<1x8x32xf32, #tpu.memory_space<vmem>>, %arg12: memref<4x8x1xf32, #tpu.memory_space<vmem>>, %arg13: memref<4x8x1xf32, #tpu.memory_space<vmem>>, %arg14: memref<4x8x8xf32, #tpu.memory_space<vmem>>) attributes {dimension_semantics = [#tpu.dimension_semantics<parallel>, #tpu.dimension_semantics<parallel>, #tpu.dimension_semantics<arbitrary>], iteration_bounds = array<i64: 2, 1, 1>, scalar_prefetch = 0 : i64, scratch_operands = 3 : i64, tpu.core_type = #tpu.core_type<tc>, window_params = [{transform_indices = @transform_0, window_bounds = array<i64: 1, 8, 96>}, {transform_indices = @transform_1, window_bounds = array<i64: 1, 8, 96>}, {transform_indices = @transform_2, window_bounds = array<i64: 1, 1, 8>}, {transform_indices = @transform_3, window_bounds = array<i64: 1, 8, 32>}, {pipeline_mode = #tpu.pipeline_mode<synchronous>, transform_indices = @transform_4, window_bounds = array<i64: 32, 32>}, {pipeline_mode = #tpu.pipeline_mode<synchronous>, transform_indices = @transform_5, window_bounds = array<i64: 1, 32>}, {pipeline_mode = #tpu.pipeline_mode<synchronous>, transform_indices = @transform_6, window_bounds = array<i64: 1, 32>}, {pipeline_mode = #tpu.pipeline_mode<synchronous>, transform_indices = @transform_7, window_bounds = array<i64: 1, 32>}, {transform_indices = @transform_8, window_bounds = array<i64: 1, 8, 32>}]} {
    %c0_i32 = arith.constant 0 : i32
    %0 = arith.cmpi eq, %arg2, %c0_i32 : i32
    %1 = arith.extui %0 : i1 to i32
    %c0_i32_0 = arith.constant 0 : i32
    %2 = arith.cmpi ne, %1, %c0_i32_0 : i32
    scf.if %2 {
      %cst_36 = arith.constant 0xFF800000 : f32
      %51 = vector.broadcast %cst_36 : f32 to vector<4x8x1xf32>
      %c0_37 = arith.constant 0 : index
      %c0_38 = arith.constant 0 : index
      %c0_39 = arith.constant 0 : index
      %52 = vector.load %arg12[%c0_37, %c0_38, %c0_39] : memref<4x8x1xf32, #tpu.memory_space<vmem>>, vector<4x8x1xf32>
      tpu.vector_store %arg12[%c0_37, %c0_38, %c0_39], %51 {strides = array<i32>} : memref<4x8x1xf32, #tpu.memory_space<vmem>>, vector<4x8x1xf32>,
      %cst_40 = arith.constant 0.000000e+00 : f32
      %53 = vector.broadcast %cst_40 : f32 to vector<4x8x1xf32>
      %c0_41 = arith.constant 0 : index
      %c0_42 = arith.constant 0 : index
      %c0_43 = arith.constant 0 : index
      %54 = vector.load %arg13[%c0_41, %c0_42, %c0_43] : memref<4x8x1xf32, #tpu.memory_space<vmem>>, vector<4x8x1xf32>
      tpu.vector_store %arg13[%c0_41, %c0_42, %c0_43], %53 {strides = array<i32>} : memref<4x8x1xf32, #tpu.memory_space<vmem>>, vector<4x8x1xf32>,
      %cst_44 = arith.constant 0.000000e+00 : f32
      %55 = vector.broadcast %cst_44 : f32 to vector<4x8x8xf32>
      %c0_45 = arith.constant 0 : index
      %c0_46 = arith.constant 0 : index
      %c0_47 = arith.constant 0 : index
      %56 = vector.load %arg14[%c0_45, %c0_46, %c0_47] : memref<4x8x8xf32, #tpu.memory_space<vmem>>, vector<4x8x8xf32>
      tpu.vector_store %arg14[%c0_45, %c0_46, %c0_47], %55 {strides = array<i32>} : memref<4x8x8xf32, #tpu.memory_space<vmem>>, vector<4x8x8xf32>,
    } else {
    }
    %c0 = arith.constant 0 : index
    %c0_1 = arith.constant 0 : index
    %c0_2 = arith.constant 0 : index
    %3 = vector.load %arg3[%c0, %c0_1, %c0_2] : memref<1x8x96xf32, #tpu.memory_space<vmem>>, vector<1x8x32xf32>
    %4 = vector.shape_cast %3 : vector<1x8x32xf32> to vector<8x32xf32>
    %c0_3 = arith.constant 0 : index
    %c0_4 = arith.constant 0 : index
    %c32 = arith.constant 32 : index
    %5 = vector.load %arg4[%c0_3, %c0_4, %c32] : memref<1x8x96xf32, #tpu.memory_space<vmem>>, vector<1x8x32xf32>
    %6 = vector.shape_cast %5 : vector<1x8x32xf32> to vector<8x32xf32>
    %c0_5 = arith.constant 0 : index
    %c0_6 = arith.constant 0 : index
    %c64 = arith.constant 64 : index
    %7 = vector.load %arg4[%c0_5, %c0_6, %c64] : memref<1x8x96xf32, #tpu.memory_space<vmem>>, vector<1x8x32xf32>
    %8 = vector.shape_cast %7 : vector<1x8x32xf32> to vector<8x32xf32>
    %9 = vector.shape_cast %4 : vector<8x32xf32> to vector<8x4x8xf32>
    %10 = vector.shape_cast %6 : vector<8x32xf32> to vector<8x4x8xf32>
    %11 = vector.shape_cast %8 : vector<8x32xf32> to vector<8x4x8xf32>
    "tpu.trace_start"() <{level = 10 : i32, message = "qhd,khd->hqk"}> : () -> ()
    %cst = arith.constant dense<0.000000e+00> : vector<4x8x8xf32>
    %12 = tpu.matmul %9, %10, %cst {dimension_numbers = #tpu.dot_dimension_numbers<[2], [2], [0], [0], [0, 1, 0, 0, 1, 0], [1], [1]>} : vector<8x4x8xf32>, vector<8x4x8xf32>, vector<4x8x8xf32> -> vector<4x8x8xf32>
    "tpu.trace_stop"() : () -> ()
    %cst_7 = arith.constant 0.353553385 : f32
    %13 = vector.broadcast %cst_7 : f32 to vector<4x8x8xf32>
    %14 = arith.mulf %12, %13 : vector<4x8x8xf32>
    %c0_8 = arith.constant 0 : index
    %c0_9 = arith.constant 0 : index
    %c0_10 = arith.constant 0 : index
    %15 = vector.load %arg5[%c0_8, %c0_9, %c0_10] : memref<1x1x8xf32, #tpu.memory_space<vmem>>, vector<1x1x8xf32>
    %16 = vector.shape_cast %15 : vector<1x1x8xf32> to vector<1x8xf32>
    %cst_11 = arith.constant 0.000000e+00 : f32
    %17 = vector.broadcast %cst_11 : f32 to vector<1x8xf32>
    %18 = arith.cmpf oeq, %16, %17 : vector<1x8xf32>
    %19 = vector.shape_cast %18 : vector<1x8xi1> to vector<1x8xi1>
    %20 = vector.broadcast %19 : vector<1x8xi1> to vector<8x8xi1>
    %21 = vector.shape_cast %20 : vector<8x8xi1> to vector<1x8x8xi1>
    %cst_12 = arith.constant -1.000000e+10 : f32
    %22 = vector.shape_cast %21 : vector<1x8x8xi1> to vector<1x8x8xi1>
    %23 = vector.broadcast %22 : vector<1x8x8xi1> to vector<4x8x8xi1>
    %24 = vector.broadcast %cst_12 : f32 to vector<4x8x8xf32>
    %25 = arith.select %23, %24, %14 : vector<4x8x8xi1>, vector<4x8x8xf32>
    %c0_13 = arith.constant 0 : index
    %c0_14 = arith.constant 0 : index
    %c0_15 = arith.constant 0 : index
    %26 = vector.load %arg12[%c0_13, %c0_14, %c0_15] : memref<4x8x1xf32, #tpu.memory_space<vmem>>, vector<4x8x1xf32>
    %cst_16 = arith.constant dense<0xFF800000> : vector<4x8xf32>
    %27 = vector.multi_reduction <maximumf>, %25, %cst_16 [2] : vector<4x8x8xf32> to vector<4x8xf32>
    %28 = vector.shape_cast %27 : vector<4x8xf32> to vector<4x8x1xf32>
    %29 = arith.maximumf %26, %28 : vector<4x8x1xf32>
    %30 = arith.subf %26, %29 : vector<4x8x1xf32>
    %31 = math.exp %30 : vector<4x8x1xf32>
    %32 = vector.broadcast %29 : vector<4x8x1xf32> to vector<4x8x8xf32>
    %33 = arith.subf %25, %32 : vector<4x8x8xf32>
    %34 = math.exp %33 : vector<4x8x8xf32>
    %c0_17 = arith.constant 0 : index
    %c0_18 = arith.constant 0 : index
    %c0_19 = arith.constant 0 : index
    %35 = vector.load %arg13[%c0_17, %c0_18, %c0_19] : memref<4x8x1xf32, #tpu.memory_space<vmem>>, vector<4x8x1xf32>
    %36 = arith.mulf %31, %35 : vector<4x8x1xf32>
    %cst_20 = arith.constant dense<0.000000e+00> : vector<4x8xf32>
    %37 = vector.multi_reduction <add>, %34, %cst_20 [2] : vector<4x8x8xf32> to vector<4x8xf32>
    %38 = vector.shape_cast %37 : vector<4x8xf32> to vector<4x8x1xf32>
    %39 = arith.addf %36, %38 : vector<4x8x1xf32>
    %c0_21 = arith.constant 0 : index
    %c0_22 = arith.constant 0 : index
    %c0_23 = arith.constant 0 : index
    %40 = vector.load %arg13[%c0_21, %c0_22, %c0_23] : memref<4x8x1xf32, #tpu.memory_space<vmem>>, vector<4x8x1xf32>
    tpu.vector_store %arg13[%c0_21, %c0_22, %c0_23], %39 {strides = array<i32>} : memref<4x8x1xf32, #tpu.memory_space<vmem>>, vector<4x8x1xf32>,
    %c0_24 = arith.constant 0 : index
    %c0_25 = arith.constant 0 : index
    %c0_26 = arith.constant 0 : index
    %41 = vector.load %arg14[%c0_24, %c0_25, %c0_26] : memref<4x8x8xf32, #tpu.memory_space<vmem>>, vector<4x8x8xf32>
    %42 = vector.broadcast %31 : vector<4x8x1xf32> to vector<4x8x8xf32>
    %43 = arith.mulf %42, %41 : vector<4x8x8xf32>
    "tpu.trace_start"() <{level = 10 : i32, message = "hqk,khd->hqd"}> : () -> ()
    %cst_27 = arith.constant dense<0.000000e+00> : vector<4x8x8xf32>
    %44 = tpu.matmul %34, %11, %cst_27 {dimension_numbers = #tpu.dot_dimension_numbers<[2], [0], [1], [2], [0, 0, 0, 1, 1, 2], [0], [1]>} : vector<4x8x8xf32>, vector<8x4x8xf32>, vector<4x8x8xf32> -> vector<4x8x8xf32>
    "tpu.trace_stop"() : () -> ()
    %45 = arith.addf %43, %44 : vector<4x8x8xf32>
    %c0_28 = arith.constant 0 : index
    %c0_29 = arith.constant 0 : index
    %c0_30 = arith.constant 0 : index
    %46 = vector.load %arg14[%c0_28, %c0_29, %c0_30] : memref<4x8x8xf32, #tpu.memory_space<vmem>>, vector<4x8x8xf32>
    tpu.vector_store %arg14[%c0_28, %c0_29, %c0_30], %45 {strides = array<i32>} : memref<4x8x8xf32, #tpu.memory_space<vmem>>, vector<4x8x8xf32>,
    %c0_31 = arith.constant 0 : index
    %c0_32 = arith.constant 0 : index
    %c0_33 = arith.constant 0 : index
    %47 = vector.load %arg12[%c0_31, %c0_32, %c0_33] : memref<4x8x1xf32, #tpu.memory_space<vmem>>, vector<4x8x1xf32>
    tpu.vector_store %arg12[%c0_31, %c0_32, %c0_33], %29 {strides = array<i32>} : memref<4x8x1xf32, #tpu.memory_space<vmem>>, vector<4x8x1xf32>,
    %c0_i32_34 = arith.constant 0 : i32
    %48 = arith.cmpi eq, %arg2, %c0_i32_34 : i32
    %49 = arith.extui %48 : i1 to i32
    %c0_i32_35 = arith.constant 0 : i32
    %50 = arith.cmpi ne, %49, %c0_i32_35 : i32
    scf.if %50 {
      %c0_36 = arith.constant 0 : index
      %c0_37 = arith.constant 0 : index
      %c0_38 = arith.constant 0 : index
      %51 = vector.load %arg14[%c0_36, %c0_37, %c0_38] : memref<4x8x8xf32, #tpu.memory_space<vmem>>, vector<4x8x8xf32>
      %c0_39 = arith.constant 0 : index
      %c0_40 = arith.constant 0 : index
      %c0_41 = arith.constant 0 : index
      %52 = vector.load %arg13[%c0_39, %c0_40, %c0_41] : memref<4x8x1xf32, #tpu.memory_space<vmem>>, vector<4x8x1xf32>
      %53 = vector.broadcast %52 : vector<4x8x1xf32> to vector<4x8x8xf32>
      %54 = arith.divf %51, %53 : vector<4x8x8xf32>
      %55 = tpu.transpose %54, [1, 0, 2] : vector<4x8x8xf32> -> vector<8x4x8xf32>
      %56 = vector.shape_cast %55 : vector<8x4x8xf32> to vector<8x32xf32>
      %c0_42 = arith.constant 0 : index
      %c0_43 = arith.constant 0 : index
      %57 = vector.load %arg7[%c0_42, %c0_43] : memref<32x32xf32, #tpu.memory_space<vmem>>, vector<32x32xf32>
      %cst_44 = arith.constant dense<0.000000e+00> : vector<8x32xf32>
      %58 = tpu.matmul %56, %57, %cst_44 {dimension_numbers = #tpu.dot_dimension_numbers<[1], [0], [0], [1], [0, 0, 1, 1], [], []>} : vector<8x32xf32>, vector<32x32xf32>, vector<8x32xf32> -> vector<8x32xf32>
      %c0_45 = arith.constant 0 : index
      %c0_46 = arith.constant 0 : index
      %59 = vector.load %arg8[%c0_45, %c0_46] : memref<1x32xf32, #tpu.memory_space<vmem>>, vector<1x32xf32>
      %60 = vector.broadcast %59 : vector<1x32xf32> to vector<8x32xf32>
      %61 = arith.addf %58, %60 : vector<8x32xf32>
      %c0_47 = arith.constant 0 : index
      %c0_48 = arith.constant 0 : index
      %c0_49 = arith.constant 0 : index
      %62 = vector.load %arg6[%c0_47, %c0_48, %c0_49] : memref<1x8x32xf32, #tpu.memory_space<vmem>>, vector<1x8x32xf32>
      %63 = vector.shape_cast %62 : vector<1x8x32xf32> to vector<8x32xf32>
      %64 = arith.addf %63, %61 : vector<8x32xf32>
      %cst_50 = arith.constant dense<0.000000e+00> : vector<8xf32>
      %65 = vector.multi_reduction <add>, %64, %cst_50 [1] : vector<8x32xf32> to vector<8xf32>
      %66 = vector.shape_cast %65 : vector<8xf32> to vector<8x1xf32>
      %cst_51 = arith.constant 3.200000e+01 : f32
      %67 = vector.broadcast %cst_51 : f32 to vector<8x1xf32>
      %68 = arith.divf %66, %67 : vector<8x1xf32>
      %69 = vector.broadcast %68 : vector<8x1xf32> to vector<8x32xf32>
      %70 = arith.subf %64, %69 : vector<8x32xf32>
      %71 = vector.broadcast %68 : vector<8x1xf32> to vector<8x32xf32>
      %72 = arith.subf %64, %71 : vector<8x32xf32>
      %73 = arith.mulf %70, %72 : vector<8x32xf32>
      %cst_52 = arith.constant dense<0.000000e+00> : vector<8xf32>
      %74 = vector.multi_reduction <add>, %73, %cst_52 [1] : vector<8x32xf32> to vector<8xf32>
      %75 = vector.shape_cast %74 : vector<8xf32> to vector<8x1xf32>
      %cst_53 = arith.constant 3.200000e+01 : f32
      %76 = vector.broadcast %cst_53 : f32 to vector<8x1xf32>
      %77 = arith.divf %75, %76 : vector<8x1xf32>
      %78 = vector.broadcast %68 : vector<8x1xf32> to vector<8x32xf32>
      %79 = arith.subf %64, %78 : vector<8x32xf32>
      %cst_54 = arith.constant 9.99999974E-6 : f32
      %80 = vector.broadcast %cst_54 : f32 to vector<8x1xf32>
      %81 = arith.addf %77, %80 : vector<8x1xf32>
      %82 = math.rsqrt %81 : vector<8x1xf32>
      %83 = vector.broadcast %82 : vector<8x1xf32> to vector<8x32xf32>
      %84 = arith.mulf %79, %83 : vector<8x32xf32>
      %c0_55 = arith.constant 0 : index
      %c0_56 = arith.constant 0 : index
      %85 = vector.load %arg9[%c0_55, %c0_56] : memref<1x32xf32, #tpu.memory_space<vmem>>, vector<1x32xf32>
      %86 = vector.broadcast %85 : vector<1x32xf32> to vector<8x32xf32>
      %87 = arith.mulf %84, %86 : vector<8x32xf32>
      %c0_57 = arith.constant 0 : index
      %c0_58 = arith.constant 0 : index
      %88 = vector.load %arg10[%c0_57, %c0_58] : memref<1x32xf32, #tpu.memory_space<vmem>>, vector<1x32xf32>
      %89 = vector.broadcast %88 : vector<1x32xf32> to vector<8x32xf32>
      %90 = arith.addf %87, %89 : vector<8x32xf32>
      %c0_59 = arith.constant 0 : index
      %c0_60 = arith.constant 0 : index
      %c0_61 = arith.constant 0 : index
      %91 = vector.load %arg11[%c0_59, %c0_60, %c0_61] : memref<1x8x32xf32, #tpu.memory_space<vmem>>, vector<1x8x32xf32>
      %92 = vector.shape_cast %91 : vector<1x8x32xf32> to vector<8x32xf32>
      %93 = vector.shape_cast %90 : vector<8x32xf32> to vector<1x8x32xf32>
      tpu.vector_store %arg11[%c0_59, %c0_60, %c0_61], %93 {strides = array<i32>} : memref<1x8x32xf32, #tpu.memory_space<vmem>>, vector<1x8x32xf32>,
    } else {
    }
    return
  }
  func.func @transform_0(%arg0: i32, %arg1: i32, %arg2: i32) -> (i32, i32, i32) {
    %c0_i32 = arith.constant 0 : i32
    %c0_i32_0 = arith.constant 0 : i32
    return %arg0, %arg1, %c0_i32 : i32, i32, i32
  }
  func.func @transform_1(%arg0: i32, %arg1: i32, %arg2: i32) -> (i32, i32, i32) {
    %c0_i32 = arith.constant 0 : i32
    %c0_i32_0 = arith.constant 0 : i32
    return %arg0, %arg2, %c0_i32 : i32, i32, i32
  }
  func.func @transform_2(%arg0: i32, %arg1: i32, %arg2: i32) -> (i32, i32, i32) {
    %c0_i32 = arith.constant 0 : i32
    %c0_i32_0 = arith.constant 0 : i32
    return %arg0, %c0_i32, %arg2 : i32, i32, i32
  }
  func.func @transform_3(%arg0: i32, %arg1: i32, %arg2: i32) -> (i32, i32, i32) {
    %c0_i32 = arith.constant 0 : i32
    %c0_i32_0 = arith.constant 0 : i32
    return %arg0, %arg1, %c0_i32 : i32, i32, i32
  }
  func.func @transform_4(%arg0: i32, %arg1: i32, %arg2: i32) -> (i32, i32) {
    %c0_i32 = arith.constant 0 : i32
    %c0_i32_0 = arith.constant 0 : i32
    %c0_i32_1 = arith.constant 0 : i32
    return %c0_i32, %c0_i32_0 : i32, i32
  }
  func.func @transform_5(%arg0: i32, %arg1: i32, %arg2: i32) -> (i32, i32) {
    %c0_i32 = arith.constant 0 : i32
    %c0_i32_0 = arith.constant 0 : i32
    %c0_i32_1 = arith.constant 0 : i32
    return %c0_i32, %c0_i32_0 : i32, i32
  }
  func.func @transform_6(%arg0: i32, %arg1: i32, %arg2: i32) -> (i32, i32) {
    %c0_i32 = arith.constant 0 : i32
    %c0_i32_0 = arith.constant 0 : i32
    %c0_i32_1 = arith.constant 0 : i32
    return %c0_i32, %c0_i32_0 : i32, i32
  }
  func.func @transform_7(%arg0: i32, %arg1: i32, %arg2: i32) -> (i32, i32) {
    %c0_i32 = arith.constant 0 : i32
    %c0_i32_0 = arith.constant 0 : i32
    %c0_i32_1 = arith.constant 0 : i32
    return %c0_i32, %c0_i32_0 : i32, i32
  }
  func.func @transform_8(%arg0: i32, %arg1: i32, %arg2: i32) -> (i32, i32, i32) {
    %c0_i32 = arith.constant 0 : i32
    %c0_i32_0 = arith.constant 0 : i32
    return %arg0, %arg1, %c0_i32 : i32, i32, i32
  }
}

module attributes {stable_mosaic.version = 11 : i64} {
  func.func @_linear_kernel(%arg0: i32, %arg1: i32, %arg2: i32, %arg3: memref<16x32xf32, #tpu.memory_space<vmem>>, %arg4: memref<32x64xf32, #tpu.memory_space<vmem>>, %arg5: memref<1x64xf32, #tpu.memory_space<vmem>>, %arg6: memref<16x64xf32, #tpu.memory_space<vmem>>) attributes {dimension_semantics = [#tpu.dimension_semantics<parallel>, #tpu.dimension_semantics<parallel>, #tpu.dimension_semantics<arbitrary>], iteration_bounds = array<i64: 1, 1, 1>, scalar_prefetch = 0 : i64, scratch_operands = 0 : i64, tpu.core_type = #tpu.core_type<tc>, window_params = [{transform_indices = @transform_0, window_bounds = array<i64: 16, 32>}, {transform_indices = @transform_1, window_bounds = array<i64: 32, 64>}, {transform_indices = @transform_2, window_bounds = array<i64: 1, 64>}, {transform_indices = @transform_3, window_bounds = array<i64: 16, 64>}]} {
    %c0_i32 = arith.constant 0 : i32
    %0 = arith.cmpi eq, %arg2, %c0_i32 : i32
    %1 = arith.extui %0 : i1 to i32
    %c0_i32_0 = arith.constant 0 : i32
    %2 = arith.cmpi ne, %1, %c0_i32_0 : i32
    scf.if %2 {
      %cst_10 = arith.constant 0.000000e+00 : f32
      %12 = vector.broadcast %cst_10 : f32 to vector<16x64xf32>
      %c0_11 = arith.constant 0 : index
      %c0_12 = arith.constant 0 : index
      %13 = vector.load %arg6[%c0_11, %c0_12] : memref<16x64xf32, #tpu.memory_space<vmem>>, vector<16x64xf32>
      tpu.vector_store %arg6[%c0_11, %c0_12], %12 {strides = array<i32>} : memref<16x64xf32, #tpu.memory_space<vmem>>, vector<16x64xf32>,
    } else {
    }
    %c0 = arith.constant 0 : index
    %c0_1 = arith.constant 0 : index
    %3 = vector.load %arg6[%c0, %c0_1] : memref<16x64xf32, #tpu.memory_space<vmem>>, vector<16x64xf32>
    %c0_2 = arith.constant 0 : index
    %c0_3 = arith.constant 0 : index
    %4 = vector.load %arg3[%c0_2, %c0_3] : memref<16x32xf32, #tpu.memory_space<vmem>>, vector<16x32xf32>
    %c0_4 = arith.constant 0 : index
    %c0_5 = arith.constant 0 : index
    %5 = vector.load %arg4[%c0_4, %c0_5] : memref<32x64xf32, #tpu.memory_space<vmem>>, vector<32x64xf32>
    %cst = arith.constant dense<0.000000e+00> : vector<16x64xf32>
    %6 = tpu.matmul %4, %5, %cst {dimension_numbers = #tpu.dot_dimension_numbers<[1], [0], [0], [1], [0, 0, 1, 1], [], []>} : vector<16x32xf32>, vector<32x64xf32>, vector<16x64xf32> -> vector<16x64xf32>
    %7 = arith.addf %3, %6 : vector<16x64xf32>
    %c0_6 = arith.constant 0 : index
    %c0_7 = arith.constant 0 : index
    %8 = vector.load %arg6[%c0_6, %c0_7] : memref<16x64xf32, #tpu.memory_space<vmem>>, vector<16x64xf32>
    tpu.vector_store %arg6[%c0_6, %c0_7], %7 {strides = array<i32>} : memref<16x64xf32, #tpu.memory_space<vmem>>, vector<16x64xf32>,
    %c0_i32_8 = arith.constant 0 : i32
    %9 = arith.cmpi eq, %arg2, %c0_i32_8 : i32
    %10 = arith.extui %9 : i1 to i32
    %c0_i32_9 = arith.constant 0 : i32
    %11 = arith.cmpi ne, %10, %c0_i32_9 : i32
    scf.if %11 {
      %c0_10 = arith.constant 0 : index
      %c0_11 = arith.constant 0 : index
      %12 = vector.load %arg6[%c0_10, %c0_11] : memref<16x64xf32, #tpu.memory_space<vmem>>, vector<16x64xf32>
      %c0_12 = arith.constant 0 : index
      %c0_13 = arith.constant 0 : index
      %13 = vector.load %arg5[%c0_12, %c0_13] : memref<1x64xf32, #tpu.memory_space<vmem>>, vector<1x64xf32>
      %14 = vector.broadcast %13 : vector<1x64xf32> to vector<16x64xf32>
      %15 = arith.addf %12, %14 : vector<16x64xf32>
      %cst_14 = arith.constant 0.000000e+00 : f32
      %16 = vector.broadcast %cst_14 : f32 to vector<16x64xf32>
      %17 = arith.maximumf %15, %16 : vector<16x64xf32>
      %c0_15 = arith.constant 0 : index
      %c0_16 = arith.constant 0 : index
      %18 = vector.load %arg6[%c0_15, %c0_16] : memref<16x64xf32, #tpu.memory_space<vmem>>, vector<16x64xf32>
      tpu.vector_store %arg6[%c0_15, %c0_16], %17 {strides = array<i32>} : memref<16x64xf32, #tpu.memory_space<vmem>>, vector<16x64xf32>,
    } else {
    }
    return
  }
  func.func @transform_0(%arg0: i32, %arg1: i32, %arg2: i32) -> (i32, i32) {
    %c0_i32 = arith.constant 0 : i32
    return %arg0, %arg2 : i32, i32
  }
  func.func @transform_1(%arg0: i32, %arg1: i32, %arg2: i32) -> (i32, i32) {
    %c0_i32 = arith.constant 0 : i32
    return %arg2, %arg1 : i32, i32
  }
  func.func @transform_2(%arg0: i32, %arg1: i32, %arg2: i32) -> (i32, i32) {
    %c0_i32 = arith.constant 0 : i32
    %c0_i32_0 = arith.constant 0 : i32
    return %c0_i32, %arg1 : i32, i32
  }
  func.func @transform_3(%arg0: i32, %arg1: i32, %arg2: i32) -> (i32, i32) {
    %c0_i32 = arith.constant 0 : i32
    return %arg0, %arg1 : i32, i32
  }
}

module attributes {stable_mosaic.version = 11 : i64} {
  func.func @_linear_res_ln_kernel(%arg0: i32, %arg1: i32, %arg2: memref<16x64xf32, #tpu.memory_space<vmem>>, %arg3: memref<64x32xf32, #tpu.memory_space<vmem>>, %arg4: memref<1x32xf32, #tpu.memory_space<vmem>>, %arg5: memref<16x32xf32, #tpu.memory_space<vmem>>, %arg6: memref<1x32xf32, #tpu.memory_space<vmem>>, %arg7: memref<1x32xf32, #tpu.memory_space<vmem>>, %arg8: memref<16x32xf32, #tpu.memory_space<vmem>>) attributes {dimension_semantics = [#tpu.dimension_semantics<parallel>, #tpu.dimension_semantics<arbitrary>], iteration_bounds = array<i64: 1, 1>, scalar_prefetch = 0 : i64, scratch_operands = 0 : i64, tpu.core_type = #tpu.core_type<tc>, window_params = [{transform_indices = @transform_0, window_bounds = array<i64: 16, 64>}, {transform_indices = @transform_1, window_bounds = array<i64: 64, 32>}, {pipeline_mode = #tpu.pipeline_mode<synchronous>, transform_indices = @transform_2, window_bounds = array<i64: 1, 32>}, {transform_indices = @transform_3, window_bounds = array<i64: 16, 32>}, {pipeline_mode = #tpu.pipeline_mode<synchronous>, transform_indices = @transform_4, window_bounds = array<i64: 1, 32>}, {pipeline_mode = #tpu.pipeline_mode<synchronous>, transform_indices = @transform_5, window_bounds = array<i64: 1, 32>}, {transform_indices = @transform_6, window_bounds = array<i64: 16, 32>}]} {
    %c0_i32 = arith.constant 0 : i32
    %0 = arith.cmpi eq, %arg1, %c0_i32 : i32
    %1 = arith.extui %0 : i1 to i32
    %c0_i32_0 = arith.constant 0 : i32
    %2 = arith.cmpi ne, %1, %c0_i32_0 : i32
    scf.if %2 {
      %cst_10 = arith.constant 0.000000e+00 : f32
      %12 = vector.broadcast %cst_10 : f32 to vector<16x32xf32>
      %c0_11 = arith.constant 0 : index
      %c0_12 = arith.constant 0 : index
      %13 = vector.load %arg8[%c0_11, %c0_12] : memref<16x32xf32, #tpu.memory_space<vmem>>, vector<16x32xf32>
      tpu.vector_store %arg8[%c0_11, %c0_12], %12 {strides = array<i32>} : memref<16x32xf32, #tpu.memory_space<vmem>>, vector<16x32xf32>,
    } else {
    }
    %c0 = arith.constant 0 : index
    %c0_1 = arith.constant 0 : index
    %3 = vector.load %arg8[%c0, %c0_1] : memref<16x32xf32, #tpu.memory_space<vmem>>, vector<16x32xf32>
    %c0_2 = arith.constant 0 : index
    %c0_3 = arith.constant 0 : index
    %4 = vector.load %arg2[%c0_2, %c0_3] : memref<16x64xf32, #tpu.memory_space<vmem>>, vector<16x64xf32>
    %c0_4 = arith.constant 0 : index
    %c0_5 = arith.constant 0 : index
    %5 = vector.load %arg3[%c0_4, %c0_5] : memref<64x32xf32, #tpu.memory_space<vmem>>, vector<64x32xf32>
    %cst = arith.constant dense<0.000000e+00> : vector<16x32xf32>
    %6 = tpu.matmul %4, %5, %cst {dimension_numbers = #tpu.dot_dimension_numbers<[1], [0], [0], [1], [0, 0, 1, 1], [], []>} : vector<16x64xf32>, vector<64x32xf32>, vector<16x32xf32> -> vector<16x32xf32>
    %7 = arith.addf %3, %6 : vector<16x32xf32>
    %c0_6 = arith.constant 0 : index
    %c0_7 = arith.constant 0 : index
    %8 = vector.load %arg8[%c0_6, %c0_7] : memref<16x32xf32, #tpu.memory_space<vmem>>, vector<16x32xf32>
    tpu.vector_store %arg8[%c0_6, %c0_7], %7 {strides = array<i32>} : memref<16x32xf32, #tpu.memory_space<vmem>>, vector<16x32xf32>,
    %c0_i32_8 = arith.constant 0 : i32
    %9 = arith.cmpi eq, %arg1, %c0_i32_8 : i32
    %10 = arith.extui %9 : i1 to i32
    %c0_i32_9 = arith.constant 0 : i32
    %11 = arith.cmpi ne, %10, %c0_i32_9 : i32
    scf.if %11 {
      %c0_10 = arith.constant 0 : index
      %c0_11 = arith.constant 0 : index
      %12 = vector.load %arg8[%c0_10, %c0_11] : memref<16x32xf32, #tpu.memory_space<vmem>>, vector<16x32xf32>
      %c0_12 = arith.constant 0 : index
      %c0_13 = arith.constant 0 : index
      %13 = vector.load %arg4[%c0_12, %c0_13] : memref<1x32xf32, #tpu.memory_space<vmem>>, vector<1x32xf32>
      %14 = vector.broadcast %13 : vector<1x32xf32> to vector<16x32xf32>
      %15 = arith.addf %12, %14 : vector<16x32xf32>
      %c0_14 = arith.constant 0 : index
      %c0_15 = arith.constant 0 : index
      %16 = vector.load %arg5[%c0_14, %c0_15] : memref<16x32xf32, #tpu.memory_space<vmem>>, vector<16x32xf32>
      %17 = arith.addf %15, %16 : vector<16x32xf32>
      %cst_16 = arith.constant dense<0.000000e+00> : vector<16xf32>
      %18 = vector.multi_reduction <add>, %17, %cst_16 [1] : vector<16x32xf32> to vector<16xf32>
      %19 = vector.shape_cast %18 : vector<16xf32> to vector<16x1xf32>
      %cst_17 = arith.constant 3.200000e+01 : f32
      %20 = vector.broadcast %cst_17 : f32 to vector<16x1xf32>
      %21 = arith.divf %19, %20 : vector<16x1xf32>
      %22 = vector.broadcast %21 : vector<16x1xf32> to vector<16x32xf32>
      %23 = arith.subf %17, %22 : vector<16x32xf32>
      %24 = vector.broadcast %21 : vector<16x1xf32> to vector<16x32xf32>
      %25 = arith.subf %17, %24 : vector<16x32xf32>
      %26 = arith.mulf %23, %25 : vector<16x32xf32>
      %cst_18 = arith.constant dense<0.000000e+00> : vector<16xf32>
      %27 = vector.multi_reduction <add>, %26, %cst_18 [1] : vector<16x32xf32> to vector<16xf32>
      %28 = vector.shape_cast %27 : vector<16xf32> to vector<16x1xf32>
      %cst_19 = arith.constant 3.200000e+01 : f32
      %29 = vector.broadcast %cst_19 : f32 to vector<16x1xf32>
      %30 = arith.divf %28, %29 : vector<16x1xf32>
      %31 = vector.broadcast %21 : vector<16x1xf32> to vector<16x32xf32>
      %32 = arith.subf %17, %31 : vector<16x32xf32>
      %cst_20 = arith.constant 9.99999974E-6 : f32
      %33 = vector.broadcast %cst_20 : f32 to vector<16x1xf32>
      %34 = arith.addf %30, %33 : vector<16x1xf32>
      %35 = math.rsqrt %34 : vector<16x1xf32>
      %36 = vector.broadcast %35 : vector<16x1xf32> to vector<16x32xf32>
      %37 = arith.mulf %32, %36 : vector<16x32xf32>
      %c0_21 = arith.constant 0 : index
      %c0_22 = arith.constant 0 : index
      %38 = vector.load %arg6[%c0_21, %c0_22] : memref<1x32xf32, #tpu.memory_space<vmem>>, vector<1x32xf32>
      %39 = vector.broadcast %38 : vector<1x32xf32> to vector<16x32xf32>
      %40 = arith.mulf %37, %39 : vector<16x32xf32>
      %c0_23 = arith.constant 0 : index
      %c0_24 = arith.constant 0 : index
      %41 = vector.load %arg7[%c0_23, %c0_24] : memref<1x32xf32, #tpu.memory_space<vmem>>, vector<1x32xf32>
      %42 = vector.broadcast %41 : vector<1x32xf32> to vector<16x32xf32>
      %43 = arith.addf %40, %42 : vector<16x32xf32>
      %c0_25 = arith.constant 0 : index
      %c0_26 = arith.constant 0 : index
      %44 = vector.load %arg8[%c0_25, %c0_26] : memref<16x32xf32, #tpu.memory_space<vmem>>, vector<16x32xf32>
      tpu.vector_store %arg8[%c0_25, %c0_26], %43 {strides = array<i32>} : memref<16x32xf32, #tpu.memory_space<vmem>>, vector<16x32xf32>,
    } else {
    }
    return
  }
  func.func @transform_0(%arg0: i32, %arg1: i32) -> (i32, i32) {
    %c0_i32 = arith.constant 0 : i32
    return %arg0, %arg1 : i32, i32
  }
  func.func @transform_1(%arg0: i32, %arg1: i32) -> (i32, i32) {
    %c0_i32 = arith.constant 0 : i32
    %c0_i32_0 = arith.constant 0 : i32
    return %arg1, %c0_i32 : i32, i32
  }
  func.func @transform_2(%arg0: i32, %arg1: i32) -> (i32, i32) {
    %c0_i32 = arith.constant 0 : i32
    %c0_i32_0 = arith.constant 0 : i32
    %c0_i32_1 = arith.constant 0 : i32
    return %c0_i32, %c0_i32_0 : i32, i32
  }
  func.func @transform_3(%arg0: i32, %arg1: i32) -> (i32, i32) {
    %c0_i32 = arith.constant 0 : i32
    %c0_i32_0 = arith.constant 0 : i32
    return %arg0, %c0_i32 : i32, i32
  }
  func.func @transform_4(%arg0: i32, %arg1: i32) -> (i32, i32) {
    %c0_i32 = arith.constant 0 : i32
    %c0_i32_0 = arith.constant 0 : i32
    %c0_i32_1 = arith.constant 0 : i32
    return %c0_i32, %c0_i32_0 : i32, i32
  }
  func.func @transform_5(%arg0: i32, %arg1: i32) -> (i32, i32) {
    %c0_i32 = arith.constant 0 : i32
    %c0_i32_0 = arith.constant 0 : i32
    %c0_i32_1 = arith.constant 0 : i32
    return %c0_i32, %c0_i32_0 : i32, i32
  }
  func.func @transform_6(%arg0: i32, %arg1: i32) -> (i32, i32) {
    %c0_i32 = arith.constant 0 : i32
    %c0_i32_0 = arith.constant 0 : i32
    return %arg0, %c0_i32 : i32, i32
  }
}

module attributes {stable_mosaic.version = 11 : i64} {
  func.func @_linear_kernel(%arg0: i32, %arg1: i32, %arg2: i32, %arg3: memref<16x32xf32, #tpu.memory_space<vmem>>, %arg4: memref<32x32xf32, #tpu.memory_space<vmem>>, %arg5: memref<1x32xf32, #tpu.memory_space<vmem>>, %arg6: memref<16x32xf32, #tpu.memory_space<vmem>>) attributes {dimension_semantics = [#tpu.dimension_semantics<parallel>, #tpu.dimension_semantics<parallel>, #tpu.dimension_semantics<arbitrary>], iteration_bounds = array<i64: 1, 1, 1>, scalar_prefetch = 0 : i64, scratch_operands = 0 : i64, tpu.core_type = #tpu.core_type<tc>, window_params = [{transform_indices = @transform_0, window_bounds = array<i64: 16, 32>}, {transform_indices = @transform_1, window_bounds = array<i64: 32, 32>}, {transform_indices = @transform_2, window_bounds = array<i64: 1, 32>}, {transform_indices = @transform_3, window_bounds = array<i64: 16, 32>}]} {
    %c0_i32 = arith.constant 0 : i32
    %0 = arith.cmpi eq, %arg2, %c0_i32 : i32
    %1 = arith.extui %0 : i1 to i32
    %c0_i32_0 = arith.constant 0 : i32
    %2 = arith.cmpi ne, %1, %c0_i32_0 : i32
    scf.if %2 {
      %cst_10 = arith.constant 0.000000e+00 : f32
      %12 = vector.broadcast %cst_10 : f32 to vector<16x32xf32>
      %c0_11 = arith.constant 0 : index
      %c0_12 = arith.constant 0 : index
      %13 = vector.load %arg6[%c0_11, %c0_12] : memref<16x32xf32, #tpu.memory_space<vmem>>, vector<16x32xf32>
      tpu.vector_store %arg6[%c0_11, %c0_12], %12 {strides = array<i32>} : memref<16x32xf32, #tpu.memory_space<vmem>>, vector<16x32xf32>,
    } else {
    }
    %c0 = arith.constant 0 : index
    %c0_1 = arith.constant 0 : index
    %3 = vector.load %arg6[%c0, %c0_1] : memref<16x32xf32, #tpu.memory_space<vmem>>, vector<16x32xf32>
    %c0_2 = arith.constant 0 : index
    %c0_3 = arith.constant 0 : index
    %4 = vector.load %arg3[%c0_2, %c0_3] : memref<16x32xf32, #tpu.memory_space<vmem>>, vector<16x32xf32>
    %c0_4 = arith.constant 0 : index
    %c0_5 = arith.constant 0 : index
    %5 = vector.load %arg4[%c0_4, %c0_5] : memref<32x32xf32, #tpu.memory_space<vmem>>, vector<32x32xf32>
    %cst = arith.constant dense<0.000000e+00> : vector<16x32xf32>
    %6 = tpu.matmul %4, %5, %cst {dimension_numbers = #tpu.dot_dimension_numbers<[1], [0], [0], [1], [0, 0, 1, 1], [], []>} : vector<16x32xf32>, vector<32x32xf32>, vector<16x32xf32> -> vector<16x32xf32>
    %7 = arith.addf %3, %6 : vector<16x32xf32>
    %c0_6 = arith.constant 0 : index
    %c0_7 = arith.constant 0 : index
    %8 = vector.load %arg6[%c0_6, %c0_7] : memref<16x32xf32, #tpu.memory_space<vmem>>, vector<16x32xf32>
    tpu.vector_store %arg6[%c0_6, %c0_7], %7 {strides = array<i32>} : memref<16x32xf32, #tpu.memory_space<vmem>>, vector<16x32xf32>,
    %c0_i32_8 = arith.constant 0 : i32
    %9 = arith.cmpi eq, %arg2, %c0_i32_8 : i32
    %10 = arith.extui %9 : i1 to i32
    %c0_i32_9 = arith.constant 0 : i32
    %11 = arith.cmpi ne, %10, %c0_i32_9 : i32
    scf.if %11 {
      %c0_10 = arith.constant 0 : index
      %c0_11 = arith.constant 0 : index
      %12 = vector.load %arg6[%c0_10, %c0_11] : memref<16x32xf32, #tpu.memory_space<vmem>>, vector<16x32xf32>
      %c0_12 = arith.constant 0 : index
      %c0_13 = arith.constant 0 : index
      %13 = vector.load %arg5[%c0_12, %c0_13] : memref<1x32xf32, #tpu.memory_space<vmem>>, vector<1x32xf32>
      %14 = vector.broadcast %13 : vector<1x32xf32> to vector<16x32xf32>
      %15 = arith.addf %12, %14 : vector<16x32xf32>
      %c0_14 = arith.constant 0 : index
      %c0_15 = arith.constant 0 : index
      %16 = vector.load %arg6[%c0_14, %c0_15] : memref<16x32xf32, #tpu.memory_space<vmem>>, vector<16x32xf32>
      tpu.vector_store %arg6[%c0_14, %c0_15], %15 {strides = array<i32>} : memref<16x32xf32, #tpu.memory_space<vmem>>, vector<16x32xf32>,
    } else {
    }
    return
  }
  func.func @transform_0(%arg0: i32, %arg1: i32, %arg2: i32) -> (i32, i32) {
    %c0_i32 = arith.constant 0 : i32
    return %arg0, %arg2 : i32, i32
  }
  func.func @transform_1(%arg0: i32, %arg1: i32, %arg2: i32) -> (i32, i32) {
    %c0_i32 = arith.constant 0 : i32
    return %arg2, %arg1 : i32, i32
  }
  func.func @transform_2(%arg0: i32, %arg1: i32, %arg2: i32) -> (i32, i32) {
    %c0_i32 = arith.constant 0 : i32
    %c0_i32_0 = arith.constant 0 : i32
    return %c0_i32, %arg1 : i32, i32
  }
  func.func @transform_3(%arg0: i32, %arg1: i32, %arg2: i32) -> (i32, i32) {
    %c0_i32 = arith.constant 0 : i32
    return %arg0, %arg1 : i32, i32
  }
}

module attributes {stable_mosaic.version = 11 : i64} {
  func.func @_attn_kernel(%arg0: i32, %arg1: i32, %arg2: i32, %arg3: memref<1x8x96xf32, #tpu.memory_space<vmem>>, %arg4: memref<1x8x96xf32, #tpu.memory_space<vmem>>, %arg5: memref<1x1x8xf32, #tpu.memory_space<vmem>>, %arg6: memref<1x8x32xf32, #tpu.memory_space<vmem>>, %arg7: memref<32x32xf32, #tpu.memory_space<vmem>>, %arg8: memref<1x32xf32, #tpu.memory_space<vmem>>, %arg9: memref<1x32xf32, #tpu.memory_space<vmem>>, %arg10: memref<1x32xf32, #tpu.memory_space<vmem>>, %arg11: memref<1x8x32xf32, #tpu.memory_space<vmem>>, %arg12: memref<4x8x1xf32, #tpu.memory_space<vmem>>, %arg13: memref<4x8x1xf32, #tpu.memory_space<vmem>>, %arg14: memref<4x8x8xf32, #tpu.memory_space<vmem>>) attributes {dimension_semantics = [#tpu.dimension_semantics<parallel>, #tpu.dimension_semantics<parallel>, #tpu.dimension_semantics<arbitrary>], iteration_bounds = array<i64: 2, 1, 1>, scalar_prefetch = 0 : i64, scratch_operands = 3 : i64, tpu.core_type = #tpu.core_type<tc>, window_params = [{transform_indices = @transform_0, window_bounds = array<i64: 1, 8, 96>}, {transform_indices = @transform_1, window_bounds = array<i64: 1, 8, 96>}, {transform_indices = @transform_2, window_bounds = array<i64: 1, 1, 8>}, {transform_indices = @transform_3, window_bounds = array<i64: 1, 8, 32>}, {pipeline_mode = #tpu.pipeline_mode<synchronous>, transform_indices = @transform_4, window_bounds = array<i64: 32, 32>}, {pipeline_mode = #tpu.pipeline_mode<synchronous>, transform_indices = @transform_5, window_bounds = array<i64: 1, 32>}, {pipeline_mode = #tpu.pipeline_mode<synchronous>, transform_indices = @transform_6, window_bounds = array<i64: 1, 32>}, {pipeline_mode = #tpu.pipeline_mode<synchronous>, transform_indices = @transform_7, window_bounds = array<i64: 1, 32>}, {transform_indices = @transform_8, window_bounds = array<i64: 1, 8, 32>}]} {
    %c0_i32 = arith.constant 0 : i32
    %0 = arith.cmpi eq, %arg2, %c0_i32 : i32
    %1 = arith.extui %0 : i1 to i32
    %c0_i32_0 = arith.constant 0 : i32
    %2 = arith.cmpi ne, %1, %c0_i32_0 : i32
    scf.if %2 {
      %cst_37 = arith.constant 0xFF800000 : f32
      %61 = vector.broadcast %cst_37 : f32 to vector<4x8x1xf32>
      %c0_38 = arith.constant 0 : index
      %c0_39 = arith.constant 0 : index
      %c0_40 = arith.constant 0 : index
      %62 = vector.load %arg12[%c0_38, %c0_39, %c0_40] : memref<4x8x1xf32, #tpu.memory_space<vmem>>, vector<4x8x1xf32>
      tpu.vector_store %arg12[%c0_38, %c0_39, %c0_40], %61 {strides = array<i32>} : memref<4x8x1xf32, #tpu.memory_space<vmem>>, vector<4x8x1xf32>,
      %cst_41 = arith.constant 0.000000e+00 : f32
      %63 = vector.broadcast %cst_41 : f32 to vector<4x8x1xf32>
      %c0_42 = arith.constant 0 : index
      %c0_43 = arith.constant 0 : index
      %c0_44 = arith.constant 0 : index
      %64 = vector.load %arg13[%c0_42, %c0_43, %c0_44] : memref<4x8x1xf32, #tpu.memory_space<vmem>>, vector<4x8x1xf32>
      tpu.vector_store %arg13[%c0_42, %c0_43, %c0_44], %63 {strides = array<i32>} : memref<4x8x1xf32, #tpu.memory_space<vmem>>, vector<4x8x1xf32>,
      %cst_45 = arith.constant 0.000000e+00 : f32
      %65 = vector.broadcast %cst_45 : f32 to vector<4x8x8xf32>
      %c0_46 = arith.constant 0 : index
      %c0_47 = arith.constant 0 : index
      %c0_48 = arith.constant 0 : index
      %66 = vector.load %arg14[%c0_46, %c0_47, %c0_48] : memref<4x8x8xf32, #tpu.memory_space<vmem>>, vector<4x8x8xf32>
      tpu.vector_store %arg14[%c0_46, %c0_47, %c0_48], %65 {strides = array<i32>} : memref<4x8x8xf32, #tpu.memory_space<vmem>>, vector<4x8x8xf32>,
    } else {
    }
    %c0 = arith.constant 0 : index
    %c0_1 = arith.constant 0 : index
    %c0_2 = arith.constant 0 : index
    %3 = vector.load %arg3[%c0, %c0_1, %c0_2] : memref<1x8x96xf32, #tpu.memory_space<vmem>>, vector<1x8x32xf32>
    %4 = vector.shape_cast %3 : vector<1x8x32xf32> to vector<8x32xf32>
    %c0_3 = arith.constant 0 : index
    %c0_4 = arith.constant 0 : index
    %c32 = arith.constant 32 : index
    %5 = vector.load %arg4[%c0_3, %c0_4, %c32] : memref<1x8x96xf32, #tpu.memory_space<vmem>>, vector<1x8x32xf32>
    %6 = vector.shape_cast %5 : vector<1x8x32xf32> to vector<8x32xf32>
    %c0_5 = arith.constant 0 : index
    %c0_6 = arith.constant 0 : index
    %c64 = arith.constant 64 : index
    %7 = vector.load %arg4[%c0_5, %c0_6, %c64] : memref<1x8x96xf32, #tpu.memory_space<vmem>>, vector<1x8x32xf32>
    %8 = vector.shape_cast %7 : vector<1x8x32xf32> to vector<8x32xf32>
    %9 = vector.shape_cast %4 : vector<8x32xf32> to vector<8x4x8xf32>
    %10 = vector.shape_cast %6 : vector<8x32xf32> to vector<8x4x8xf32>
    %11 = vector.shape_cast %8 : vector<8x32xf32> to vector<8x4x8xf32>
    "tpu.trace_start"() <{level = 10 : i32, message = "qhd,khd->hqk"}> : () -> ()
    %cst = arith.constant dense<0.000000e+00> : vector<4x8x8xf32>
    %12 = tpu.matmul %9, %10, %cst {dimension_numbers = #tpu.dot_dimension_numbers<[2], [2], [0], [0], [0, 1, 0, 0, 1, 0], [1], [1]>} : vector<8x4x8xf32>, vector<8x4x8xf32>, vector<4x8x8xf32> -> vector<4x8x8xf32>
    "tpu.trace_stop"() : () -> ()
    %cst_7 = arith.constant 0.353553385 : f32
    %13 = vector.broadcast %cst_7 : f32 to vector<4x8x8xf32>
    %14 = arith.mulf %12, %13 : vector<4x8x8xf32>
    %c0_8 = arith.constant 0 : index
    %c0_9 = arith.constant 0 : index
    %c0_10 = arith.constant 0 : index
    %15 = vector.load %arg5[%c0_8, %c0_9, %c0_10] : memref<1x1x8xf32, #tpu.memory_space<vmem>>, vector<1x1x8xf32>
    %16 = vector.shape_cast %15 : vector<1x1x8xf32> to vector<1x8xf32>
    %cst_11 = arith.constant 0.000000e+00 : f32
    %17 = vector.broadcast %cst_11 : f32 to vector<1x8xf32>
    %18 = arith.cmpf oeq, %16, %17 : vector<1x8xf32>
    %19 = vector.shape_cast %18 : vector<1x8xi1> to vector<1x8xi1>
    %20 = vector.broadcast %19 : vector<1x8xi1> to vector<8x8xi1>
    %c8_i32 = arith.constant 8 : i32
    %21 = arith.muli %arg1, %c8_i32 : i32
    %22 = tpu.iota {dimensions = array<i32: 0>} : vector<8x8xi32>
    %23 = vector.broadcast %21 : i32 to vector<8x8xi32>
    %24 = arith.addi %23, %22 : vector<8x8xi32>
    %c8_i32_12 = arith.constant 8 : i32
    %25 = arith.muli %arg2, %c8_i32_12 : i32
    %26 = tpu.iota {dimensions = array<i32: 1>} : vector<8x8xi32>
    %27 = vector.broadcast %25 : i32 to vector<8x8xi32>
    %28 = arith.addi %27, %26 : vector<8x8xi32>
    %29 = arith.cmpi sgt, %28, %24 : vector<8x8xi32>
    %30 = arith.ori %20, %29 : vector<8x8xi1>
    %31 = vector.shape_cast %30 : vector<8x8xi1> to vector<1x8x8xi1>
    %cst_13 = arith.constant -1.000000e+10 : f32
    %32 = vector.shape_cast %31 : vector<1x8x8xi1> to vector<1x8x8xi1>
    %33 = vector.broadcast %32 : vector<1x8x8xi1> to vector<4x8x8xi1>
    %34 = vector.broadcast %cst_13 : f32 to vector<4x8x8xf32>
    %35 = arith.select %33, %34, %14 : vector<4x8x8xi1>, vector<4x8x8xf32>
    %c0_14 = arith.constant 0 : index
    %c0_15 = arith.constant 0 : index
    %c0_16 = arith.constant 0 : index
    %36 = vector.load %arg12[%c0_14, %c0_15, %c0_16] : memref<4x8x1xf32, #tpu.memory_space<vmem>>, vector<4x8x1xf32>
    %cst_17 = arith.constant dense<0xFF800000> : vector<4x8xf32>
    %37 = vector.multi_reduction <maximumf>, %35, %cst_17 [2] : vector<4x8x8xf32> to vector<4x8xf32>
    %38 = vector.shape_cast %37 : vector<4x8xf32> to vector<4x8x1xf32>
    %39 = arith.maximumf %36, %38 : vector<4x8x1xf32>
    %40 = arith.subf %36, %39 : vector<4x8x1xf32>
    %41 = math.exp %40 : vector<4x8x1xf32>
    %42 = vector.broadcast %39 : vector<4x8x1xf32> to vector<4x8x8xf32>
    %43 = arith.subf %35, %42 : vector<4x8x8xf32>
    %44 = math.exp %43 : vector<4x8x8xf32>
    %c0_18 = arith.constant 0 : index
    %c0_19 = arith.constant 0 : index
    %c0_20 = arith.constant 0 : index
    %45 = vector.load %arg13[%c0_18, %c0_19, %c0_20] : memref<4x8x1xf32, #tpu.memory_space<vmem>>, vector<4x8x1xf32>
    %46 = arith.mulf %41, %45 : vector<4x8x1xf32>
    %cst_21 = arith.constant dense<0.000000e+00> : vector<4x8xf32>
    %47 = vector.multi_reduction <add>, %44, %cst_21 [2] : vector<4x8x8xf32> to vector<4x8xf32>
    %48 = vector.shape_cast %47 : vector<4x8xf32> to vector<4x8x1xf32>
    %49 = arith.addf %46, %48 : vector<4x8x1xf32>
    %c0_22 = arith.constant 0 : index
    %c0_23 = arith.constant 0 : index
    %c0_24 = arith.constant 0 : index
    %50 = vector.load %arg13[%c0_22, %c0_23, %c0_24] : memref<4x8x1xf32, #tpu.memory_space<vmem>>, vector<4x8x1xf32>
    tpu.vector_store %arg13[%c0_22, %c0_23, %c0_24], %49 {strides = array<i32>} : memref<4x8x1xf32, #tpu.memory_space<vmem>>, vector<4x8x1xf32>,
    %c0_25 = arith.constant 0 : index
    %c0_26 = arith.constant 0 : index
    %c0_27 = arith.constant 0 : index
    %51 = vector.load %arg14[%c0_25, %c0_26, %c0_27] : memref<4x8x8xf32, #tpu.memory_space<vmem>>, vector<4x8x8xf32>
    %52 = vector.broadcast %41 : vector<4x8x1xf32> to vector<4x8x8xf32>
    %53 = arith.mulf %52, %51 : vector<4x8x8xf32>
    "tpu.trace_start"() <{level = 10 : i32, message = "hqk,khd->hqd"}> : () -> ()
    %cst_28 = arith.constant dense<0.000000e+00> : vector<4x8x8xf32>
    %54 = tpu.matmul %44, %11, %cst_28 {dimension_numbers = #tpu.dot_dimension_numbers<[2], [0], [1], [2], [0, 0, 0, 1, 1, 2], [0], [1]>} : vector<4x8x8xf32>, vector<8x4x8xf32>, vector<4x8x8xf32> -> vector<4x8x8xf32>
    "tpu.trace_stop"() : () -> ()
    %55 = arith.addf %53, %54 : vector<4x8x8xf32>
    %c0_29 = arith.constant 0 : index
    %c0_30 = arith.constant 0 : index
    %c0_31 = arith.constant 0 : index
    %56 = vector.load %arg14[%c0_29, %c0_30, %c0_31] : memref<4x8x8xf32, #tpu.memory_space<vmem>>, vector<4x8x8xf32>
    tpu.vector_store %arg14[%c0_29, %c0_30, %c0_31], %55 {strides = array<i32>} : memref<4x8x8xf32, #tpu.memory_space<vmem>>, vector<4x8x8xf32>,
    %c0_32 = arith.constant 0 : index
    %c0_33 = arith.constant 0 : index
    %c0_34 = arith.constant 0 : index
    %57 = vector.load %arg12[%c0_32, %c0_33, %c0_34] : memref<4x8x1xf32, #tpu.memory_space<vmem>>, vector<4x8x1xf32>
    tpu.vector_store %arg12[%c0_32, %c0_33, %c0_34], %39 {strides = array<i32>} : memref<4x8x1xf32, #tpu.memory_space<vmem>>, vector<4x8x1xf32>,
    %c0_i32_35 = arith.constant 0 : i32
    %58 = arith.cmpi eq, %arg2, %c0_i32_35 : i32
    %59 = arith.extui %58 : i1 to i32
    %c0_i32_36 = arith.constant 0 : i32
    %60 = arith.cmpi ne, %59, %c0_i32_36 : i32
    scf.if %60 {
      %c0_37 = arith.constant 0 : index
      %c0_38 = arith.constant 0 : index
      %c0_39 = arith.constant 0 : index
      %61 = vector.load %arg14[%c0_37, %c0_38, %c0_39] : memref<4x8x8xf32, #tpu.memory_space<vmem>>, vector<4x8x8xf32>
      %c0_40 = arith.constant 0 : index
      %c0_41 = arith.constant 0 : index
      %c0_42 = arith.constant 0 : index
      %62 = vector.load %arg13[%c0_40, %c0_41, %c0_42] : memref<4x8x1xf32, #tpu.memory_space<vmem>>, vector<4x8x1xf32>
      %63 = vector.broadcast %62 : vector<4x8x1xf32> to vector<4x8x8xf32>
      %64 = arith.divf %61, %63 : vector<4x8x8xf32>
      %65 = tpu.transpose %64, [1, 0, 2] : vector<4x8x8xf32> -> vector<8x4x8xf32>
      %66 = vector.shape_cast %65 : vector<8x4x8xf32> to vector<8x32xf32>
      %c0_43 = arith.constant 0 : index
      %c0_44 = arith.constant 0 : index
      %67 = vector.load %arg7[%c0_43, %c0_44] : memref<32x32xf32, #tpu.memory_space<vmem>>, vector<32x32xf32>
      %cst_45 = arith.constant dense<0.000000e+00> : vector<8x32xf32>
      %68 = tpu.matmul %66, %67, %cst_45 {dimension_numbers = #tpu.dot_dimension_numbers<[1], [0], [0], [1], [0, 0, 1, 1], [], []>} : vector<8x32xf32>, vector<32x32xf32>, vector<8x32xf32> -> vector<8x32xf32>
      %c0_46 = arith.constant 0 : index
      %c0_47 = arith.constant 0 : index
      %69 = vector.load %arg8[%c0_46, %c0_47] : memref<1x32xf32, #tpu.memory_space<vmem>>, vector<1x32xf32>
      %70 = vector.broadcast %69 : vector<1x32xf32> to vector<8x32xf32>
      %71 = arith.addf %68, %70 : vector<8x32xf32>
      %c0_48 = arith.constant 0 : index
      %c0_49 = arith.constant 0 : index
      %c0_50 = arith.constant 0 : index
      %72 = vector.load %arg6[%c0_48, %c0_49, %c0_50] : memref<1x8x32xf32, #tpu.memory_space<vmem>>, vector<1x8x32xf32>
      %73 = vector.shape_cast %72 : vector<1x8x32xf32> to vector<8x32xf32>
      %74 = arith.addf %73, %71 : vector<8x32xf32>
      %cst_51 = arith.constant dense<0.000000e+00> : vector<8xf32>
      %75 = vector.multi_reduction <add>, %74, %cst_51 [1] : vector<8x32xf32> to vector<8xf32>
      %76 = vector.shape_cast %75 : vector<8xf32> to vector<8x1xf32>
      %cst_52 = arith.constant 3.200000e+01 : f32
      %77 = vector.broadcast %cst_52 : f32 to vector<8x1xf32>
      %78 = arith.divf %76, %77 : vector<8x1xf32>
      %79 = vector.broadcast %78 : vector<8x1xf32> to vector<8x32xf32>
      %80 = arith.subf %74, %79 : vector<8x32xf32>
      %81 = vector.broadcast %78 : vector<8x1xf32> to vector<8x32xf32>
      %82 = arith.subf %74, %81 : vector<8x32xf32>
      %83 = arith.mulf %80, %82 : vector<8x32xf32>
      %cst_53 = arith.constant dense<0.000000e+00> : vector<8xf32>
      %84 = vector.multi_reduction <add>, %83, %cst_53 [1] : vector<8x32xf32> to vector<8xf32>
      %85 = vector.shape_cast %84 : vector<8xf32> to vector<8x1xf32>
      %cst_54 = arith.constant 3.200000e+01 : f32
      %86 = vector.broadcast %cst_54 : f32 to vector<8x1xf32>
      %87 = arith.divf %85, %86 : vector<8x1xf32>
      %88 = vector.broadcast %78 : vector<8x1xf32> to vector<8x32xf32>
      %89 = arith.subf %74, %88 : vector<8x32xf32>
      %cst_55 = arith.constant 9.99999974E-6 : f32
      %90 = vector.broadcast %cst_55 : f32 to vector<8x1xf32>
      %91 = arith.addf %87, %90 : vector<8x1xf32>
      %92 = math.rsqrt %91 : vector<8x1xf32>
      %93 = vector.broadcast %92 : vector<8x1xf32> to vector<8x32xf32>
      %94 = arith.mulf %89, %93 : vector<8x32xf32>
      %c0_56 = arith.constant 0 : index
      %c0_57 = arith.constant 0 : index
      %95 = vector.load %arg9[%c0_56, %c0_57] : memref<1x32xf32, #tpu.memory_space<vmem>>, vector<1x32xf32>
      %96 = vector.broadcast %95 : vector<1x32xf32> to vector<8x32xf32>
      %97 = arith.mulf %94, %96 : vector<8x32xf32>
      %c0_58 = arith.constant 0 : index
      %c0_59 = arith.constant 0 : index
      %98 = vector.load %arg10[%c0_58, %c0_59] : memref<1x32xf32, #tpu.memory_space<vmem>>, vector<1x32xf32>
      %99 = vector.broadcast %98 : vector<1x32xf32> to vector<8x32xf32>
      %100 = arith.addf %97, %99 : vector<8x32xf32>
      %c0_60 = arith.constant 0 : index
      %c0_61 = arith.constant 0 : index
      %c0_62 = arith.constant 0 : index
      %101 = vector.load %arg11[%c0_60, %c0_61, %c0_62] : memref<1x8x32xf32, #tpu.memory_space<vmem>>, vector<1x8x32xf32>
      %102 = vector.shape_cast %101 : vector<1x8x32xf32> to vector<8x32xf32>
      %103 = vector.shape_cast %100 : vector<8x32xf32> to vector<1x8x32xf32>
      tpu.vector_store %arg11[%c0_60, %c0_61, %c0_62], %103 {strides = array<i32>} : memref<1x8x32xf32, #tpu.memory_space<vmem>>, vector<1x8x32xf32>,
    } else {
    }
    return
  }
  func.func @transform_0(%arg0: i32, %arg1: i32, %arg2: i32) -> (i32, i32, i32) {
    %c0_i32 = arith.constant 0 : i32
    %c0_i32_0 = arith.constant 0 : i32
    return %arg0, %arg1, %c0_i32 : i32, i32, i32
  }
  func.func @transform_1(%arg0: i32, %arg1: i32, %arg2: i32) -> (i32, i32, i32) {
    %c0_i32 = arith.constant 0 : i32
    %c0_i32_0 = arith.constant 0 : i32
    return %arg0, %arg2, %c0_i32 : i32, i32, i32
  }
  func.func @transform_2(%arg0: i32, %arg1: i32, %arg2: i32) -> (i32, i32, i32) {
    %c0_i32 = arith.constant 0 : i32
    %c0_i32_0 = arith.constant 0 : i32
    return %arg0, %c0_i32, %arg2 : i32, i32, i32
  }
  func.func @transform_3(%arg0: i32, %arg1: i32, %arg2: i32) -> (i32, i32, i32) {
    %c0_i32 = arith.constant 0 : i32
    %c0_i32_0 = arith.constant 0 : i32
    return %arg0, %arg1, %c0_i32 : i32, i32, i32
  }
  func.func @transform_4(%arg0: i32, %arg1: i32, %arg2: i32) -> (i32, i32) {
    %c0_i32 = arith.constant 0 : i32
    %c0_i32_0 = arith.constant 0 : i32
    %c0_i32_1 = arith.constant 0 : i32
    return %c0_i32, %c0_i32_0 : i32, i32
  }
  func.func @transform_5(%arg0: i32, %arg1: i32, %arg2: i32) -> (i32, i32) {
    %c0_i32 = arith.constant 0 : i32
    %c0_i32_0 = arith.constant 0 : i32
    %c0_i32_1 = arith.constant 0 : i32
    return %c0_i32, %c0_i32_0 : i32, i32
  }
  func.func @transform_6(%arg0: i32, %arg1: i32, %arg2: i32) -> (i32, i32) {
    %c0_i32 = arith.constant 0 : i32
    %c0_i32_0 = arith.constant 0 : i32
    %c0_i32_1 = arith.constant 0 : i32
    return %c0_i32, %c0_i32_0 : i32, i32
  }
  func.func @transform_7(%arg0: i32, %arg1: i32, %arg2: i32) -> (i32, i32) {
    %c0_i32 = arith.constant 0 : i32
    %c0_i32_0 = arith.constant 0 : i32
    %c0_i32_1 = arith.constant 0 : i32
    return %c0_i32, %c0_i32_0 : i32, i32
  }
  func.func @transform_8(%arg0: i32, %arg1: i32, %arg2: i32) -> (i32, i32, i32) {
    %c0_i32 = arith.constant 0 : i32
    %c0_i32_0 = arith.constant 0 : i32
    return %arg0, %arg1, %c0_i32 : i32, i32, i32
  }
}

module attributes {stable_mosaic.version = 11 : i64} {
  func.func @_linear_kernel(%arg0: i32, %arg1: i32, %arg2: i32, %arg3: memref<16x32xf32, #tpu.memory_space<vmem>>, %arg4: memref<32x64xf32, #tpu.memory_space<vmem>>, %arg5: memref<1x64xf32, #tpu.memory_space<vmem>>, %arg6: memref<16x64xf32, #tpu.memory_space<vmem>>) attributes {dimension_semantics = [#tpu.dimension_semantics<parallel>, #tpu.dimension_semantics<parallel>, #tpu.dimension_semantics<arbitrary>], iteration_bounds = array<i64: 1, 1, 1>, scalar_prefetch = 0 : i64, scratch_operands = 0 : i64, tpu.core_type = #tpu.core_type<tc>, window_params = [{transform_indices = @transform_0, window_bounds = array<i64: 16, 32>}, {transform_indices = @transform_1, window_bounds = array<i64: 32, 64>}, {transform_indices = @transform_2, window_bounds = array<i64: 1, 64>}, {transform_indices = @transform_3, window_bounds = array<i64: 16, 64>}]} {
    %c0_i32 = arith.constant 0 : i32
    %0 = arith.cmpi eq, %arg2, %c0_i32 : i32
    %1 = arith.extui %0 : i1 to i32
    %c0_i32_0 = arith.constant 0 : i32
    %2 = arith.cmpi ne, %1, %c0_i32_0 : i32
    scf.if %2 {
      %cst_10 = arith.constant 0.000000e+00 : f32
      %12 = vector.broadcast %cst_10 : f32 to vector<16x64xf32>
      %c0_11 = arith.constant 0 : index
      %c0_12 = arith.constant 0 : index
      %13 = vector.load %arg6[%c0_11, %c0_12] : memref<16x64xf32, #tpu.memory_space<vmem>>, vector<16x64xf32>
      tpu.vector_store %arg6[%c0_11, %c0_12], %12 {strides = array<i32>} : memref<16x64xf32, #tpu.memory_space<vmem>>, vector<16x64xf32>,
    } else {
    }
    %c0 = arith.constant 0 : index
    %c0_1 = arith.constant 0 : index
    %3 = vector.load %arg6[%c0, %c0_1] : memref<16x64xf32, #tpu.memory_space<vmem>>, vector<16x64xf32>
    %c0_2 = arith.constant 0 : index
    %c0_3 = arith.constant 0 : index
    %4 = vector.load %arg3[%c0_2, %c0_3] : memref<16x32xf32, #tpu.memory_space<vmem>>, vector<16x32xf32>
    %c0_4 = arith.constant 0 : index
    %c0_5 = arith.constant 0 : index
    %5 = vector.load %arg4[%c0_4, %c0_5] : memref<32x64xf32, #tpu.memory_space<vmem>>, vector<32x64xf32>
    %cst = arith.constant dense<0.000000e+00> : vector<16x64xf32>
    %6 = tpu.matmul %4, %5, %cst {dimension_numbers = #tpu.dot_dimension_numbers<[1], [0], [0], [1], [0, 0, 1, 1], [], []>} : vector<16x32xf32>, vector<32x64xf32>, vector<16x64xf32> -> vector<16x64xf32>
    %7 = arith.addf %3, %6 : vector<16x64xf32>
    %c0_6 = arith.constant 0 : index
    %c0_7 = arith.constant 0 : index
    %8 = vector.load %arg6[%c0_6, %c0_7] : memref<16x64xf32, #tpu.memory_space<vmem>>, vector<16x64xf32>
    tpu.vector_store %arg6[%c0_6, %c0_7], %7 {strides = array<i32>} : memref<16x64xf32, #tpu.memory_space<vmem>>, vector<16x64xf32>,
    %c0_i32_8 = arith.constant 0 : i32
    %9 = arith.cmpi eq, %arg2, %c0_i32_8 : i32
    %10 = arith.extui %9 : i1 to i32
    %c0_i32_9 = arith.constant 0 : i32
    %11 = arith.cmpi ne, %10, %c0_i32_9 : i32
    scf.if %11 {
      %c0_10 = arith.constant 0 : index
      %c0_11 = arith.constant 0 : index
      %12 = vector.load %arg6[%c0_10, %c0_11] : memref<16x64xf32, #tpu.memory_space<vmem>>, vector<16x64xf32>
      %c0_12 = arith.constant 0 : index
      %c0_13 = arith.constant 0 : index
      %13 = vector.load %arg5[%c0_12, %c0_13] : memref<1x64xf32, #tpu.memory_space<vmem>>, vector<1x64xf32>
      %14 = vector.broadcast %13 : vector<1x64xf32> to vector<16x64xf32>
      %15 = arith.addf %12, %14 : vector<16x64xf32>
      %c0_14 = arith.constant 0 : index
      %c0_15 = arith.constant 0 : index
      %16 = vector.load %arg6[%c0_14, %c0_15] : memref<16x64xf32, #tpu.memory_space<vmem>>, vector<16x64xf32>
      tpu.vector_store %arg6[%c0_14, %c0_15], %15 {strides = array<i32>} : memref<16x64xf32, #tpu.memory_space<vmem>>, vector<16x64xf32>,
    } else {
    }
    return
  }
  func.func @transform_0(%arg0: i32, %arg1: i32, %arg2: i32) -> (i32, i32) {
    %c0_i32 = arith.constant 0 : i32
    return %arg0, %arg2 : i32, i32
  }
  func.func @transform_1(%arg0: i32, %arg1: i32, %arg2: i32) -> (i32, i32) {
    %c0_i32 = arith.constant 0 : i32
    return %arg2, %arg1 : i32, i32
  }
  func.func @transform_2(%arg0: i32, %arg1: i32, %arg2: i32) -> (i32, i32) {
    %c0_i32 = arith.constant 0 : i32
    %c0_i32_0 = arith.constant 0 : i32
    return %c0_i32, %arg1 : i32, i32
  }
  func.func @transform_3(%arg0: i32, %arg1: i32, %arg2: i32) -> (i32, i32) {
    %c0_i32 = arith.constant 0 : i32
    return %arg0, %arg1 : i32, i32
  }
}

module attributes {stable_mosaic.version = 11 : i64} {
  func.func @_attn_kernel(%arg0: i32, %arg1: i32, %arg2: i32, %arg3: memref<1x8x32xf32, #tpu.memory_space<vmem>>, %arg4: memref<1x8x64xf32, #tpu.memory_space<vmem>>, %arg5: memref<1x1x8xf32, #tpu.memory_space<vmem>>, %arg6: memref<1x8x32xf32, #tpu.memory_space<vmem>>, %arg7: memref<32x32xf32, #tpu.memory_space<vmem>>, %arg8: memref<1x32xf32, #tpu.memory_space<vmem>>, %arg9: memref<1x32xf32, #tpu.memory_space<vmem>>, %arg10: memref<1x32xf32, #tpu.memory_space<vmem>>, %arg11: memref<1x8x32xf32, #tpu.memory_space<vmem>>, %arg12: memref<4x8x1xf32, #tpu.memory_space<vmem>>, %arg13: memref<4x8x1xf32, #tpu.memory_space<vmem>>, %arg14: memref<4x8x8xf32, #tpu.memory_space<vmem>>) attributes {dimension_semantics = [#tpu.dimension_semantics<parallel>, #tpu.dimension_semantics<parallel>, #tpu.dimension_semantics<arbitrary>], iteration_bounds = array<i64: 2, 1, 1>, scalar_prefetch = 0 : i64, scratch_operands = 3 : i64, tpu.core_type = #tpu.core_type<tc>, window_params = [{transform_indices = @transform_0, window_bounds = array<i64: 1, 8, 32>}, {transform_indices = @transform_1, window_bounds = array<i64: 1, 8, 64>}, {transform_indices = @transform_2, window_bounds = array<i64: 1, 1, 8>}, {transform_indices = @transform_3, window_bounds = array<i64: 1, 8, 32>}, {pipeline_mode = #tpu.pipeline_mode<synchronous>, transform_indices = @transform_4, window_bounds = array<i64: 32, 32>}, {pipeline_mode = #tpu.pipeline_mode<synchronous>, transform_indices = @transform_5, window_bounds = array<i64: 1, 32>}, {pipeline_mode = #tpu.pipeline_mode<synchronous>, transform_indices = @transform_6, window_bounds = array<i64: 1, 32>}, {pipeline_mode = #tpu.pipeline_mode<synchronous>, transform_indices = @transform_7, window_bounds = array<i64: 1, 32>}, {transform_indices = @transform_8, window_bounds = array<i64: 1, 8, 32>}]} {
    %c0_i32 = arith.constant 0 : i32
    %0 = arith.cmpi eq, %arg2, %c0_i32 : i32
    %1 = arith.extui %0 : i1 to i32
    %c0_i32_0 = arith.constant 0 : i32
    %2 = arith.cmpi ne, %1, %c0_i32_0 : i32
    scf.if %2 {
      %cst_37 = arith.constant 0xFF800000 : f32
      %51 = vector.broadcast %cst_37 : f32 to vector<4x8x1xf32>
      %c0_38 = arith.constant 0 : index
      %c0_39 = arith.constant 0 : index
      %c0_40 = arith.constant 0 : index
      %52 = vector.load %arg12[%c0_38, %c0_39, %c0_40] : memref<4x8x1xf32, #tpu.memory_space<vmem>>, vector<4x8x1xf32>
      tpu.vector_store %arg12[%c0_38, %c0_39, %c0_40], %51 {strides = array<i32>} : memref<4x8x1xf32, #tpu.memory_space<vmem>>, vector<4x8x1xf32>,
      %cst_41 = arith.constant 0.000000e+00 : f32
      %53 = vector.broadcast %cst_41 : f32 to vector<4x8x1xf32>
      %c0_42 = arith.constant 0 : index
      %c0_43 = arith.constant 0 : index
      %c0_44 = arith.constant 0 : index
      %54 = vector.load %arg13[%c0_42, %c0_43, %c0_44] : memref<4x8x1xf32, #tpu.memory_space<vmem>>, vector<4x8x1xf32>
      tpu.vector_store %arg13[%c0_42, %c0_43, %c0_44], %53 {strides = array<i32>} : memref<4x8x1xf32, #tpu.memory_space<vmem>>, vector<4x8x1xf32>,
      %cst_45 = arith.constant 0.000000e+00 : f32
      %55 = vector.broadcast %cst_45 : f32 to vector<4x8x8xf32>
      %c0_46 = arith.constant 0 : index
      %c0_47 = arith.constant 0 : index
      %c0_48 = arith.constant 0 : index
      %56 = vector.load %arg14[%c0_46, %c0_47, %c0_48] : memref<4x8x8xf32, #tpu.memory_space<vmem>>, vector<4x8x8xf32>
      tpu.vector_store %arg14[%c0_46, %c0_47, %c0_48], %55 {strides = array<i32>} : memref<4x8x8xf32, #tpu.memory_space<vmem>>, vector<4x8x8xf32>,
    } else {
    }
    %c0 = arith.constant 0 : index
    %c0_1 = arith.constant 0 : index
    %c0_2 = arith.constant 0 : index
    %3 = vector.load %arg3[%c0, %c0_1, %c0_2] : memref<1x8x32xf32, #tpu.memory_space<vmem>>, vector<1x8x32xf32>
    %4 = vector.shape_cast %3 : vector<1x8x32xf32> to vector<8x32xf32>
    %c0_3 = arith.constant 0 : index
    %c0_4 = arith.constant 0 : index
    %c0_5 = arith.constant 0 : index
    %5 = vector.load %arg4[%c0_3, %c0_4, %c0_5] : memref<1x8x64xf32, #tpu.memory_space<vmem>>, vector<1x8x32xf32>
    %6 = vector.shape_cast %5 : vector<1x8x32xf32> to vector<8x32xf32>
    %c0_6 = arith.constant 0 : index
    %c0_7 = arith.constant 0 : index
    %c32 = arith.constant 32 : index
    %7 = vector.load %arg4[%c0_6, %c0_7, %c32] : memref<1x8x64xf32, #tpu.memory_space<vmem>>, vector<1x8x32xf32>
    %8 = vector.shape_cast %7 : vector<1x8x32xf32> to vector<8x32xf32>
    %9 = vector.shape_cast %4 : vector<8x32xf32> to vector<8x4x8xf32>
    %10 = vector.shape_cast %6 : vector<8x32xf32> to vector<8x4x8xf32>
    %11 = vector.shape_cast %8 : vector<8x32xf32> to vector<8x4x8xf32>
    "tpu.trace_start"() <{level = 10 : i32, message = "qhd,khd->hqk"}> : () -> ()
    %cst = arith.constant dense<0.000000e+00> : vector<4x8x8xf32>
    %12 = tpu.matmul %9, %10, %cst {dimension_numbers = #tpu.dot_dimension_numbers<[2], [2], [0], [0], [0, 1, 0, 0, 1, 0], [1], [1]>} : vector<8x4x8xf32>, vector<8x4x8xf32>, vector<4x8x8xf32> -> vector<4x8x8xf32>
    "tpu.trace_stop"() : () -> ()
    %cst_8 = arith.constant 0.353553385 : f32
    %13 = vector.broadcast %cst_8 : f32 to vector<4x8x8xf32>
    %14 = arith.mulf %12, %13 : vector<4x8x8xf32>
    %c0_9 = arith.constant 0 : index
    %c0_10 = arith.constant 0 : index
    %c0_11 = arith.constant 0 : index
    %15 = vector.load %arg5[%c0_9, %c0_10, %c0_11] : memref<1x1x8xf32, #tpu.memory_space<vmem>>, vector<1x1x8xf32>
    %16 = vector.shape_cast %15 : vector<1x1x8xf32> to vector<1x8xf32>
    %cst_12 = arith.constant 0.000000e+00 : f32
    %17 = vector.broadcast %cst_12 : f32 to vector<1x8xf32>
    %18 = arith.cmpf oeq, %16, %17 : vector<1x8xf32>
    %19 = vector.shape_cast %18 : vector<1x8xi1> to vector<1x8xi1>
    %20 = vector.broadcast %19 : vector<1x8xi1> to vector<8x8xi1>
    %21 = vector.shape_cast %20 : vector<8x8xi1> to vector<1x8x8xi1>
    %cst_13 = arith.constant -1.000000e+10 : f32
    %22 = vector.shape_cast %21 : vector<1x8x8xi1> to vector<1x8x8xi1>
    %23 = vector.broadcast %22 : vector<1x8x8xi1> to vector<4x8x8xi1>
    %24 = vector.broadcast %cst_13 : f32 to vector<4x8x8xf32>
    %25 = arith.select %23, %24, %14 : vector<4x8x8xi1>, vector<4x8x8xf32>
    %c0_14 = arith.constant 0 : index
    %c0_15 = arith.constant 0 : index
    %c0_16 = arith.constant 0 : index
    %26 = vector.load %arg12[%c0_14, %c0_15, %c0_16] : memref<4x8x1xf32, #tpu.memory_space<vmem>>, vector<4x8x1xf32>
    %cst_17 = arith.constant dense<0xFF800000> : vector<4x8xf32>
    %27 = vector.multi_reduction <maximumf>, %25, %cst_17 [2] : vector<4x8x8xf32> to vector<4x8xf32>
    %28 = vector.shape_cast %27 : vector<4x8xf32> to vector<4x8x1xf32>
    %29 = arith.maximumf %26, %28 : vector<4x8x1xf32>
    %30 = arith.subf %26, %29 : vector<4x8x1xf32>
    %31 = math.exp %30 : vector<4x8x1xf32>
    %32 = vector.broadcast %29 : vector<4x8x1xf32> to vector<4x8x8xf32>
    %33 = arith.subf %25, %32 : vector<4x8x8xf32>
    %34 = math.exp %33 : vector<4x8x8xf32>
    %c0_18 = arith.constant 0 : index
    %c0_19 = arith.constant 0 : index
    %c0_20 = arith.constant 0 : index
    %35 = vector.load %arg13[%c0_18, %c0_19, %c0_20] : memref<4x8x1xf32, #tpu.memory_space<vmem>>, vector<4x8x1xf32>
    %36 = arith.mulf %31, %35 : vector<4x8x1xf32>
    %cst_21 = arith.constant dense<0.000000e+00> : vector<4x8xf32>
    %37 = vector.multi_reduction <add>, %34, %cst_21 [2] : vector<4x8x8xf32> to vector<4x8xf32>
    %38 = vector.shape_cast %37 : vector<4x8xf32> to vector<4x8x1xf32>
    %39 = arith.addf %36, %38 : vector<4x8x1xf32>
    %c0_22 = arith.constant 0 : index
    %c0_23 = arith.constant 0 : index
    %c0_24 = arith.constant 0 : index
    %40 = vector.load %arg13[%c0_22, %c0_23, %c0_24] : memref<4x8x1xf32, #tpu.memory_space<vmem>>, vector<4x8x1xf32>
    tpu.vector_store %arg13[%c0_22, %c0_23, %c0_24], %39 {strides = array<i32>} : memref<4x8x1xf32, #tpu.memory_space<vmem>>, vector<4x8x1xf32>,
    %c0_25 = arith.constant 0 : index
    %c0_26 = arith.constant 0 : index
    %c0_27 = arith.constant 0 : index
    %41 = vector.load %arg14[%c0_25, %c0_26, %c0_27] : memref<4x8x8xf32, #tpu.memory_space<vmem>>, vector<4x8x8xf32>
    %42 = vector.broadcast %31 : vector<4x8x1xf32> to vector<4x8x8xf32>
    %43 = arith.mulf %42, %41 : vector<4x8x8xf32>
    "tpu.trace_start"() <{level = 10 : i32, message = "hqk,khd->hqd"}> : () -> ()
    %cst_28 = arith.constant dense<0.000000e+00> : vector<4x8x8xf32>
    %44 = tpu.matmul %34, %11, %cst_28 {dimension_numbers = #tpu.dot_dimension_numbers<[2], [0], [1], [2], [0, 0, 0, 1, 1, 2], [0], [1]>} : vector<4x8x8xf32>, vector<8x4x8xf32>, vector<4x8x8xf32> -> vector<4x8x8xf32>
    "tpu.trace_stop"() : () -> ()
    %45 = arith.addf %43, %44 : vector<4x8x8xf32>
    %c0_29 = arith.constant 0 : index
    %c0_30 = arith.constant 0 : index
    %c0_31 = arith.constant 0 : index
    %46 = vector.load %arg14[%c0_29, %c0_30, %c0_31] : memref<4x8x8xf32, #tpu.memory_space<vmem>>, vector<4x8x8xf32>
    tpu.vector_store %arg14[%c0_29, %c0_30, %c0_31], %45 {strides = array<i32>} : memref<4x8x8xf32, #tpu.memory_space<vmem>>, vector<4x8x8xf32>,
    %c0_32 = arith.constant 0 : index
    %c0_33 = arith.constant 0 : index
    %c0_34 = arith.constant 0 : index
    %47 = vector.load %arg12[%c0_32, %c0_33, %c0_34] : memref<4x8x1xf32, #tpu.memory_space<vmem>>, vector<4x8x1xf32>
    tpu.vector_store %arg12[%c0_32, %c0_33, %c0_34], %29 {strides = array<i32>} : memref<4x8x1xf32, #tpu.memory_space<vmem>>, vector<4x8x1xf32>,
    %c0_i32_35 = arith.constant 0 : i32
    %48 = arith.cmpi eq, %arg2, %c0_i32_35 : i32
    %49 = arith.extui %48 : i1 to i32
    %c0_i32_36 = arith.constant 0 : i32
    %50 = arith.cmpi ne, %49, %c0_i32_36 : i32
    scf.if %50 {
      %c0_37 = arith.constant 0 : index
      %c0_38 = arith.constant 0 : index
      %c0_39 = arith.constant 0 : index
      %51 = vector.load %arg14[%c0_37, %c0_38, %c0_39] : memref<4x8x8xf32, #tpu.memory_space<vmem>>, vector<4x8x8xf32>
      %c0_40 = arith.constant 0 : index
      %c0_41 = arith.constant 0 : index
      %c0_42 = arith.constant 0 : index
      %52 = vector.load %arg13[%c0_40, %c0_41, %c0_42] : memref<4x8x1xf32, #tpu.memory_space<vmem>>, vector<4x8x1xf32>
      %53 = vector.broadcast %52 : vector<4x8x1xf32> to vector<4x8x8xf32>
      %54 = arith.divf %51, %53 : vector<4x8x8xf32>
      %55 = tpu.transpose %54, [1, 0, 2] : vector<4x8x8xf32> -> vector<8x4x8xf32>
      %56 = vector.shape_cast %55 : vector<8x4x8xf32> to vector<8x32xf32>
      %c0_43 = arith.constant 0 : index
      %c0_44 = arith.constant 0 : index
      %57 = vector.load %arg7[%c0_43, %c0_44] : memref<32x32xf32, #tpu.memory_space<vmem>>, vector<32x32xf32>
      %cst_45 = arith.constant dense<0.000000e+00> : vector<8x32xf32>
      %58 = tpu.matmul %56, %57, %cst_45 {dimension_numbers = #tpu.dot_dimension_numbers<[1], [0], [0], [1], [0, 0, 1, 1], [], []>} : vector<8x32xf32>, vector<32x32xf32>, vector<8x32xf32> -> vector<8x32xf32>
      %c0_46 = arith.constant 0 : index
      %c0_47 = arith.constant 0 : index
      %59 = vector.load %arg8[%c0_46, %c0_47] : memref<1x32xf32, #tpu.memory_space<vmem>>, vector<1x32xf32>
      %60 = vector.broadcast %59 : vector<1x32xf32> to vector<8x32xf32>
      %61 = arith.addf %58, %60 : vector<8x32xf32>
      %c0_48 = arith.constant 0 : index
      %c0_49 = arith.constant 0 : index
      %c0_50 = arith.constant 0 : index
      %62 = vector.load %arg6[%c0_48, %c0_49, %c0_50] : memref<1x8x32xf32, #tpu.memory_space<vmem>>, vector<1x8x32xf32>
      %63 = vector.shape_cast %62 : vector<1x8x32xf32> to vector<8x32xf32>
      %64 = arith.addf %63, %61 : vector<8x32xf32>
      %cst_51 = arith.constant dense<0.000000e+00> : vector<8xf32>
      %65 = vector.multi_reduction <add>, %64, %cst_51 [1] : vector<8x32xf32> to vector<8xf32>
      %66 = vector.shape_cast %65 : vector<8xf32> to vector<8x1xf32>
      %cst_52 = arith.constant 3.200000e+01 : f32
      %67 = vector.broadcast %cst_52 : f32 to vector<8x1xf32>
      %68 = arith.divf %66, %67 : vector<8x1xf32>
      %69 = vector.broadcast %68 : vector<8x1xf32> to vector<8x32xf32>
      %70 = arith.subf %64, %69 : vector<8x32xf32>
      %71 = vector.broadcast %68 : vector<8x1xf32> to vector<8x32xf32>
      %72 = arith.subf %64, %71 : vector<8x32xf32>
      %73 = arith.mulf %70, %72 : vector<8x32xf32>
      %cst_53 = arith.constant dense<0.000000e+00> : vector<8xf32>
      %74 = vector.multi_reduction <add>, %73, %cst_53 [1] : vector<8x32xf32> to vector<8xf32>
      %75 = vector.shape_cast %74 : vector<8xf32> to vector<8x1xf32>
      %cst_54 = arith.constant 3.200000e+01 : f32
      %76 = vector.broadcast %cst_54 : f32 to vector<8x1xf32>
      %77 = arith.divf %75, %76 : vector<8x1xf32>
      %78 = vector.broadcast %68 : vector<8x1xf32> to vector<8x32xf32>
      %79 = arith.subf %64, %78 : vector<8x32xf32>
      %cst_55 = arith.constant 9.99999974E-6 : f32
      %80 = vector.broadcast %cst_55 : f32 to vector<8x1xf32>
      %81 = arith.addf %77, %80 : vector<8x1xf32>
      %82 = math.rsqrt %81 : vector<8x1xf32>
      %83 = vector.broadcast %82 : vector<8x1xf32> to vector<8x32xf32>
      %84 = arith.mulf %79, %83 : vector<8x32xf32>
      %c0_56 = arith.constant 0 : index
      %c0_57 = arith.constant 0 : index
      %85 = vector.load %arg9[%c0_56, %c0_57] : memref<1x32xf32, #tpu.memory_space<vmem>>, vector<1x32xf32>
      %86 = vector.broadcast %85 : vector<1x32xf32> to vector<8x32xf32>
      %87 = arith.mulf %84, %86 : vector<8x32xf32>
      %c0_58 = arith.constant 0 : index
      %c0_59 = arith.constant 0 : index
      %88 = vector.load %arg10[%c0_58, %c0_59] : memref<1x32xf32, #tpu.memory_space<vmem>>, vector<1x32xf32>
      %89 = vector.broadcast %88 : vector<1x32xf32> to vector<8x32xf32>
      %90 = arith.addf %87, %89 : vector<8x32xf32>
      %c0_60 = arith.constant 0 : index
      %c0_61 = arith.constant 0 : index
      %c0_62 = arith.constant 0 : index
      %91 = vector.load %arg11[%c0_60, %c0_61, %c0_62] : memref<1x8x32xf32, #tpu.memory_space<vmem>>, vector<1x8x32xf32>
      %92 = vector.shape_cast %91 : vector<1x8x32xf32> to vector<8x32xf32>
      %93 = vector.shape_cast %90 : vector<8x32xf32> to vector<1x8x32xf32>
      tpu.vector_store %arg11[%c0_60, %c0_61, %c0_62], %93 {strides = array<i32>} : memref<1x8x32xf32, #tpu.memory_space<vmem>>, vector<1x8x32xf32>,
    } else {
    }
    return
  }
  func.func @transform_0(%arg0: i32, %arg1: i32, %arg2: i32) -> (i32, i32, i32) {
    %c0_i32 = arith.constant 0 : i32
    %c0_i32_0 = arith.constant 0 : i32
    return %arg0, %arg1, %c0_i32 : i32, i32, i32
  }
  func.func @transform_1(%arg0: i32, %arg1: i32, %arg2: i32) -> (i32, i32, i32) {
    %c0_i32 = arith.constant 0 : i32
    %c0_i32_0 = arith.constant 0 : i32
    return %arg0, %arg2, %c0_i32 : i32, i32, i32
  }
  func.func @transform_2(%arg0: i32, %arg1: i32, %arg2: i32) -> (i32, i32, i32) {
    %c0_i32 = arith.constant 0 : i32
    %c0_i32_0 = arith.constant 0 : i32
    return %arg0, %c0_i32, %arg2 : i32, i32, i32
  }
  func.func @transform_3(%arg0: i32, %arg1: i32, %arg2: i32) -> (i32, i32, i32) {
    %c0_i32 = arith.constant 0 : i32
    %c0_i32_0 = arith.constant 0 : i32
    return %arg0, %arg1, %c0_i32 : i32, i32, i32
  }
  func.func @transform_4(%arg0: i32, %arg1: i32, %arg2: i32) -> (i32, i32) {
    %c0_i32 = arith.constant 0 : i32
    %c0_i32_0 = arith.constant 0 : i32
    %c0_i32_1 = arith.constant 0 : i32
    return %c0_i32, %c0_i32_0 : i32, i32
  }
  func.func @transform_5(%arg0: i32, %arg1: i32, %arg2: i32) -> (i32, i32) {
    %c0_i32 = arith.constant 0 : i32
    %c0_i32_0 = arith.constant 0 : i32
    %c0_i32_1 = arith.constant 0 : i32
    return %c0_i32, %c0_i32_0 : i32, i32
  }
  func.func @transform_6(%arg0: i32, %arg1: i32, %arg2: i32) -> (i32, i32) {
    %c0_i32 = arith.constant 0 : i32
    %c0_i32_0 = arith.constant 0 : i32
    %c0_i32_1 = arith.constant 0 : i32
    return %c0_i32, %c0_i32_0 : i32, i32
  }
  func.func @transform_7(%arg0: i32, %arg1: i32, %arg2: i32) -> (i32, i32) {
    %c0_i32 = arith.constant 0 : i32
    %c0_i32_0 = arith.constant 0 : i32
    %c0_i32_1 = arith.constant 0 : i32
    return %c0_i32, %c0_i32_0 : i32, i32
  }
  func.func @transform_8(%arg0: i32, %arg1: i32, %arg2: i32) -> (i32, i32, i32) {
    %c0_i32 = arith.constant 0 : i32
    %c0_i32_0 = arith.constant 0 : i32
    return %arg0, %arg1, %c0_i32 : i32, i32, i32
  }
}

module attributes {stable_mosaic.version = 11 : i64} {
  func.func @_linear_kernel(%arg0: i32, %arg1: i32, %arg2: i32, %arg3: memref<16x32xf32, #tpu.memory_space<vmem>>, %arg4: memref<32x50xf32, #tpu.memory_space<vmem>>, %arg5: memref<1x50xf32, #tpu.memory_space<vmem>>, %arg6: memref<16x50xf32, #tpu.memory_space<vmem>>) attributes {dimension_semantics = [#tpu.dimension_semantics<parallel>, #tpu.dimension_semantics<parallel>, #tpu.dimension_semantics<arbitrary>], iteration_bounds = array<i64: 1, 1, 1>, scalar_prefetch = 0 : i64, scratch_operands = 0 : i64, tpu.core_type = #tpu.core_type<tc>, window_params = [{transform_indices = @transform_0, window_bounds = array<i64: 16, 32>}, {transform_indices = @transform_1, window_bounds = array<i64: 32, 50>}, {transform_indices = @transform_2, window_bounds = array<i64: 1, 50>}, {transform_indices = @transform_3, window_bounds = array<i64: 16, 50>}]} {
    %c0_i32 = arith.constant 0 : i32
    %0 = arith.cmpi eq, %arg2, %c0_i32 : i32
    %1 = arith.extui %0 : i1 to i32
    %c0_i32_0 = arith.constant 0 : i32
    %2 = arith.cmpi ne, %1, %c0_i32_0 : i32
    scf.if %2 {
      %cst_10 = arith.constant 0.000000e+00 : f32
      %12 = vector.broadcast %cst_10 : f32 to vector<16x50xf32>
      %c0_11 = arith.constant 0 : index
      %c0_12 = arith.constant 0 : index
      %13 = vector.load %arg6[%c0_11, %c0_12] : memref<16x50xf32, #tpu.memory_space<vmem>>, vector<16x50xf32>
      tpu.vector_store %arg6[%c0_11, %c0_12], %12 {strides = array<i32>} : memref<16x50xf32, #tpu.memory_space<vmem>>, vector<16x50xf32>,
    } else {
    }
    %c0 = arith.constant 0 : index
    %c0_1 = arith.constant 0 : index
    %3 = vector.load %arg6[%c0, %c0_1] : memref<16x50xf32, #tpu.memory_space<vmem>>, vector<16x50xf32>
    %c0_2 = arith.constant 0 : index
    %c0_3 = arith.constant 0 : index
    %4 = vector.load %arg3[%c0_2, %c0_3] : memref<16x32xf32, #tpu.memory_space<vmem>>, vector<16x32xf32>
    %c0_4 = arith.constant 0 : index
    %c0_5 = arith.constant 0 : index
    %5 = vector.load %arg4[%c0_4, %c0_5] : memref<32x50xf32, #tpu.memory_space<vmem>>, vector<32x50xf32>
    %cst = arith.constant dense<0.000000e+00> : vector<16x50xf32>
    %6 = tpu.matmul %4, %5, %cst {dimension_numbers = #tpu.dot_dimension_numbers<[1], [0], [0], [1], [0, 0, 1, 1], [], []>} : vector<16x32xf32>, vector<32x50xf32>, vector<16x50xf32> -> vector<16x50xf32>
    %7 = arith.addf %3, %6 : vector<16x50xf32>
    %c0_6 = arith.constant 0 : index
    %c0_7 = arith.constant 0 : index
    %8 = vector.load %arg6[%c0_6, %c0_7] : memref<16x50xf32, #tpu.memory_space<vmem>>, vector<16x50xf32>
    tpu.vector_store %arg6[%c0_6, %c0_7], %7 {strides = array<i32>} : memref<16x50xf32, #tpu.memory_space<vmem>>, vector<16x50xf32>,
    %c0_i32_8 = arith.constant 0 : i32
    %9 = arith.cmpi eq, %arg2, %c0_i32_8 : i32
    %10 = arith.extui %9 : i1 to i32
    %c0_i32_9 = arith.constant 0 : i32
    %11 = arith.cmpi ne, %10, %c0_i32_9 : i32
    scf.if %11 {
      %c0_10 = arith.constant 0 : index
      %c0_11 = arith.constant 0 : index
      %12 = vector.load %arg6[%c0_10, %c0_11] : memref<16x50xf32, #tpu.memory_space<vmem>>, vector<16x50xf32>
      %c0_12 = arith.constant 0 : index
      %c0_13 = arith.constant 0 : index
      %13 = vector.load %arg5[%c0_12, %c0_13] : memref<1x50xf32, #tpu.memory_space<vmem>>, vector<1x50xf32>
      %14 = vector.broadcast %13 : vector<1x50xf32> to vector<16x50xf32>
      %15 = arith.addf %12, %14 : vector<16x50xf32>
      %c0_14 = arith.constant 0 : index
      %c0_15 = arith.constant 0 : index
      %16 = vector.load %arg6[%c0_14, %c0_15] : memref<16x50xf32, #tpu.memory_space<vmem>>, vector<16x50xf32>
      tpu.vector_store %arg6[%c0_14, %c0_15], %15 {strides = array<i32>} : memref<16x50xf32, #tpu.memory_space<vmem>>, vector<16x50xf32>,
    } else {
    }
    return
  }
  func.func @transform_0(%arg0: i32, %arg1: i32, %arg2: i32) -> (i32, i32) {
    %c0_i32 = arith.constant 0 : i32
    return %arg0, %arg2 : i32, i32
  }
  func.func @transform_1(%arg0: i32, %arg1: i32, %arg2: i32) -> (i32, i32) {
    %c0_i32 = arith.constant 0 : i32
    return %arg2, %arg1 : i32, i32
  }
  func.func @transform_2(%arg0: i32, %arg1: i32, %arg2: i32) -> (i32, i32) {
    %c0_i32 = arith.constant 0 : i32
    %c0_i32_0 = arith.constant 0 : i32
    return %c0_i32, %arg1 : i32, i32
  }
  func.func @transform_3(%arg0: i32, %arg1: i32, %arg2: i32) -> (i32, i32) {
    %c0_i32 = arith.constant 0 : i32
    return %arg0, %arg1 : i32, i32
  }
}

</mosaic_0001>

<bundles_post_ra>
// kernel: transformer_forward.23
= control target key start
LH: loop header
LB: loop body
LE: loop exit
PB: predicated region body
PF: predicated region fallthrough
CT: control target
= control target key end

     0   :  { %vm29_vm0 = vcmask 261120   ;;  %vm18_vm1 = vcmask 785408   ;;  %v165_v3 = vmov 0.0   ;;  %s245_s1 = inlined_call_operand.vmem [shape: f32[32,96], index: 1, kind: input, shape index: {}]   ;;  %s246_s0 = inlined_call_operand.vmem [shape: f32[16,32], index: 0, kind: input, shape index: {}]   ;;  %s247_s3 = inlined_call_operand.vmem [shape: f32[16,96], index: 3, kind: output, shape index: {}]   ;;  %s248_s2 = inlined_call_operand.vmem [shape: f32[1,96], index: 2, kind: input, shape index: {}]  }
   0x1   :  { %v25_v0 = vld [vmem:[%s245_s1] sm:$0xff]  ;;  %v26_v1 = vld [vmem:[%s245_s1 + $0x8] sm:$0xff]  ;;  %v27_v2 = vld [vmem:[%s245_s1 + $0x10] sm:$0xff]  ;;  %20 = vst.msk [vmem:[%s247_s3 + $0x8] sm:$0xff] %vm18_vm1, %v165_v3 }
   0x2   :  { %19 = vst.msk [vmem:[%s247_s3] sm:$0xff] %vm18_vm1, %v165_v3  ;;  %v156_v4 = vpack.c.bf16 %v26_v1, %v25_v0  ;;  %v28_v5 = vld [vmem:[%s245_s1 + $0x18] sm:$0xff]  ;;  %v23_v6 = vld [vmem:[%s246_s0] sm:$0xff]  ;;  %v24_v8 = vld [vmem:[%s246_s0 + $0x8] sm:$0xff] }
   0x3   :  { %v160_v7 = vpack.c.bf16 %v28_v5, %v27_v2  ;;  %153 = vmatprep.mubr.msk.f32.mxu0 %vm29_vm0, %v23_v6  ;;  %v138_v15 = vld [vmem:[%s248_s2] ss:$0 sm:$0xff] }
   0x4   :  { %157 = vmatprep.subr.bf16.mxu0 %v156_v4 }
   0x5   :  { %159 = vmatpush3.bf16.msra.mxu0 %v156_v4 }
   0x6   :  { %161 = vmatprep.subr.bf16.mxu0 %v160_v7 }
   0x8   :  { %v22_v9 = vld [vmem:[%s247_s3 + $0x8] sm:$0xff] }
   0x9   :  { %163 = vmatpush3.bf16.msra.mxu0 %v160_v7  ;;  %v21_v10 = vld [vmem:[%s247_s3] sm:$0xff] }
   0xc   :  { %154 = vmatmul.mubr.msk.f32.vlgmr.msra.gmra.mrb[0].mxu0 %vm29_vm0, %v24_v8 }
  0xdf   :  { %v155_v11 = vpop.f32.mrb[0].mxu0 }
  0xe0   :  { %v112_v12 = vadd.f32 %v155_v11, %v22_v9  ;;  %v102_v13 = vpop.f32.mrb[1].mxu0 }
  0xe1   :  { %v111_v14 = vadd.f32 %v102_v13, %v21_v10 }
  0xe2   :  { %115 = vst.msk [vmem:[%s247_s3 + $0x8] sm:$0xff] %vm18_vm1, %v112_v12 }
  0xe3   :  { %114 = vst.msk [vmem:[%s247_s3] sm:$0xff] %vm18_vm1, %v111_v14 }
  0xe9   :  { %v120_v16 = vld [vmem:[%s247_s3 + $0x8] sm:$0xff] }
  0xea   :  { %v129_v17 = vadd.f32 %v138_v15, %v120_v16  ;;  %v119_v18 = vld [vmem:[%s247_s3] sm:$0xff] }
  0xeb   :  { %v128_v19 = vadd.f32 %v138_v15, %v119_v18 }
  0xec   :  { %131 = vst.msk [vmem:[%s247_s3 + $0x8] sm:$0xff] %vm18_vm1, %v129_v17 }
  0xed   :  { %130 = vst.msk [vmem:[%s247_s3] sm:$0xff] %vm18_vm1, %v128_v19 }

// kernel: transformer_forward.25
= control target key start
LH: loop header
LB: loop body
LE: loop exit
PB: predicated region body
PF: predicated region fallthrough
CT: control target
= control target key end

     0   :  { %vm29_vm0 = vcmask 261120   ;;  %vm18_vm1 = vcmask 523264   ;;  %v167_v3 = vmov 0.0   ;;  %s247_s1 = inlined_call_operand.vmem [shape: f32[32,64], index: 1, kind: input, shape index: {}]   ;;  %s248_s0 = inlined_call_operand.vmem [shape: f32[16,32], index: 0, kind: input, shape index: {}]   ;;  %s249_s3 = inlined_call_operand.vmem [shape: f32[16,64], index: 3, kind: output, shape index: {}]   ;;  %s250_s2 = inlined_call_operand.vmem [shape: f32[1,64], index: 2, kind: input, shape index: {}]  }
   0x1   :  { %v25_v0 = vld [vmem:[%s247_s1] sm:$0xff]  ;;  %v26_v1 = vld [vmem:[%s247_s1 + $0x8] sm:$0xff]  ;;  %v27_v2 = vld [vmem:[%s247_s1 + $0x10] sm:$0xff]  ;;  %20 = vst.msk [vmem:[%s249_s3 + $0x8] sm:$0xff] %vm18_vm1, %v167_v3 }
   0x2   :  { %19 = vst.msk [vmem:[%s249_s3] sm:$0xff] %vm18_vm1, %v167_v3  ;;  %v158_v4 = vpack.c.bf16 %v26_v1, %v25_v0  ;;  %v28_v5 = vld [vmem:[%s247_s1 + $0x18] sm:$0xff]  ;;  %v23_v6 = vld [vmem:[%s248_s0] sm:$0xff]  ;;  %v24_v8 = vld [vmem:[%s248_s0 + $0x8] sm:$0xff] }
   0x3   :  { %v162_v7 = vpack.c.bf16 %v28_v5, %v27_v2  ;;  %155 = vmatprep.mubr.msk.f32.mxu0 %vm29_vm0, %v23_v6  ;;  %v140_v15 = vld [vmem:[%s250_s2] ss:$0 sm:$0xff] }
   0x4   :  { %159 = vmatprep.subr.bf16.mxu0 %v158_v4 }
   0x5   :  { %161 = vmatpush3.bf16.msra.mxu0 %v158_v4 }
   0x6   :  { %163 = vmatprep.subr.bf16.mxu0 %v162_v7 }
   0x8   :  { %v22_v9 = vld [vmem:[%s249_s3 + $0x8] sm:$0xff] }
   0x9   :  { %165 = vmatpush3.bf16.msra.mxu0 %v162_v7  ;;  %v21_v10 = vld [vmem:[%s249_s3] sm:$0xff] }
   0xc   :  { %156 = vmatmul.mubr.msk.f32.vlgmr.msra.gmra.mrb[0].mxu0 %vm29_vm0, %v24_v8 }
  0xdf   :  { %v157_v11 = vpop.f32.mrb[0].mxu0 }
  0xe0   :  { %v112_v12 = vadd.f32 %v157_v11, %v22_v9  ;;  %v102_v13 = vpop.f32.mrb[1].mxu0 }
  0xe1   :  { %v111_v14 = vadd.f32 %v102_v13, %v21_v10 }
  0xe2   :  { %115 = vst.msk [vmem:[%s249_s3 + $0x8] sm:$0xff] %vm18_vm1, %v112_v12 }
  0xe3   :  { %114 = vst.msk [vmem:[%s249_s3] sm:$0xff] %vm18_vm1, %v111_v14 }
  0xe9   :  { %v120_v16 = vld [vmem:[%s249_s3 + $0x8] sm:$0xff] }
  0xea   :  { %v129_v17 = vadd.f32 %v140_v15, %v120_v16  ;;  %v119_v18 = vld [vmem:[%s249_s3] sm:$0xff] }
  0xeb   :  { %v128_v19 = vadd.f32 %v140_v15, %v119_v18 }
  0xec   :  { %v131_v20 = vmax.f32 %v129_v17, 0.0 }
  0xed   :  { %v130_v21 = vmax.f32 %v128_v19, 0.0 }
  0xee   :  { %133 = vst.msk [vmem:[%s249_s3 + $0x8] sm:$0xff] %vm18_vm1, %v131_v20 }
  0xef   :  { %132 = vst.msk [vmem:[%s249_s3] sm:$0xff] %vm18_vm1, %v130_v21 }

// kernel: transformer_forward.26
= control target key start
LH: loop header
LB: loop body
LE: loop exit
PB: predicated region body
PF: predicated region fallthrough
CT: control target
= control target key end

     0   :  { %vm27_vm0 = vcmask 261120   ;;  %vm42_vm1 = vcmask 523264   ;;  %v253_v3 = vmov 0.0   ;;  %s376_s1 = inlined_call_operand.vmem [shape: f32[64,32], index: 1, kind: input, shape index: {}]   ;;  %s377_s0 = inlined_call_operand.vmem [shape: f32[16,64], index: 0, kind: input, shape index: {}]   ;;  %s378_s6 = inlined_call_operand.vmem [shape: f32[16,32], index: 6, kind: output, shape index: {}]   ;;  %s379_s2 = inlined_call_operand.vmem [shape: f32[1,32], index: 2, kind: input, shape index: {}]   ;;  %s380_s3 = inlined_call_operand.vmem [shape: f32[16,32], index: 3, kind: input, shape index: {}]   ;;  %s381_s4 = inlined_call_operand.vmem [shape: f32[1,32], index: 4, kind: input, shape index: {}]   ;;  %s382_s5 = inlined_call_operand.vmem [shape: f32[1,32], index: 5, kind: input, shape index: {}]  }
   0x1   :  { %v34_v0 = vld [vmem:[%s376_s1] sm:$0xff]  ;;  %v35_v1 = vld [vmem:[%s376_s1 + $0x8] sm:$0xff]  ;;  %v36_v2 = vld [vmem:[%s376_s1 + $0x10] sm:$0xff]  ;;  %29 = vst.msk [vmem:[%s378_s6 + $0x8] sm:$0xff] %vm27_vm0, %v253_v3 }
   0x2   :  { %28 = vst.msk [vmem:[%s378_s6] sm:$0xff] %vm27_vm0, %v253_v3  ;;  %v232_v4 = vpack.c.bf16 %v35_v1, %v34_v0  ;;  %v37_v5 = vld [vmem:[%s376_s1 + $0x18] sm:$0xff]  ;;  %v38_v7 = vld [vmem:[%s376_s1 + $0x20] sm:$0xff]  ;;  %v39_v8 = vld [vmem:[%s376_s1 + $0x28] sm:$0xff] }
   0x3   :  { %v236_v6 = vpack.c.bf16 %v37_v5, %v36_v2  ;;  %v32_v9 = vld [vmem:[%s377_s0] sm:$0xff]  ;;  %v240_v10 = vpack.c.bf16 %v39_v8, %v38_v7  ;;  %v40_v11 = vld [vmem:[%s376_s1 + $0x30] sm:$0xff]  ;;  %v41_v12 = vld [vmem:[%s376_s1 + $0x38] sm:$0xff] }
   0x4   :  { %233 = vmatprep.subr.bf16.mxu0 %v232_v4  ;;  %229 = vmatprep.mubr.msk.f32.mxu0 %vm42_vm1, %v32_v9  ;;  %v244_v13 = vpack.c.bf16 %v41_v12, %v40_v11  ;;  %v33_v14 = vld [vmem:[%s377_s0 + $0x8] sm:$0xff]  ;;  %v200_v21 = vld [vmem:[%s379_s2] ss:$0 sm:$0xff] }
   0x5   :  { %235 = vmatpush3.bf16.msra.mxu0 %v232_v4  ;;  %v143_v24 = vld [vmem:[%s380_s3] sm:$0xff]  ;;  %v144_v27 = vld [vmem:[%s380_s3 + $0x8] sm:$0xff] }
   0x6   :  { %237 = vmatprep.subr.bf16.mxu0 %v236_v6  ;;  %v201_v49 = vld [vmem:[%s381_s4] ss:$0 sm:$0xff] }
   0x7   :  { %v202_v51 = vld [vmem:[%s382_s5] ss:$0 sm:$0xff] }
   0x8   :  { %v31_v15 = vld [vmem:[%s378_s6 + $0x8] sm:$0xff] }
   0x9   :  { %239 = vmatpush3.bf16.msra.mxu0 %v236_v6  ;;  %v30_v16 = vld [vmem:[%s378_s6] sm:$0xff] }
   0xa   :  { %241 = vmatprep.subr.bf16.mxu0 %v240_v10 }
   0xd   :  { %243 = vmatpush3.bf16.msra.mxu0 %v240_v10 }
   0xe   :  { %245 = vmatprep.subr.bf16.mxu0 %v244_v13 }
  0x11   :  { %247 = vmatpush3.bf16.msra.mxu0 %v244_v13 }
  0x14   :  { %230 = vmatmul.mubr.msk.f32.vlgmr.msra.gmra.mrb[0].mxu0 %vm42_vm1, %v33_v14 }
  0xe7   :  { %v231_v17 = vpop.f32.mrb[0].mxu0 }
  0xe8   :  { %v125_v18 = vadd.f32 %v231_v17, %v31_v15  ;;  %v115_v19 = vpop.f32.mrb[1].mxu0 }
  0xe9   :  { %v124_v20 = vadd.f32 %v115_v19, %v30_v16 }
  0xea   :  { %128 = vst.msk [vmem:[%s378_s6 + $0x8] sm:$0xff] %vm27_vm0, %v125_v18 }
  0xeb   :  { %127 = vst.msk [vmem:[%s378_s6] sm:$0xff] %vm27_vm0, %v124_v20 }
  0xf1   :  { %v133_v22 = vld [vmem:[%s378_s6 + $0x8] sm:$0xff] }
  0xf2   :  { %v132_v23 = vld [vmem:[%s378_s6] sm:$0xff]  ;;  %v142_v26 = vadd.f32 %v200_v21, %v133_v22 }
  0xf3   :  { %v141_v25 = vadd.f32 %v200_v21, %v132_v23 }
  0xf4   :  { %v146_v30 = vadd.f32 %v144_v27, %v142_v26 }
  0xf5   :  { %v145_v28 = vadd.f32 %v143_v24, %v141_v25 }
  0xf6   :  { %v150_v31 = vsel %vm27_vm0, %v146_v30, 0.0 }
  0xf7   :  { %v147_v29 = vsel %vm27_vm0, %v145_v28, 0.0 }
  0xf8   :  { %148 = vadd.xlane.f32.xlu0 %v147_v29 }
  0xfc   :  { %151 = vadd.xlane.f32.xlu0 %v150_v31 }
 0x185   :  { %v149_v32 = vpop.xlane.xlu0 %148 }
 0x186   :  { %v154_v33 = vmul.f32 0.03125, %v149_v32 }
 0x188   :  { %v156_v34 = vsub.f32 %v145_v28, %v154_v33 }
 0x189   :  { %v152_v35 = vpop.xlane.xlu0 %151 }
 0x18a   :  { %v155_v36 = vmul.f32 0.03125, %v152_v35  ;;  %v158_v37 = vmul.f32 %v156_v34, %v156_v34 }
 0x18c   :  { %v157_v38 = vsub.f32 %v146_v30, %v155_v36  ;;  %v160_v39 = vsel %vm27_vm0, %v158_v37, 0.0 }
 0x18d   :  { %161 = vadd.xlane.f32.xlu1 %v160_v39 }
 0x18e   :  { %v159_v40 = vmul.f32 %v157_v38, %v157_v38 }
 0x190   :  { %v163_v41 = vsel %vm27_vm0, %v159_v40, 0.0 }
 0x191   :  { %164 = vadd.xlane.f32.xlu1 %v163_v41 }
 0x21a   :  { %v162_v42 = vpop.xlane.xlu1 %161 }
 0x21b   :  { %v166_v43 = vmul.f32 0.03125, %v162_v42 }
 0x21d   :  { %v168_v44 = vadd.f32 1e-05, %v166_v43 }
 0x21e   :  { %v165_v45 = vpop.xlane.xlu1 %164 }
 0x21f   :  { %249 = vrsqrt.f32 %v168_v44  ;;  %v167_v46 = vmul.f32 0.03125, %v165_v45 }
 0x221   :  { %v169_v47 = vadd.f32 1e-05, %v167_v46 }
 0x223   :  { %251 = vrsqrt.f32 %v169_v47 }
 0x229   :  { %v250_v48 = vpop.eup %249 }
 0x22a   :  { %v172_v50 = vmul.f32 %v250_v48, %v156_v34 }
 0x22c   :  { %v181_v52 = vmul.f32 %v201_v49, %v172_v50 }
 0x22d   :  { %v252_v53 = vpop.eup %251 }
 0x22e   :  { %v190_v54 = vadd.f32 %v202_v51, %v181_v52  ;;  %v173_v55 = vmul.f32 %v252_v53, %v157_v38 }
 0x230   :  { %192 = vst.msk [vmem:[%s378_s6] sm:$0xff] %vm27_vm0, %v190_v54  ;;  %v182_v56 = vmul.f32 %v201_v49, %v173_v55 }
 0x232   :  { %v191_v57 = vadd.f32 %v202_v51, %v182_v56 }
 0x234   :  { %193 = vst.msk [vmem:[%s378_s6 + $0x8] sm:$0xff] %vm27_vm0, %v191_v57 }

// kernel: transformer_forward.33
= control target key start
LH: loop header
LB: loop body
LE: loop exit
PB: predicated region body
PF: predicated region fallthrough
CT: control target
= control target key end

     0   :  { %vm18_vm0 = vcmask 261120   ;;  %v164_v3 = vmov 0.0   ;;  %s244_s1 = inlined_call_operand.vmem [shape: f32[32,32], index: 1, kind: input, shape index: {}]   ;;  %s245_s0 = inlined_call_operand.vmem [shape: f32[16,32], index: 0, kind: input, shape index: {}]   ;;  %s246_s3 = inlined_call_operand.vmem [shape: f32[16,32], index: 3, kind: output, shape index: {}]   ;;  %s247_s2 = inlined_call_operand.vmem [shape: f32[1,32], index: 2, kind: input, shape index: {}]  }
   0x1   :  { %v25_v0 = vld [vmem:[%s244_s1] sm:$0xff]  ;;  %v26_v1 = vld [vmem:[%s244_s1 + $0x8] sm:$0xff]  ;;  %v27_v2 = vld [vmem:[%s244_s1 + $0x10] sm:$0xff]  ;;  %20 = vst.msk [vmem:[%s246_s3 + $0x8] sm:$0xff] %vm18_vm0, %v164_v3 }
   0x2   :  { %19 = vst.msk [vmem:[%s246_s3] sm:$0xff] %vm18_vm0, %v164_v3  ;;  %v155_v4 = vpack.c.bf16 %v26_v1, %v25_v0  ;;  %v28_v5 = vld [vmem:[%s244_s1 + $0x18] sm:$0xff]  ;;  %v23_v6 = vld [vmem:[%s245_s0] sm:$0xff]  ;;  %v24_v8 = vld [vmem:[%s245_s0 + $0x8] sm:$0xff] }
   0x3   :  { %v159_v7 = vpack.c.bf16 %v28_v5, %v27_v2  ;;  %152 = vmatprep.mubr.msk.f32.mxu0 %vm18_vm0, %v23_v6  ;;  %v137_v15 = vld [vmem:[%s247_s2] ss:$0 sm:$0xff] }
   0x4   :  { %156 = vmatprep.subr.bf16.mxu0 %v155_v4 }
   0x5   :  { %158 = vmatpush3.bf16.msra.mxu0 %v155_v4 }
   0x6   :  { %160 = vmatprep.subr.bf16.mxu0 %v159_v7 }
   0x8   :  { %v22_v9 = vld [vmem:[%s246_s3 + $0x8] sm:$0xff] }
   0x9   :  { %162 = vmatpush3.bf16.msra.mxu0 %v159_v7  ;;  %v21_v10 = vld [vmem:[%s246_s3] sm:$0xff] }
   0xc   :  { %153 = vmatmul.mubr.msk.f32.vlgmr.msra.gmra.mrb[0].mxu0 %vm18_vm0, %v24_v8 }
  0xdf   :  { %v154_v11 = vpop.f32.mrb[0].mxu0 }
  0xe0   :  { %v112_v12 = vadd.f32 %v154_v11, %v22_v9  ;;  %v102_v13 = vpop.f32.mrb[1].mxu0 }
  0xe1   :  { %v111_v14 = vadd.f32 %v102_v13, %v21_v10 }
  0xe2   :  { %114 = vst.msk [vmem:[%s246_s3 + $0x8] sm:$0xff] %vm18_vm0, %v112_v12 }
  0xe3   :  { %113 = vst.msk [vmem:[%s246_s3] sm:$0xff] %vm18_vm0, %v111_v14 }
  0xe9   :  { %v119_v16 = vld [vmem:[%s246_s3 + $0x8] sm:$0xff] }
  0xea   :  { %v128_v17 = vadd.f32 %v137_v15, %v119_v16  ;;  %v118_v18 = vld [vmem:[%s246_s3] sm:$0xff] }
  0xeb   :  { %v127_v19 = vadd.f32 %v137_v15, %v118_v18 }
  0xec   :  { %130 = vst.msk [vmem:[%s246_s3 + $0x8] sm:$0xff] %vm18_vm0, %v128_v17 }
  0xed   :  { %129 = vst.msk [vmem:[%s246_s3] sm:$0xff] %vm18_vm0, %v127_v19 }

// kernel: transformer_forward.24
= control target key start
LH: loop header
LB: loop body
LE: loop exit
PB: predicated region body
PF: predicated region fallthrough
CT: control target
= control target key end

     0   :  { %s2958_s27 = smov 0   ;;  %s2960_s28 = smov 0   ;;  %s3297_s0 = inlined_call_operand.vmem [shape: f32[2,8,96], index: 0, kind: input, shape index: {}, may-alias: {0,1}]   ;;  %s3298_s1 = inlined_call_operand.vmem [shape: f32[2,8,96], index: 1, kind: input, shape index: {}, may-alias: {0,1}]   ;;  %s3299_s2 = inlined_call_operand.vmem [shape: f32[2,1,8], index: 2, kind: input, shape index: {}]   ;;  %s3300_s3 = inlined_call_operand.vmem [shape: f32[2,8,32], index: 3, kind: input, shape index: {}]   ;;  %s3301_s4 = inlined_call_operand.vmem [shape: f32[32,32], index: 4, kind: input, shape index: {}]   ;;  %s3302_s5 = inlined_call_operand.vmem [shape: f32[1,32], index: 5, kind: input, shape index: {}]   ;;  %s3303_s6 = inlined_call_operand.vmem [shape: f32[1,32], index: 6, kind: input, shape index: {}]   ;;  %s3304_s7 = inlined_call_operand.vmem [shape: f32[1,32], index: 7, kind: input, shape index: {}]   ;;  %s3305_s8 = inlined_call_operand.vmem [shape: f32[2,8,32], index: 8, kind: output, shape index: {}]  }
   0x1   :  { %s2962_s29 = smov 0  }
   0x2 LB: > { %s37_s30 = sadd.s32 1, %s2892_s28  ;;  %p2704_p0 = scmp.ge.s32.totalorder %s2896_s29, 1  ;;  %s2896_s29 = sphi %s2962_s29, %s18_s29   ;;  %s2892_s28 = sphi %s2960_s28, %s3307_s28   ;;  %s2888_s27 = sphi %s2958_s27, %s3306_s27  }
   0x3   : > { %p39_p1 = scmp.ge.s32.totalorder %s37_s30, 2  ;;  %p328_p2 = scmp.lt.s32.totalorder %s2896_s29, 3 }
   0x5   : > { %s3309_s30 = smov (%p39_p1, %s37_s30), 0  ;;  %p329_p3 = pnand %p2704_p0, %p328_p2 }
   0x6   : > { %p386_p4 = scmp.lt.s32.totalorder (!%p329_p3), %s2888_s27, 1  ;;  %s2898_s13 = smov (!%p329_p3), 120   ;;  %v2902_v3 = vmov (!%p329_p3), 0.0   ;;  %v2903_v7 = vmov (!%p329_p3), 1983009808   ;;  %v455_v9 = vlaneseq (!%p329_p3)  ;;  %vm433_vm0 = vcmask (!%p329_p3), 64512  }
   0x7   : > { %332 = sbr.rel (%p329_p3) target bundleno = 2057 (0x809), region = 52  ;;  %s2899_s14 = smov (!%p329_p3), 104   ;;  %2750 = vmatprep.subr.mxu1 (!%p329_p3), %v2902_v3  ;;  %2760 = vmatprep.subr.mxu0 (!%p329_p3), %v2902_v3  ;;  %v453_v8 = vunpack.c.l.s4 (!%p329_p3), %v2903_v7  ;;  %v2904_v11 = vmov (!%p329_p3), 1934713408   ;;  %vm2905_vm1 = vmmov (!%p329_p3), 0   ;;  %434 = vst.msk [vmem:[#allocation4] sm:$0xff] (!%p329_p3), %vm433_vm0, %v2902_v3 }
   0x8   : > { %s2900_s18 = smov (!%p329_p3), 112   ;;  %s2901_s19 = smov (!%p329_p3), 96   ;;  %v485_v12 = vunpack.c.l.s4 (!%p329_p3), %v2904_v11  ;;  %v3013_v14 = vshrl.u32 (!%p329_p3), %v455_v9, 7  ;;  %2752 = vmatprep.mubr.msk.f32.mxu1 (!%p329_p3), %vm2905_vm1, %v2902_v3  ;;  %435 = vst.msk [vmem:[#allocation4 + $0x8] sm:$0xff] (!%p329_p3), %vm433_vm0, %v2902_v3  ;;  %436 = vst.msk [vmem:[#allocation4 + $0x10] sm:$0xff] (!%p329_p3), %vm433_vm0, %v2902_v3  ;;  %2762 = vmatprep.mubr.msk.f32.mxu0 (!%p329_p3), %vm2905_vm1, %v2902_v3  ;;  %vm424_vm2 = vcmask (!%p329_p3), 7168  }
   0x9   : > { %v454_v13 = vunpack.c.0.s8 (!%p329_p3), %v453_v8  ;;  %437 = vst.msk [vmem:[#allocation4 + $0x18] sm:$0xff] (!%p329_p3), %vm433_vm0, %v2902_v3  ;;  %s2908_s23 = smov (!%p329_p3), 64   ;;  %s2911_s15 = smov (!%p329_p3), 8   ;;  %vm2459_vm5 = vcmask (!%p329_p3), 130048   ;;  %vm2461_vm6 = vcmask (!%p329_p3), 195584   ;;  %vm2474_vm7 = vcmask (!%p329_p3), 261120  }
   0xa   : > { %v486_v16 = vunpack.c.0.s8 (!%p329_p3), %v485_v12  ;;  %429 = vst.msk [vmem:[#allocation3] sm:$0xff] (!%p329_p3), %vm424_vm2, %v2902_v3  ;;  %430 = vst.msk [vmem:[#allocation3 + $0x8] sm:$0xff] (!%p329_p3), %vm424_vm2, %v2902_v3  ;;  %s2912_s16 = smov (!%p329_p3), 24  }
   0xb   : > { %v3016_v17 = vsub.s32 (!%p329_p3), %v454_v13, %v3013_v14  ;;  %431 = vst.msk [vmem:[#allocation3 + $0x10] sm:$0xff] (!%p329_p3), %vm424_vm2, %v2902_v3  ;;  %432 = vst.msk [vmem:[#allocation3 + $0x18] sm:$0xff] (!%p329_p3), %vm424_vm2, %v2902_v3 }
   0xc   : > { %v3019_v24 = vsub.s32 (!%p329_p3), %v486_v16, %v3013_v14 }
   0xe   : > { %s3311_s27 = smov (!%p386_p4, %s2888_s27), 1 }
   0xf   : > { %s2979_s9 = sshll.u32 %s3311_s27, 3  ;;  %s405_s22 = scalar_lea.vmem %s3299_s2, %s3311_s27 }
  0x10   : > { %s399_s12 = scalar_lea.vmem %s3298_s1, %s2979_s9  ;;  %s392_s17 = scalar_lea.vmem %s3297_s0, %s2979_s9 }
  0x11   : > { %v2985_v0 = vld [vmem:[%s399_s12] sm:$0xff]  ;;  %s419_s10 = scalar_lea.vmem %s3305_s8, %s2979_s9 }
  0x12   : > { %519 = vrot.lane.b32.xlu0 %v2985_v0, %s2898_s13  ;;  %523 = vrot.lane.b32.xlu1 %v2985_v0, %s2899_s14  ;;  %v2997_v1 = vld [vmem:[%s392_s17] sm:$0xff] }
  0x16   : > { %521 = vrot.lane.b32.xlu0 %v2985_v0, %s2900_s18  ;;  %525 = vrot.lane.b32.xlu1 %v2985_v0, %s2901_s19 }
  0x1a   : > { %441 = vrot.lane.b32.xlu1 %v2997_v1, %s2898_s13 }
  0x84   : > { %v3000_v2 = vpop.permute.xlu0 %519  ;;  %v3005_v4 = vpop.permute.xlu1 %523 }
  0x85   : > { %527 = vrot.lane.b32.xlu0 %v3000_v2, %s2901_s19 }
  0x88   : > { %v3007_v5 = vpop.permute.xlu0 %521  ;;  %v526_v6 = vpop.permute.xlu1 %525 }
  0x89   : > { %531 = vrot.lane.b32.xlu0 %v3005_v4, %s2901_s19  ;;  %529 = vrot.lane.b32.xlu1 %v3007_v5, %s2901_s19  ;;  %s412_s19 = scalar_lea.vmem %s3300_s3, %s2979_s9 }
  0x8c   : > { %v3011_v10 = vpop.permute.xlu1 %441 }
  0xf7   : > { %v528_v15 = vpop.permute.xlu0 %527 }
  0xfb   : > { %v532_v18 = vpop.permute.xlu0 %531  ;;  %v530_v19 = vpop.permute.xlu1 %529 }
  0xfc   : > { %v553_v20 = vcombine.low %v528_v15, %v532_v18  ;;  %v554_v21 = vcombine.high %v528_v15, %v532_v18  ;;  %v537_v22 = vcombine.low %v526_v6, %v530_v19  ;;  %v538_v23 = vcombine.high %v526_v6, %v530_v19 }
  0xfe   : > { %v561_v25 = vrot.slane %v553_v20, %v3016_v17  ;;  %v568_v26 = vrot.slane %v554_v21, %v3016_v17  ;;  %v545_v27 = vrot.slane %v537_v22, %v3016_v17  ;;  %v552_v28 = vrot.slane %v538_v23, %v3016_v17 }
 0x100   : > { %v570_v29 = vcombine.high %v545_v27, %v561_v25  ;;  %v569_v30 = vcombine.low %v545_v27, %v561_v25  ;;  %v585_v33 = vcombine.low %v552_v28, %v568_v26  ;;  %v586_v36 = vcombine.high %v552_v28, %v568_v26 }
 0x102   : > { %v584_v31 = vrot.slane %v570_v29, %v3019_v24  ;;  %v577_v32 = vrot.slane %v569_v30, %v3019_v24  ;;  %v593_v34 = vrot.slane %v585_v33, %v3019_v24  ;;  %v600_v37 = vrot.slane %v586_v36, %v3019_v24 }
 0x104   : > { %817 = vxpose.xlu0.b32.start.end [1/1] (short) (narrow) %v584_v31, 8  ;;  %753 = vxpose.xlu1.b32.start.end [1/1] (short) (narrow) %v577_v32, 8  ;;  %v601_v35 = vcombine.high %v577_v32, %v2902_v3  ;;  %v602_v38 = vcombine.high %v584_v31, %v2902_v3  ;;  %v603_v39 = vcombine.high %v593_v34, %v2902_v3 }
 0x105   : > { %v604_v40 = vcombine.high %v600_v37, %v2902_v3 }
 0x108   : > { %881 = vxpose.xlu1.b32.start.end [1/1] (short) (narrow) %v593_v34, 8  ;;  %785 = vxpose.xlu0.b32.start.end [1/1] (short) (narrow) %v601_v35, 8 }
 0x10c   : > { %945 = vxpose.xlu1.b32.start.end [1/1] (short) (narrow) %v600_v37, 8  ;;  %849 = vxpose.xlu0.b32.start.end [1/1] (short) (narrow) %v602_v38, 8 }
 0x110   : > { %913 = vxpose.xlu0.b32.start.end [1/1] (short) (narrow) %v603_v39, 8 }
 0x114   : > { %977 = vxpose.xlu0.b32.start.end [1/1] (short) (narrow) %v604_v40, 8 }
 0x12a   : > { %447 = vrot.lane.b32.xlu1 %v2997_v1, %s2899_s14  ;;  %s2910_s14 = smov 16  }
 0x13d   : > { %444 = vrot.lane.b32.xlu0 %v2997_v1, %s2900_s18 }
 0x184   : > { %v833_v41 = vpop.trf.xlu0  ;;  %v769_v42 = vpop.trf.xlu1 }
 0x185   : > { %v1009_v49 = vcombine.low %v769_v42, %v833_v41  ;;  %v1010_v61 = vcombine.high %v769_v42, %v833_v41 }
 0x187   : > { %v1017_v53 = vrot.slane %v1009_v49, %v3016_v17  ;;  %v1024_v13 = vrot.slane %v1010_v61, %v3016_v17 }
 0x188   : > { %v801_v43 = vpop.trf.xlu0  ;;  %v897_v44 = vpop.trf.xlu1 }
 0x18c   : > { %v865_v45 = vpop.trf.xlu0  ;;  %v961_v47 = vpop.trf.xlu1 }
 0x18d   : > { %v1025_v46 = vcombine.low %v801_v43, %v865_v45  ;;  %v1041_v51 = vcombine.low %v897_v44, %v961_v47  ;;  %v1026_v56 = vcombine.high %v801_v43, %v865_v45  ;;  %v1042_v58 = vcombine.high %v897_v44, %v961_v47 }
 0x18f   : > { %v1033_v50 = vrot.slane %v1025_v46, %v3016_v17  ;;  %v1049_v59 = vrot.slane %v1041_v51, %v3016_v17  ;;  %v1040_v7 = vrot.slane %v1026_v56, %v3016_v17  ;;  %v1056_v8 = vrot.slane %v1042_v58, %v3016_v17 }
 0x190   : > { %v929_v48 = vpop.trf.xlu0 }
 0x191   : > { %v1073_v57 = vcombine.low %v1017_v53, %v1033_v50  ;;  %v1074_v12 = vcombine.high %v1017_v53, %v1033_v50  ;;  %v1089_v21 = vcombine.low %v1024_v13, %v1040_v7  ;;  %v1090_v28 = vcombine.high %v1024_v13, %v1040_v7 }
 0x193   : > { %v1081_v9 = vrot.slane %v1073_v57, %v3019_v24  ;;  %v1088_v20 = vrot.slane %v1074_v12, %v3019_v24  ;;  %v1097_v27 = vrot.slane %v1089_v21, %v3019_v24  ;;  %v1104_v32 = vrot.slane %v1090_v28, %v3019_v24 }
 0x194   : > { %v993_v52 = vpop.trf.xlu0 }
 0x195   : > { %v1057_v54 = vcombine.low %v929_v48, %v993_v52  ;;  %v1058_v55 = vcombine.high %v929_v48, %v993_v52 }
 0x197   : > { %v1065_v60 = vrot.slane %v1057_v54, %v3016_v17  ;;  %v1072_v62 = vrot.slane %v1058_v55, %v3016_v17 }
 0x199   : > { %v1105_v63 = vcombine.low %v1049_v59, %v1065_v60  ;;  %v1106_v6 = vcombine.high %v1049_v59, %v1065_v60  ;;  %v1121_v19 = vcombine.low %v1056_v8, %v1072_v62  ;;  %v1122_v26 = vcombine.high %v1056_v8, %v1072_v62 }
 0x19b   : > { %v1113_v11 = vrot.slane %v1105_v63, %v3019_v24  ;;  %v1120_v18 = vrot.slane %v1106_v6, %v3019_v24  ;;  %v1129_v25 = vrot.slane %v1121_v19, %v3019_v24  ;;  %v1136_v31 = vrot.slane %v1122_v26, %v3019_v24 }
 0x19c   : > { %v448_v36 = vpop.permute.xlu1 %447 }
 0x19d   : > { %v1138_v15 = vcombine.high %v1081_v9, %v1113_v11  ;;  %v1137_v16 = vcombine.low %v1081_v9, %v1113_v11  ;;  %v1139_v22 = vcombine.low %v1088_v20, %v1120_v18  ;;  %v1140_v23 = vcombine.high %v1088_v20, %v1120_v18 }
 0x19e   : > { %v1141_v29 = vcombine.low %v1097_v27, %v1129_v25  ;;  %v1142_v30 = vcombine.high %v1097_v27, %v1129_v25  ;;  %v1143_v33 = vcombine.low %v1104_v32, %v1136_v31  ;;  %v1144_v34 = vcombine.high %v1104_v32, %v1136_v31 }
 0x19f   : > { %1177 = vxpose.xlu0.b32.start.end [1/1] (short) (narrow) %v1138_v15, 8  ;;  %1145 = vxpose.xlu1.b32.start.end [1/1] (short) (narrow) %v1137_v16, 8  ;;  %v466_v39 = vcombine.low %v3011_v10, %v448_v36  ;;  %v467_v40 = vcombine.high %v3011_v10, %v448_v36 }
 0x1a1   : > { %v474_v43 = vrot.slane %v466_v39, %v3016_v17  ;;  %v481_v44 = vrot.slane %v467_v40, %v3016_v17 }
 0x1a3   : > { %1209 = vxpose.xlu0.b32.start.end [1/1] (short) (narrow) %v1139_v22, 8  ;;  %1241 = vxpose.xlu1.b32.start.end [1/1] (short) (narrow) %v1140_v23, 8 }
 0x1a7   : > { %1273 = vxpose.xlu0.b32.start.end [1/1] (short) (narrow) %v1141_v29, 8  ;;  %1305 = vxpose.xlu1.b32.start.end [1/1] (short) (narrow) %v1142_v30, 8 }
 0x1ab   : > { %1337 = vxpose.xlu0.b32.start.end [1/1] (short) (narrow) %v1143_v33, 8  ;;  %1369 = vxpose.xlu1.b32.start.end [1/1] (short) (narrow) %v1144_v34, 8 }
 0x1af   : > { %v445_v35 = vpop.permute.xlu0 %444 }
 0x1b0   : > { %v450_v37 = vcombine.low %v2997_v1, %v445_v35  ;;  %v451_v38 = vcombine.high %v2997_v1, %v445_v35 }
 0x1b2   : > { %v458_v41 = vrot.slane %v450_v37, %v3016_v17  ;;  %v465_v42 = vrot.slane %v451_v38, %v3016_v17 }
 0x1b4   : > { %v482_v45 = vcombine.low %v458_v41, %v474_v43  ;;  %v483_v46 = vcombine.high %v458_v41, %v474_v43  ;;  %v498_v47 = vcombine.low %v465_v42, %v481_v44  ;;  %v499_v48 = vcombine.high %v465_v42, %v481_v44 }
 0x1b6   : > { %v490_v1 = vrot.slane %v482_v45, %v3019_v24  ;;  %v497_v51 = vrot.slane %v483_v46, %v3019_v24  ;;  %v506_v10 = vrot.slane %v498_v47, %v3019_v24  ;;  %v513_v52 = vrot.slane %v499_v48, %v3019_v24  ;;  %v1766_v47 = vld [vmem:[%s405_s22] sm:$0x1] }
 0x1b7   : > { %v2906_v45 = vmov 0   ;;  %v2907_v46 = vmov -inf   ;;  %vm1767_vm3 = vcmp.eq.f32.partialorder %v1766_v47, 0.0  ;;  %v1771_v48 = vsub.s32 0, %v3013_v14 }
 0x1b8   : > { %v685_v55 = vcombine.low %v490_v1, %v497_v51  ;;  %v2709_v56 = vcombine.high %v490_v1, %v497_v51  ;;  %v701_v57 = vcombine.low %v506_v10, %v513_v52  ;;  %v2710_v58 = vcombine.high %v506_v10, %v513_v52  ;;  %425 = vst.msk [vmem:[#allocation2] sm:$0xff] %vm424_vm2, %v2907_v46 }
 0x1b9   : > { %426 = vst.msk [vmem:[#allocation2 + $0x8] sm:$0xff] %vm424_vm2, %v2907_v46  ;;  %427 = vst.msk [vmem:[#allocation2 + $0x10] sm:$0xff] %vm424_vm2, %v2907_v46 }
 0x1ba   : > { %v692_v63 = vrot.slane %v685_v55, %v3016_v17  ;;  %v700_v6 = vrot.slane %v2709_v56, %v3016_v17  ;;  %v708_v7 = vrot.slane %v701_v57, %v3016_v17  ;;  %v716_v8 = vrot.slane %v2710_v58, %v3016_v17  ;;  %428 = vst.msk [vmem:[#allocation2 + $0x18] sm:$0xff] %vm424_vm2, %v2907_v46 }
 0x1bc   : > { %v717_v18 = vcombine.low %v692_v63, %v700_v6  ;;  %v733_v19 = vcombine.low %v708_v7, %v716_v8  ;;  %v718_v20 = vcombine.high %v692_v63, %v700_v6  ;;  %v734_v21 = vcombine.high %v708_v7, %v716_v8 }
 0x1be   : > { %v725_v29 = vrot.slane %v717_v18, %v3019_v24  ;;  %v741_v30 = vrot.slane %v733_v19, %v3019_v24  ;;  %v732_v31 = vrot.slane %v718_v20, %v3019_v24  ;;  %v748_v32 = vrot.slane %v734_v21, %v3019_v24 }
 0x1c0   : > { %v749_v39 = vcombine.low %v725_v29, %v741_v30  ;;  %v751_v41 = vcombine.low %v732_v31, %v748_v32  ;;  %v750_v42 = vcombine.high %v725_v29, %v741_v30  ;;  %v752_v44 = vcombine.high %v732_v31, %v748_v32  ;;  %v3155_v20 = vld [vmem:[#allocation2 + $0x10] sm:$0xff] }
 0x1c1   : > { %v3157_v21 = vld [vmem:[#allocation2 + $0x18] sm:$0xff] }
 0x1c9   : > { %2846 = vset.pattern.permute.xlu1 %v2906_v45 }
 0x1d4   : > { %2847 = vset.pattern.permute.xlu0 %v2906_v45 }
 0x21f   : > { %v1161_v49 = vpop.trf.xlu1  ;;  %v1193_v50 = vpop.trf.xlu0 }
 0x223   : > { %v1257_v53 = vpop.trf.xlu1  ;;  %v1225_v54 = vpop.trf.xlu0 }
 0x224   : > { %v1409_v59 = vcombine.low %v1193_v50, %v1257_v53  ;;  %v1401_v60 = vcombine.low %v1161_v49, %v1225_v54  ;;  %v1768_v49 = vsel %vm1767_vm3, 1, %v2906_v45 }
 0x225   : > { %v1772_v50 = vrot.slane %v1768_v49, %v1771_v48 }
 0x226   : > { %v1416_v9 = vrot.slane %v1409_v59, %v3016_v17  ;;  %v1408_v11 = vrot.slane %v1401_v60, %v3016_v17 }
 0x227   : > { %v1321_v61 = vpop.trf.xlu1  ;;  %v1289_v62 = vpop.trf.xlu0  ;;  %vm1773_vm4 = vcmp.eq.s32.totalorder %v1772_v50, 1 }
 0x228   : > { %v1433_v22 = vcombine.low %v1408_v11, %v1416_v9  ;;  %v1434_v23 = vcombine.high %v1408_v11, %v1416_v9  ;;  %v3140_v11 = vld [vmem:[#allocation2] sm:$0xff] }
 0x22a   : > { %v1441_v33 = vrot.slane %v1433_v22, %v3019_v24  ;;  %v1448_v35 = vrot.slane %v1434_v23, %v3019_v24 }
 0x22b   : > { %v1385_v12 = vpop.trf.xlu1  ;;  %v1353_v13 = vpop.trf.xlu0 }
 0x22c   : > { %v1425_v15 = vcombine.low %v1321_v61, %v1385_v12  ;;  %v1417_v16 = vcombine.low %v1289_v62, %v1353_v13 }
 0x22e   : > { %v1432_v25 = vrot.slane %v1425_v15, %v3016_v17  ;;  %v1424_v26 = vrot.slane %v1417_v16, %v3016_v17  ;;  %v3145_v15 = vld [vmem:[#allocation2 + $0x8] sm:$0xff] }
 0x230   : > { %v1449_v27 = vcombine.low %v1424_v26, %v1432_v25  ;;  %v1450_v28 = vcombine.high %v1424_v26, %v1432_v25 }
 0x232   : > { %v1457_v34 = vrot.slane %v1449_v27, %v3019_v24  ;;  %v1464_v36 = vrot.slane %v1450_v28, %v3019_v24 }
 0x234   : > { %v1465_v37 = vcombine.low %v1441_v33, %v1457_v34  ;;  %v1467_v38 = vcombine.low %v1448_v35, %v1464_v36  ;;  %v1466_v40 = vcombine.high %v1441_v33, %v1457_v34  ;;  %v1468_v43 = vcombine.high %v1448_v35, %v1464_v36 }
 0x236   : > { %2751 = vmatpush3.msra.mxu1 %v1465_v37  ;;  %2761 = vmatpush3.msra.mxu0 %v1467_v38 }
 0x237   : > { %2753 = vmatmul.mubr.msk.f32.vlgmr.msra.gmra.mrb[0].mxu1 %vm433_vm0, %v749_v39  ;;  %2755 = vmatprep.subr.mxu1 %v2902_v3 }
 0x238   : > { %2763 = vmatmul.mubr.msk.f32.vlgmr.msra.gmra.mrb[0].mxu0 %vm433_vm0, %v751_v41  ;;  %2756 = vmatpush3.msra.mxu1 %v1466_v40 }
 0x239   : > { %2757 = vmatprep.mubr.msk.f32.mxu1 %vm2905_vm1, %v2902_v3  ;;  %2765 = vmatprep.subr.mxu1 %v2902_v3 }
 0x23a   : > { %2770 = vmatprep.subr.mxu0 %v2902_v3  ;;  %2772 = vmatprep.mubr.msk.f32.mxu0 %vm2905_vm1, %v2902_v3 }
 0x23b   : > { %2758 = vmatmul.mubr.msk.f32.vlgmr.msra.gmra.mrb[2].mxu1 %vm433_vm0, %v750_v42 }
 0x23c   : > { %2766 = vmatpush3.msra.mxu1 %v1468_v43  ;;  %2767 = vmatprep.mubr.msk.f32.mxu1 %vm2905_vm1, %v2902_v3 }
 0x23d   : > { %2775 = vmatprep.subr.mxu1 %v2902_v3 }
 0x23f   : > { %2768 = vmatmul.mubr.msk.f32.vlgmr.msra.gmra.mrb[4].mxu1 %vm433_vm0, %v752_v44 }
 0x240   : > { %2777 = vmatprep.mubr.msk.f32.mxu1 %vm2905_vm1, %v2902_v3 }
 0x30a   : > { %v1539_v1 = vpop.f32.mrb[0].mxu1 }
 0x30b   : > { %v1762_v51 = vmul.f32 0.35355338, %v1539_v1  ;;  %v1685_v10 = vpop.f32.mrb[0].mxu0  ;;  %v2754_v52 = vpop.f32.mrb[1].mxu1 }
 0x30c   : > { %v1764_v53 = vmul.f32 0.35355338, %v1685_v10  ;;  %v2764_v54 = vpop.f32.mrb[1].mxu0 }
 0x30d   : > { %v1774_v55 = vsel %vm1773_vm4, -1e+10, %v1762_v51 }
 0x30e   : > { %v1612_v56 = vpop.f32.mrb[2].mxu1  ;;  %v1782_v57 = vsel %vm433_vm0, %v1774_v55, -inf  ;;  %v3129_v58 = vsel %vm1773_vm4, -1e+10, %v1764_v53 }
 0x30f   : > { %v1763_v59 = vmul.f32 0.35355338, %v1612_v56  ;;  %1783 = vmax.xlane.f32.xlu0 %v1782_v57  ;;  %v2759_v14 = vpop.f32.mrb[3].mxu1  ;;  %v1788_v8 = vsel %vm433_vm0, %v3129_v58, -inf }
 0x311   : > { %v1775_v60 = vsel %vm1773_vm4, -1e+10, %v1763_v59 }
 0x312   : > { %v1758_v61 = vpop.f32.mrb[4].mxu1  ;;  %v1785_v62 = vsel %vm433_vm0, %v1775_v60, -inf }
 0x313   : > { %v1765_v63 = vmul.f32 0.35355338, %v1758_v61  ;;  %1786 = vmax.xlane.f32.xlu1 %v1785_v62  ;;  %v2769_v6 = vpop.f32.mrb[5].mxu1 }
 0x315   : > { %v3134_v7 = vsel %vm1773_vm4, -1e+10, %v1765_v63 }
 0x316   : > { %v1791_v9 = vsel %vm433_vm0, %v3134_v7, -inf }
 0x317   : > { %1789 = vmax.xlane.f32.xlu1 %v1788_v8  ;;  %1792 = vmax.xlane.f32.xlu0 %v1791_v9 }
 0x39c   : > { %v1784_v12 = vpop.xlane.xlu0 %1783 }
 0x39d   : > { %v3143_v13 = vmax.f32 %v3140_v11, %v1784_v12 }
 0x39f   : > { %v1798_v16 = vsub.f32 %v3140_v11, %v3143_v13  ;;  %2267 = vst.msk [vmem:[#allocation2] sm:$0xff] %vm424_vm2, %v3143_v13  ;;  %1812 = vperm.xlu1 %2846, %v3143_v13  }
 0x3a0   : > { %v1787_v18 = vpop.xlane.xlu1 %1786 }
 0x3a1   : > { %v3153_v19 = vmax.f32 %v3145_v15, %v1787_v18 }
 0x3a3   : > { %v1799_v22 = vsub.f32 %v3145_v15, %v3153_v19  ;;  %2268 = vst.msk [vmem:[#allocation2 + $0x8] sm:$0xff] %vm424_vm2, %v3153_v19  ;;  %605 = vrot.lane.b32.xlu1 %v2985_v0, %s2908_s23  ;;  %1817 = vperm.xlu0 %2847, %v3153_v19  }
 0x3a4   : > { %v1790_v23 = vpop.xlane.xlu1 %1789  ;;  %v1793_v25 = vpop.xlane.xlu0 %1792 }
 0x3a5   : > { %v3166_v26 = vmax.f32 %v3155_v20, %v1790_v23  ;;  %v3169_v27 = vmax.f32 %v3157_v21, %v1793_v25  ;;  %v1804_v13 = vmul.f32 1.442695, %v1799_v22 }
 0x3a7   : > { %v1800_v28 = vsub.f32 %v3155_v20, %v3166_v26  ;;  %2269 = vst.msk [vmem:[#allocation2 + $0x10] sm:$0xff] %vm424_vm2, %v3166_v26  ;;  %v1801_v29 = vsub.f32 %v3157_v21, %v3169_v27  ;;  %2270 = vst.msk [vmem:[#allocation2 + $0x18] sm:$0xff] %vm424_vm2, %v3169_v27  ;;  %607 = vrot.lane.b32.xlu1 %v3000_v2, %s2908_s23  ;;  %v1842_v20 = vld [vmem:[#allocation3] sm:$0xff] }
 0x3a9   : > { %v1808_v11 = vmul.f32 1.442695, %v1801_v29 }
 0x3ab   : > { %609 = vrot.lane.b32.xlu1 %v3007_v5, %s2908_s23 }
 0x3af   : > { %611 = vrot.lane.b32.xlu1 %v3005_v4, %s2908_s23 }
 0x3b3   : > { %1822 = vperm.xlu1 %2846, %v3166_v26  }
 0x3b7   : > { %1827 = vperm.xlu1 %2846, %v3169_v27  }
 0x41e   : > { %v1813_v0 = vpop.permute.xlu1 %1812 }
 0x41f   : > { %v1830_v30 = vsub.f32 %v1774_v55, %v1813_v0 }
 0x421   : > { %v1834_v31 = vmul.f32 1.442695, %v1830_v30 }
 0x422   : > { %v606_v32 = vpop.permute.xlu1 %605  ;;  %v1818_v33 = vpop.permute.xlu0 %1817 }
 0x423   : > { %2848 = vpow2.f32 %v1834_v31  ;;  %v1831_v34 = vsub.f32 %v1775_v60, %v1818_v33 }
 0x425   : > { %v1836_v35 = vmul.f32 1.442695, %v1831_v34 }
 0x426   : > { %v608_v36 = vpop.permute.xlu1 %607 }
 0x427   : > { %2850 = vpow2.f32 %v1836_v35 }
 0x42a   : > { %v610_v37 = vpop.permute.xlu1 %609 }
 0x42b   : > { %v617_v38 = vcombine.low %v606_v32, %v610_v37  ;;  %v618_v5 = vcombine.high %v606_v32, %v610_v37 }
 0x42d   : > { %v2849_v2 = vpop.eup %2848  ;;  %v625_v43 = vrot.slane %v617_v38, %v3016_v17  ;;  %v632_v44 = vrot.slane %v618_v5, %v3016_v17 }
 0x42e   : > { %v612_v39 = vpop.permute.xlu1 %611  ;;  %v1850_v4 = vsel %vm433_vm0, %v2849_v2, 0.0 }
 0x42f   : > { %v633_v40 = vcombine.low %v608_v36, %v612_v39  ;;  %v634_v41 = vcombine.high %v608_v36, %v612_v39  ;;  %1851 = vadd.xlane.f32.xlu1 %v1850_v4  ;;  %v1806_v39 = vmul.f32 1.442695, %v1800_v28 }
 0x431   : > { %v2851_v42 = vpop.eup %2850  ;;  %v641_v45 = vrot.slane %v633_v40, %v3016_v17  ;;  %v648_v46 = vrot.slane %v634_v41, %v3016_v17  ;;  %v1843_v41 = vld [vmem:[#allocation3 + $0x8] sm:$0xff] }
 0x432   : > { %v1823_v47 = vpop.permute.xlu1 %1822  ;;  %v1853_v48 = vsel %vm433_vm0, %v2851_v42, 0.0 }
 0x433   : > { %v649_v49 = vcombine.low %v625_v43, %v641_v45  ;;  %v650_v50 = vcombine.high %v625_v43, %v641_v45  ;;  %v665_v1 = vcombine.low %v632_v44, %v648_v46  ;;  %v666_v51 = vcombine.high %v632_v44, %v648_v46  ;;  %1854 = vadd.xlane.f32.xlu0 %v1853_v48  ;;  %v1845_v45 = vld [vmem:[#allocation3 + $0x18] sm:$0xff] }
 0x434   : > { %v1832_v10 = vsub.f32 %v3129_v58, %v1823_v47 }
 0x435   : > { %v657_v52 = vrot.slane %v649_v49, %v3019_v24  ;;  %v664_v53 = vrot.slane %v650_v50, %v3019_v24  ;;  %v673_v54 = vrot.slane %v665_v1, %v3019_v24  ;;  %v680_v55 = vrot.slane %v666_v51, %v3019_v24  ;;  %v2463_v51 = vld [vmem:[%s3301_s4] sm:$0xff] }
 0x436   : > { %v1838_v56 = vmul.f32 1.442695, %v1832_v10  ;;  %v1828_v57 = vpop.permute.xlu1 %1827  ;;  %v2464_v10 = vld [vmem:[%s3301_s4 + $0x8] sm:$0xff] }
 0x437   : > { %v1899_v59 = vcombine.low %v657_v52, %v664_v53  ;;  %v2715_v14 = vcombine.high %v657_v52, %v664_v53  ;;  %v1915_v60 = vcombine.low %v673_v54, %v680_v55  ;;  %v2716_v61 = vcombine.high %v673_v54, %v680_v55 }
 0x438   : > { %2852 = vpow2.f32 %v1838_v56  ;;  %v1833_v62 = vsub.f32 %v3134_v7, %v1828_v57  ;;  %v2909_v52 = vmov 0.0|0.0   ;;  %v2802_v53 = vpack.c.bf16 %v2464_v10, %v2463_v51  ;;  %v1871_v56 = vld [vmem:[#allocation4] sm:$0xff]  ;;  %v1872_v57 = vld [vmem:[#allocation4 + $0x8] sm:$0xff] }
 0x439   : > { %v1906_v63 = vrot.slane %v1899_v59, %v3016_v17  ;;  %v1914_v58 = vrot.slane %v2715_v14, %v3016_v17  ;;  %v1922_v6 = vrot.slane %v1915_v60, %v3016_v17  ;;  %v1930_v8 = vrot.slane %v2716_v61, %v3016_v17 }
 0x43a   : > { %v1840_v9 = vmul.f32 1.442695, %v1833_v62  ;;  %v1873_v62 = vld [vmem:[#allocation4 + $0x10] sm:$0xff] }
 0x43b   : > { %v1931_v12 = vcombine.low %v1906_v63, %v1914_v58  ;;  %v1947_v18 = vcombine.low %v1922_v6, %v1930_v8  ;;  %v1932_v23 = vcombine.high %v1906_v63, %v1914_v58  ;;  %v1948_v25 = vcombine.high %v1922_v6, %v1930_v8  ;;  %v1874_v6 = vld [vmem:[#allocation4 + $0x18] sm:$0xff] }
 0x43c   : > { %2854 = vpow2.f32 %v1840_v9 }
 0x43d   : > { %v1939_v0 = vrot.slane %v1931_v12, %v3019_v24  ;;  %v1955_v30 = vrot.slane %v1947_v18, %v3019_v24  ;;  %v1946_v7 = vrot.slane %v1932_v23, %v3019_v24  ;;  %v1962_v31 = vrot.slane %v1948_v25, %v3019_v24 }
 0x43f   : > { %v1963_v32 = vcombine.low %v1939_v0, %v1955_v30  ;;  %v1964_v33 = vcombine.high %v1939_v0, %v1955_v30  ;;  %v1965_v35 = vcombine.low %v1946_v7, %v1962_v31  ;;  %v1966_v37 = vcombine.high %v1946_v7, %v1962_v31 }
 0x441   : > { %2771 = vmatpush3.msra.mxu0 %v1963_v32  ;;  %2776 = vmatpush3.msra.mxu1 %v1964_v33 }
 0x442   : > { %v2853_v34 = vpop.eup %2852  ;;  %2773 = vmatmul.mubr.msk.f32.vlgmr.msra.gmra.mrb[2].mxu0 %vm433_vm0, %v2849_v2  ;;  %2778 = vmatmul.mubr.msk.f32.vlgmr.msra.gmra.mrb[6].mxu1 %vm433_vm0, %v2851_v42  ;;  %v1802_v2 = vmul.f32 1.442695, %v1798_v16  ;;  %v1844_v42 = vld [vmem:[#allocation3 + $0x10] sm:$0xff] }
 0x443   : > { %2780 = vmatprep.subr.mxu0 %v2902_v3  ;;  %2785 = vmatprep.subr.mxu1 %v2902_v3  ;;  %v1856_v36 = vsel %vm433_vm0, %v2853_v34, 0.0 }
 0x444   : > { %2781 = vmatpush3.msra.mxu0 %v1965_v35  ;;  %1857 = vadd.xlane.f32.xlu1 %v1856_v36  ;;  %2856 = vpow2.f32 %v1802_v2 }
 0x445   : > { %2786 = vmatpush3.msra.mxu1 %v1966_v37  ;;  %2782 = vmatprep.mubr.msk.f32.mxu0 %vm2905_vm1, %v2902_v3  ;;  %2858 = vpow2.f32 %v1806_v39 }
 0x446   : > { %v2855_v38 = vpop.eup %2854  ;;  %2787 = vmatprep.mubr.msk.f32.mxu1 %vm2905_vm1, %v2902_v3  ;;  %2783 = vmatmul.mubr.msk.f32.vlgmr.msra.gmra.mrb[4].mxu0 %vm433_vm0, %v2853_v34  ;;  %2860 = vpow2.f32 %v1808_v11 }
 0x447   : > { %2788 = vmatmul.mubr.msk.f32.vlgmr.msra.gmra.mrb[8].mxu1 %vm433_vm0, %v2855_v38  ;;  %v1859_v5 = vsel %vm433_vm0, %v2855_v38, 0.0  ;;  %2798 = vmatprep.mubr.msk.f32.mxu0 %vm2905_vm1, %v2902_v3  ;;  %2862 = vpow2.f32 %v1804_v13 }
 0x448   : > { %1860 = vadd.xlane.f32.xlu0 %v1859_v5  ;;  %2801 = vmatprep.subr.bf16.mxu0 %v2909_v52 }
 0x449   : > { %2803 = vmatpush3.bf16.msra.mxu0 %v2802_v53 }
 0x44a   : > { %2804 = vmatprep.subr.bf16.mxu0 %v2909_v52 }
 0x44e   : > { %v2857_v16 = vpop.eup %2856 }
 0x44f   : > { %v2859_v3 = vpop.eup %2858  ;;  %v1846_v26 = vmul.f32 %v2857_v16, %v1842_v20 }
 0x450   : > { %v2861_v4 = vpop.eup %2860  ;;  %v1848_v43 = vmul.f32 %v2859_v3, %v1844_v42 }
 0x451   : > { %v2863_v40 = vpop.eup %2862  ;;  %v1849_v47 = vmul.f32 %v2861_v4, %v1845_v45 }
 0x452   : > { %v1847_v27 = vmul.f32 %v2863_v40, %v1843_v41 }
 0x455   : > { %1877 = vperm.xlu1 %2846, %v2857_v16  }
 0x459   : > { %1887 = vperm.xlu1 %2846, %v2859_v3  }
 0x45d   : > { %1892 = vperm.xlu1 %2846, %v2861_v4  }
 0x45e   : > { %1882 = vperm.xlu0 %2847, %v2863_v40  }
 0x4bc   : > { %v1852_v28 = vpop.xlane.xlu1 %1851 }
 0x4bd   : > { %v1862_v21 = vadd.f32 %v1852_v28, %v1846_v26 }
 0x4bf   : > { %1867 = vst.msk [vmem:[#allocation3] sm:$0xff] %vm424_vm2, %v1862_v21 }
 0x4c0   : > { %v1855_v15 = vpop.xlane.xlu0 %1854 }
 0x4c1   : > { %v1863_v19 = vadd.f32 %v1855_v15, %v1847_v27 }
 0x4c3   : > { %1868 = vst.msk [vmem:[#allocation3 + $0x8] sm:$0xff] %vm424_vm2, %v1863_v19 }
 0x4c6   : > { %v2278_v22 = vld [vmem:[#allocation3] sm:$0xff] }
 0x4c7   : > { %2284 = vperm.xlu0 %2847, %v2278_v22  }
 0x4ca   : > { %v2279_v29 = vld [vmem:[#allocation3 + $0x8] sm:$0xff] }
 0x4cb   : > { %2289 = vperm.xlu1 %2846, %v2279_v29  }
 0x4d1   : > { %v1858_v44 = vpop.xlane.xlu1 %1857 }
 0x4d2   : > { %v1864_v46 = vadd.f32 %v1858_v44, %v1848_v43 }
 0x4d4   : > { %1869 = vst.msk [vmem:[#allocation3 + $0x10] sm:$0xff] %vm424_vm2, %v1864_v46  ;;  %v2465_v46 = vld [vmem:[%s3301_s4 + $0x10] sm:$0xff] }
 0x4d5   : > { %v1861_v48 = vpop.xlane.xlu0 %1860  ;;  %v1878_v54 = vpop.permute.xlu1 %1877 }
 0x4d6   : > { %v1865_v49 = vadd.f32 %v1861_v48, %v1849_v47  ;;  %v1895_v14 = vmul.f32 %v1878_v54, %v1871_v56  ;;  %v2466_v47 = vld [vmem:[%s3301_s4 + $0x18] sm:$0xff] }
 0x4d7   : > { %v2805_v51 = vpack.c.bf16 %v2466_v47, %v2465_v46 }
 0x4d8   : > { %1870 = vst.msk [vmem:[#allocation3 + $0x18] sm:$0xff] %vm424_vm2, %v1865_v49 }
 0x4d9   : > { %v1888_v55 = vpop.permute.xlu1 %1887  ;;  %2806 = vmatpush3.bf16.msra.mxu0 %v2805_v51 }
 0x4da   : > { %v1897_v23 = vmul.f32 %v1888_v55, %v1873_v62 }
 0x4db   : > { %v2280_v50 = vld [vmem:[#allocation3 + $0x10] sm:$0xff] }
 0x4dc   : > { %2294 = vperm.xlu0 %2847, %v2280_v50  }
 0x4dd   : > { %v1883_v59 = vpop.permute.xlu0 %1882  ;;  %v1893_v60 = vpop.permute.xlu1 %1892 }
 0x4de   : > { %v1896_v61 = vmul.f32 %v1883_v59, %v1872_v57  ;;  %v1898_v25 = vmul.f32 %v1893_v60, %v1874_v6 }
 0x4df   : > { %v2281_v1 = vld [vmem:[#allocation3 + $0x18] sm:$0xff] }
 0x4e0   : > { %2299 = vperm.xlu1 %2846, %v2281_v1  }
 0x515   : > { %v2036_v63 = vpop.f32.mrb[2].mxu0  ;;  %v2109_v58 = vpop.f32.mrb[6].mxu1 }
 0x516   : > { %v2259_v8 = vadd.f32 %v2036_v63, %v1895_v14  ;;  %v2260_v9 = vadd.f32 %v2109_v58, %v1896_v61  ;;  %v2774_v12 = vpop.f32.mrb[3].mxu0  ;;  %v2779_v18 = vpop.f32.mrb[7].mxu1 }
 0x518   : > { %2263 = vst.msk [vmem:[#allocation4] sm:$0xff] %vm433_vm0, %v2259_v8  ;;  %2264 = vst.msk [vmem:[#allocation4 + $0x8] sm:$0xff] %vm433_vm0, %v2260_v9 }
 0x519   : > { %v2182_v0 = vpop.f32.mrb[4].mxu0 }
 0x51a   : > { %v2261_v30 = vadd.f32 %v2182_v0, %v1897_v23  ;;  %v2255_v7 = vpop.f32.mrb[8].mxu1  ;;  %v2784_v31 = vpop.f32.mrb[5].mxu0 }
 0x51b   : > { %v2262_v32 = vadd.f32 %v2255_v7, %v1898_v25  ;;  %v2789_v33 = vpop.f32.mrb[9].mxu1  ;;  %v2723_v31 = vld [vmem:[%s3302_s5] ss:$0 sm:$0xff] }
 0x51c   : > { %2265 = vst.msk [vmem:[#allocation4 + $0x10] sm:$0xff] %vm433_vm0, %v2261_v30  ;;  %v2548_v33 = vld [vmem:[%s412_s19] sm:$0xff] }
 0x51d   : > { %2266 = vst.msk [vmem:[#allocation4 + $0x18] sm:$0xff] %vm433_vm0, %v2262_v32 }
 0x51f   : > { %v2274_v13 = vld [vmem:[#allocation4] sm:$0xff]  ;;  %v2275_v4 = vld [vmem:[#allocation4 + $0x8] sm:$0xff] }
 0x523   : > { %v2276_v5 = vld [vmem:[#allocation4 + $0x10] sm:$0xff] }
 0x524   : > { %v2277_v40 = vld [vmem:[#allocation4 + $0x18] sm:$0xff] }
 0x546   : > { %v2285_v34 = vpop.permute.xlu0 %2284 }
 0x547   : > { %2864 = vrcp.f32 %v2285_v34 }
 0x54a   : > { %v2290_v35 = vpop.permute.xlu1 %2289 }
 0x551   : > { %v2865_v38 = vpop.eup %2864 }
 0x552   : > { %v2303_v16 = vmul.f32 %v2865_v38, %v2274_v13 }
 0x55b   : > { %v2295_v36 = vpop.permute.xlu0 %2294 }
 0x55c   : > { %2866 = vrcp.f32 %v2295_v36 }
 0x55d   : > { %2868 = vrcp.f32 %v2290_v35 }
 0x55f   : > { %v2300_v37 = vpop.permute.xlu1 %2299 }
 0x560   : > { %2870 = vrcp.f32 %v2300_v37 }
 0x566   : > { %v2867_v2 = vpop.eup %2866 }
 0x567   : > { %v2307_v39 = vmul.f32 %v2867_v2, %v2276_v5  ;;  %v2869_v11 = vpop.eup %2868 }
 0x568   : > { %v2305_v20 = vmul.f32 %v2869_v11, %v2275_v4 }
 0x569   : > { %v2310_v26 = vcombine.low %v2303_v16, %v2307_v39  ;;  %v2311_v28 = vcombine.high %v2303_v16, %v2307_v39 }
 0x56a   : > { %v2871_v3 = vpop.eup %2870 }
 0x56b   : > { %v2309_v41 = vmul.f32 %v2871_v3, %v2277_v40  ;;  %v2318_v15 = vrot.slane %v2310_v26, %v3016_v17  ;;  %v2325_v19 = vrot.slane %v2311_v28, %v3016_v17  ;;  %v2725_v40 = vld [vmem:[%s3303_s6] ss:$0 sm:$0xff] }
 0x56c   : > { %v2726_v26 = vld [vmem:[%s3304_s7] ss:$0 sm:$0xff] }
 0x56d   : > { %v2326_v21 = vcombine.low %v2305_v20, %v2309_v41  ;;  %v2327_v27 = vcombine.high %v2305_v20, %v2309_v41 }
 0x56f   : > { %v2334_v22 = vrot.slane %v2326_v21, %v3016_v17  ;;  %v2341_v29 = vrot.slane %v2327_v27, %v3016_v17 }
 0x571   : > { %v2342_v42 = vcombine.low %v2318_v15, %v2334_v22  ;;  %v2343_v43 = vcombine.high %v2318_v15, %v2334_v22  ;;  %v2358_v44 = vcombine.low %v2325_v19, %v2341_v29  ;;  %v2359_v45 = vcombine.high %v2325_v19, %v2341_v29 }
 0x573   : > { %v2350_v48 = vrot.slane %v2342_v42, %v3019_v24  ;;  %v2357_v49 = vrot.slane %v2343_v43, %v3019_v24  ;;  %v2366_v50 = vrot.slane %v2358_v44, %v3019_v24  ;;  %v2373_v1 = vrot.slane %v2359_v45, %v3019_v24 }
 0x575   : > { %v2378_v10 = vcombine.low %v2350_v48, %v2357_v49  ;;  %v2721_v52 = vcombine.high %v2350_v48, %v2357_v49  ;;  %v2394_v53 = vcombine.low %v2366_v50, %v2373_v1  ;;  %v2722_v54 = vcombine.high %v2366_v50, %v2373_v1 }
 0x577   : > { %v2385_v55 = vrot.slane %v2378_v10, %v3016_v17  ;;  %v2393_v56 = vrot.slane %v2721_v52, %v3016_v17  ;;  %v2401_v57 = vrot.slane %v2394_v53, %v3016_v17  ;;  %v2409_v59 = vrot.slane %v2722_v54, %v3016_v17 }
 0x579   : > { %v2411_v14 = vcombine.high %v2385_v55, %v2393_v56  ;;  %v2427_v60 = vcombine.high %v2401_v57, %v2409_v59  ;;  %v2410_v61 = vcombine.low %v2385_v55, %v2393_v56  ;;  %v2426_v62 = vcombine.low %v2401_v57, %v2409_v59 }
 0x57b   : > { %v2425_v63 = vrot.slane %v2411_v14, %v3019_v24  ;;  %v2441_v58 = vrot.slane %v2427_v60, %v3019_v24  ;;  %v2418_v6 = vrot.slane %v2410_v61, %v3019_v24  ;;  %v2434_v8 = vrot.slane %v2426_v62, %v3019_v24 }
 0x57d   : > { %v2444_v9 = vcombine.low %v2425_v63, %v2441_v58  ;;  %v2443_v12 = vcombine.high %v2418_v6, %v2434_v8  ;;  %v2442_v18 = vcombine.low %v2418_v6, %v2434_v8  ;;  %v2445_v17 = vcombine.high %v2425_v63, %v2441_v58 }
 0x57f   : > { %2451 = vrot.lane.b32.xlu1 %v2444_v9, %s2910_s14  ;;  %2447 = vrot.lane.b32.xlu0 %v2443_v12, %s2911_s15 }
 0x583   : > { %2455 = vrot.lane.b32.xlu0 %v2445_v17, %s2912_s16 }
 0x5f1   : > { %v2448_v23 = vpop.permute.xlu0 %2447  ;;  %v2452_v25 = vpop.permute.xlu1 %2451 }
 0x5f2   : > { %v2458_v0 = vsel %vm433_vm0, %v2442_v18, %v2448_v23 }
 0x5f3   : > { %v2460_v24 = vsel %vm2459_vm5, %v2458_v0, %v2452_v25 }
 0x5f5   : > { %v2456_v30 = vpop.permute.xlu0 %2455 }
 0x5f6   : > { %v2462_v7 = vsel %vm2461_vm6, %v2460_v24, %v2456_v30 }
 0x5f7   : > { %2799 = vmatmul.mubr.msk.f32.vlgmr.msra.gmra.mrb[6].mxu0 %vm2474_vm7, %v2462_v7 }
 0x6ca   : > { %v2544_v32 = vpop.f32.mrb[6].mxu0 }
 0x6cb   : > { %v2545_v34 = vadd.f32 %v2723_v31, %v2544_v32  ;;  %v2800_v35 = vpop.f32.mrb[7].mxu0 }
 0x6cd   : > { %v2549_v36 = vadd.f32 %v2548_v33, %v2545_v34 }
 0x6cf   : > { %v2550_v37 = vsel %vm2474_vm7, %v2549_v36, 0.0 }
 0x6d0   : > { %2551 = vadd.xlane.f32.xlu1 %v2550_v37 }
 0x75d   : > { %v2552_v38 = vpop.xlane.xlu1 %2551 }
 0x75e   : > { %v2554_v2 = vmul.f32 0.03125, %v2552_v38 }
 0x760   : > { %v2555_v5 = vsub.f32 %v2549_v36, %v2554_v2 }
 0x762   : > { %v2556_v39 = vmul.f32 %v2555_v5, %v2555_v5 }
 0x764   : > { %v2557_v11 = vsel %vm2474_vm7, %v2556_v39, 0.0 }
 0x765   : > { %2558 = vadd.xlane.f32.xlu0 %v2557_v11 }
 0x7f2   : > { %v2559_v13 = vpop.xlane.xlu0 %2558 }
 0x7f3   : > { %v2560_v16 = vmul.f32 0.03125, %v2559_v13 }
 0x7f5   : > { %v2561_v3 = vadd.f32 1e-05, %v2560_v16 }
 0x7f7   : > { %2872 = vrsqrt.f32 %v2561_v3 }
 0x801   : > { %v2873_v4 = vpop.eup %2872 }
 0x802   : > { %v2563_v20 = vmul.f32 %v2873_v4, %v2555_v5 }
 0x804   : > { %v2571_v28 = vmul.f32 %v2725_v40, %v2563_v20 }
 0x806   : > { %v2579_v41 = vadd.f32 %v2726_v26, %v2571_v28 }
 0x808   : > { %2580 = vst.msk [vmem:[%s419_s10] sm:$0xff] %vm2474_vm7, %v2579_v41 }
 0x809 PF: > { %s18_s29 = sadd.s32 1, %s2896_s29   ;;  %s3306_s27 = smov %s2892_s28 }
 0x80a   : > { %p15_p5 = scmp.ge.s32.totalorder %s18_s29, 4   ;;  %s3307_s28 = smov %s3309_s30 }
 0x80c   :  { %17 = sbr.rel (!%p15_p5) target bundleno = 2 (0x2), region = 99 }

// kernel: transformer_forward.34
= control target key start
LH: loop header
LB: loop body
LE: loop exit
PB: predicated region body
PF: predicated region fallthrough
CT: control target
= control target key end

     0   :  { %vm29_vm0 = vcmask 261120   ;;  %vm18_vm1 = vcmask 523264   ;;  %v165_v3 = vmov 0.0   ;;  %s245_s1 = inlined_call_operand.vmem [shape: f32[32,64], index: 1, kind: input, shape index: {}]   ;;  %s246_s0 = inlined_call_operand.vmem [shape: f32[16,32], index: 0, kind: input, shape index: {}]   ;;  %s247_s3 = inlined_call_operand.vmem [shape: f32[16,64], index: 3, kind: output, shape index: {}]   ;;  %s248_s2 = inlined_call_operand.vmem [shape: f32[1,64], index: 2, kind: input, shape index: {}]  }
   0x1   :  { %v25_v0 = vld [vmem:[%s245_s1] sm:$0xff]  ;;  %v26_v1 = vld [vmem:[%s245_s1 + $0x8] sm:$0xff]  ;;  %v27_v2 = vld [vmem:[%s245_s1 + $0x10] sm:$0xff]  ;;  %20 = vst.msk [vmem:[%s247_s3 + $0x8] sm:$0xff] %vm18_vm1, %v165_v3 }
   0x2   :  { %19 = vst.msk [vmem:[%s247_s3] sm:$0xff] %vm18_vm1, %v165_v3  ;;  %v156_v4 = vpack.c.bf16 %v26_v1, %v25_v0  ;;  %v28_v5 = vld [vmem:[%s245_s1 + $0x18] sm:$0xff]  ;;  %v23_v6 = vld [vmem:[%s246_s0] sm:$0xff]  ;;  %v24_v8 = vld [vmem:[%s246_s0 + $0x8] sm:$0xff] }
   0x3   :  { %v160_v7 = vpack.c.bf16 %v28_v5, %v27_v2  ;;  %153 = vmatprep.mubr.msk.f32.mxu0 %vm29_vm0, %v23_v6  ;;  %v138_v15 = vld [vmem:[%s248_s2] ss:$0 sm:$0xff] }
   0x4   :  { %157 = vmatprep.subr.bf16.mxu0 %v156_v4 }
   0x5   :  { %159 = vmatpush3.bf16.msra.mxu0 %v156_v4 }
   0x6   :  { %161 = vmatprep.subr.bf16.mxu0 %v160_v7 }
   0x8   :  { %v22_v9 = vld [vmem:[%s247_s3 + $0x8] sm:$0xff] }
   0x9   :  { %163 = vmatpush3.bf16.msra.mxu0 %v160_v7  ;;  %v21_v10 = vld [vmem:[%s247_s3] sm:$0xff] }
   0xc   :  { %154 = vmatmul.mubr.msk.f32.vlgmr.msra.gmra.mrb[0].mxu0 %vm29_vm0, %v24_v8 }
  0xdf   :  { %v155_v11 = vpop.f32.mrb[0].mxu0 }
  0xe0   :  { %v112_v12 = vadd.f32 %v155_v11, %v22_v9  ;;  %v102_v13 = vpop.f32.mrb[1].mxu0 }
  0xe1   :  { %v111_v14 = vadd.f32 %v102_v13, %v21_v10 }
  0xe2   :  { %115 = vst.msk [vmem:[%s247_s3 + $0x8] sm:$0xff] %vm18_vm1, %v112_v12 }
  0xe3   :  { %114 = vst.msk [vmem:[%s247_s3] sm:$0xff] %vm18_vm1, %v111_v14 }
  0xe9   :  { %v120_v16 = vld [vmem:[%s247_s3 + $0x8] sm:$0xff] }
  0xea   :  { %v129_v17 = vadd.f32 %v138_v15, %v120_v16  ;;  %v119_v18 = vld [vmem:[%s247_s3] sm:$0xff] }
  0xeb   :  { %v128_v19 = vadd.f32 %v138_v15, %v119_v18 }
  0xec   :  { %131 = vst.msk [vmem:[%s247_s3 + $0x8] sm:$0xff] %vm18_vm1, %v129_v17 }
  0xed   :  { %130 = vst.msk [vmem:[%s247_s3] sm:$0xff] %vm18_vm1, %v128_v19 }

// kernel: transformer_forward.45
= control target key start
LH: loop header
LB: loop body
LE: loop exit
PB: predicated region body
PF: predicated region fallthrough
CT: control target
= control target key end

     0   :  { %vm30_vm0 = vcmask 261120   ;;  %vm19_vm1 = vcmask 408576   ;;  %v205_v6 = vmov 0.0   ;;  %s270_s0 = inlined_call_operand.vmem [shape: f32[16,32], index: 0, kind: input, shape index: {}]   ;;  %s271_s1 = inlined_call_operand.vmem [shape: f32[32,50], index: 1, kind: input, shape index: {}]   ;;  %s272_s2 = inlined_call_operand.vmem [shape: f32[1,50], index: 2, kind: input, shape index: {}]   ;;  %s273_s3 = inlined_call_operand.hbm [shape: f32[16,50], index: 3, kind: output, shape index: {}]  }
   0x1   :  { %v26_v0 = vld [vmem:[%s271_s1] sm:$0xff]  ;;  %v27_v1 = vld [vmem:[%s271_s1 + $0x8] sm:$0xff]  ;;  %v28_v2 = vld [vmem:[%s271_s1 + $0x10] sm:$0xff]  ;;  %21 = vst.msk [vmem:[#allocation2 + $0x8] sm:$0xff] %vm19_vm1, %v205_v6 }
   0x2   :  { %v169_v3 = vpack.c.bf16 %v27_v1, %v26_v0  ;;  %v29_v4 = vld [vmem:[%s271_s1 + $0x18] sm:$0xff]  ;;  %v24_v5 = vld [vmem:[%s270_s0] sm:$0xff]  ;;  %20 = vst.msk [vmem:[#allocation2] sm:$0xff] %vm19_vm1, %v205_v6 }
   0x3   :  { %v173_v7 = vpack.c.bf16 %v29_v4, %v28_v2  ;;  %166 = vmatprep.mubr.msk.f32.mxu0 %vm30_vm0, %v24_v5 }
   0x4   :  { %8 = vsyncpa [#allocation3], 0  ;;  %170 = vmatprep.subr.bf16.mxu0 %v169_v3  ;;  %v25_v8 = vld [vmem:[%s270_s0 + $0x8] sm:$0xff]  ;;  %v151_v15 = vld [vmem:[%s272_s2] ss:$0 sm:$0xff]  ;;  %s206_s25 = smov [#allocation2]  }
   0x5   :  { %172 = vmatpush3.bf16.msra.mxu0 %v169_v3  ;;  %s138_s26 = sshll.u32 %s206_s25, 4  ;;  %s139_s26 = int_to_ptr.vmem [resolvable:$true] %s138_s26 }
   0x6   :  { %174 = vmatprep.subr.bf16.mxu0 %v173_v7  ;;  %s181_s0 = scalar_lea.vmem %s139_s26, 256  ;;  %p186_p1 = scmp.lt.s32.totalorder %s139_s26, %s139_s26 }
   0x7   :  { %p182_p0 = scmp.ne.s32.totalorder %s139_s26, %s181_s0  ;;  %p187_p2 = scmp.lt.s32.totalorder %s181_s0, %s181_s0 }
   0x8   :  { %v23_v9 = vld [vmem:[#allocation2 + $0x8] sm:$0xff] }
   0x9   :  { %176 = vmatpush3.bf16.msra.mxu0 %v173_v7  ;;  %v22_v10 = vld [vmem:[#allocation2] sm:$0xff]  ;;  %p188_p3 = por %p187_p2, %p186_p1 }
   0xb   :  { %p189_p4 = pnand %p188_p3, %p182_p0 }
   0xc   :  { %167 = vmatmul.mubr.msk.f32.vlgmr.msra.gmra.mrb[0].mxu0 %vm30_vm0, %v25_v8 }
  0xdf   :  { %v168_v11 = vpop.f32.mrb[0].mxu0 }
  0xe0   :  { %v113_v12 = vadd.f32 %v168_v11, %v23_v9  ;;  %v103_v13 = vpop.f32.mrb[1].mxu0 }
  0xe1   :  { %v112_v14 = vadd.f32 %v103_v13, %v22_v10 }
  0xe2   :  { %116 = vst.msk [vmem:[#allocation2 + $0x8] sm:$0xff] %vm19_vm1, %v113_v12 }
  0xe3   :  { %115 = vst.msk [vmem:[#allocation2] sm:$0xff] %vm19_vm1, %v112_v14 }
  0xe9   :  { %v121_v16 = vld [vmem:[#allocation2 + $0x8] sm:$0xff] }
  0xea   :  { %v120_v17 = vld [vmem:[#allocation2] sm:$0xff]  ;;  %v130_v18 = vadd.f32 %v151_v15, %v121_v16 }
  0xeb   :  { %v129_v19 = vadd.f32 %v151_v15, %v120_v17 }
  0xec   :  { %132 = vst.msk [vmem:[#allocation2 + $0x8] sm:$0xff] %vm19_vm1, %v130_v18 }
  0xed   :  { %131 = vst.msk [vmem:[#allocation2] sm:$0xff] %vm19_vm1, %v129_v19 }
  0xee   :  { %192 = shalt.err (!%p189_p4)
}
  0xef   :  { %s193_s28 = scalar_lea.hbm %s273_s3, 256 }
  0xf0   :  { %p194_p5 = scmp.ne.s32.totalorder %s273_s3, %s193_s28  ;;  %p197_p6 = scmp.lt.u32.totalorder %s193_s28, %s273_s3 }
  0xf2   :  { %p199_p7 = pnand %p197_p6, %p194_p5 }
  0xf4   :  { %202 = shalt.err (!%p199_p7)
}
  0xf5   :  { %s207_s6 = smov 128   ;;  %s208_s7 = smov 8  }
  0xf6   :  { %144 = dma.vmem_to_hbm [thread:$0]  %s139_s26, 256, %s273_s3, [#allocation3], %s207_s6, %s207_s6, %s208_s7  }
  0xf7   :  { %203 = dma.done.wait [#allocation3], 256  }
  0xf8   :  { %204 = vsyncadd [#allocation3], 4294967040 }
  0xf9   :  { %148 = vsyncpa [#allocation3], 1 }

// kernel: transformer_forward.32
= control target key start
LH: loop header
LB: loop body
LE: loop exit
PB: predicated region body
PF: predicated region fallthrough
CT: control target
= control target key end

     0   :  { %s2972_s27 = smov 0   ;;  %s2974_s28 = smov 0   ;;  %s3322_s0 = inlined_call_operand.vmem [shape: f32[2,8,96], index: 0, kind: input, shape index: {}, may-alias: {0,1}]   ;;  %s3323_s1 = inlined_call_operand.vmem [shape: f32[2,8,96], index: 1, kind: input, shape index: {}, may-alias: {0,1}]   ;;  %s3324_s2 = inlined_call_operand.vmem [shape: f32[2,1,8], index: 2, kind: input, shape index: {}]   ;;  %s3325_s3 = inlined_call_operand.vmem [shape: f32[2,8,32], index: 3, kind: input, shape index: {}]   ;;  %s3326_s4 = inlined_call_operand.vmem [shape: f32[32,32], index: 4, kind: input, shape index: {}]   ;;  %s3327_s5 = inlined_call_operand.vmem [shape: f32[1,32], index: 5, kind: input, shape index: {}]   ;;  %s3328_s6 = inlined_call_operand.vmem [shape: f32[1,32], index: 6, kind: input, shape index: {}]   ;;  %s3329_s7 = inlined_call_operand.vmem [shape: f32[1,32], index: 7, kind: input, shape index: {}]   ;;  %s3330_s8 = inlined_call_operand.vmem [shape: f32[2,8,32], index: 8, kind: output, shape index: {}]  }
   0x1   :  { %s2976_s29 = smov 0  }
   0x2 LB: > { %s37_s30 = sadd.s32 1, %s2906_s28  ;;  %p2718_p0 = scmp.ge.s32.totalorder %s2910_s29, 1  ;;  %s2910_s29 = sphi %s2976_s29, %s18_s29   ;;  %s2906_s28 = sphi %s2974_s28, %s3334_s28   ;;  %s2902_s27 = sphi %s2972_s27, %s3333_s27  }
   0x3   : > { %p39_p1 = scmp.ge.s32.totalorder %s37_s30, 2  ;;  %p328_p2 = scmp.lt.s32.totalorder %s2910_s29, 3 }
   0x5   : > { %s3336_s30 = smov (%p39_p1, %s37_s30), 0  ;;  %p329_p3 = pnand %p2718_p0, %p328_p2 }
   0x6   : > { %p386_p4 = scmp.lt.s32.totalorder (!%p329_p3), %s2902_s27, 1  ;;  %s2912_s13 = smov (!%p329_p3), 120   ;;  %v2916_v3 = vmov (!%p329_p3), 0.0   ;;  %v2917_v7 = vmov (!%p329_p3), 1983009808   ;;  %v455_v9 = vlaneseq (!%p329_p3)  ;;  %vm433_vm0 = vcmask (!%p329_p3), 64512  }
   0x7   : > { %332 = sbr.rel (%p329_p3) target bundleno = 2057 (0x809), region = 52  ;;  %s2913_s14 = smov (!%p329_p3), 104   ;;  %2764 = vmatprep.subr.mxu1 (!%p329_p3), %v2916_v3  ;;  %2774 = vmatprep.subr.mxu0 (!%p329_p3), %v2916_v3  ;;  %v453_v8 = vunpack.c.l.s4 (!%p329_p3), %v2917_v7  ;;  %v2918_v11 = vmov (!%p329_p3), 1934713408   ;;  %vm2919_vm1 = vmmov (!%p329_p3), 0   ;;  %434 = vst.msk [vmem:[#allocation4] sm:$0xff] (!%p329_p3), %vm433_vm0, %v2916_v3 }
   0x8   : > { %s2914_s18 = smov (!%p329_p3), 112   ;;  %s2915_s19 = smov (!%p329_p3), 96   ;;  %v485_v12 = vunpack.c.l.s4 (!%p329_p3), %v2918_v11  ;;  %v3028_v14 = vshrl.u32 (!%p329_p3), %v455_v9, 7  ;;  %2766 = vmatprep.mubr.msk.f32.mxu1 (!%p329_p3), %vm2919_vm1, %v2916_v3  ;;  %435 = vst.msk [vmem:[#allocation4 + $0x8] sm:$0xff] (!%p329_p3), %vm433_vm0, %v2916_v3  ;;  %436 = vst.msk [vmem:[#allocation4 + $0x10] sm:$0xff] (!%p329_p3), %vm433_vm0, %v2916_v3  ;;  %2776 = vmatprep.mubr.msk.f32.mxu0 (!%p329_p3), %vm2919_vm1, %v2916_v3  ;;  %vm424_vm2 = vcmask (!%p329_p3), 7168  }
   0x9   : > { %v454_v13 = vunpack.c.0.s8 (!%p329_p3), %v453_v8  ;;  %437 = vst.msk [vmem:[#allocation4 + $0x18] sm:$0xff] (!%p329_p3), %vm433_vm0, %v2916_v3  ;;  %s2922_s23 = smov (!%p329_p3), 64   ;;  %s2925_s15 = smov (!%p329_p3), 8   ;;  %vm2473_vm7 = vcmask (!%p329_p3), 130048   ;;  %vm2475_vm8 = vcmask (!%p329_p3), 195584   ;;  %vm2488_vm9 = vcmask (!%p329_p3), 261120  }
   0xa   : > { %v486_v16 = vunpack.c.0.s8 (!%p329_p3), %v485_v12  ;;  %429 = vst.msk [vmem:[#allocation3] sm:$0xff] (!%p329_p3), %vm424_vm2, %v2916_v3  ;;  %430 = vst.msk [vmem:[#allocation3 + $0x8] sm:$0xff] (!%p329_p3), %vm424_vm2, %v2916_v3  ;;  %s2926_s16 = smov (!%p329_p3), 24  }
   0xb   : > { %v3031_v17 = vsub.s32 (!%p329_p3), %v454_v13, %v3028_v14  ;;  %431 = vst.msk [vmem:[#allocation3 + $0x10] sm:$0xff] (!%p329_p3), %vm424_vm2, %v2916_v3  ;;  %432 = vst.msk [vmem:[#allocation3 + $0x18] sm:$0xff] (!%p329_p3), %vm424_vm2, %v2916_v3 }
   0xc   : > { %v3034_v24 = vsub.s32 (!%p329_p3), %v486_v16, %v3028_v14 }
   0xe   : > { %s3338_s27 = smov (!%p386_p4, %s2902_s27), 1 }
   0xf   : > { %s2993_s9 = sshll.u32 %s3338_s27, 3  ;;  %s405_s22 = scalar_lea.vmem %s3324_s2, %s3338_s27 }
  0x10   : > { %s399_s12 = scalar_lea.vmem %s3323_s1, %s2993_s9  ;;  %s392_s17 = scalar_lea.vmem %s3322_s0, %s2993_s9 }
  0x11   : > { %v2999_v0 = vld [vmem:[%s399_s12] sm:$0xff]  ;;  %s419_s10 = scalar_lea.vmem %s3330_s8, %s2993_s9 }
  0x12   : > { %519 = vrot.lane.b32.xlu0 %v2999_v0, %s2912_s13  ;;  %523 = vrot.lane.b32.xlu1 %v2999_v0, %s2913_s14  ;;  %v3011_v1 = vld [vmem:[%s392_s17] sm:$0xff] }
  0x16   : > { %521 = vrot.lane.b32.xlu0 %v2999_v0, %s2914_s18  ;;  %525 = vrot.lane.b32.xlu1 %v2999_v0, %s2915_s19 }
  0x1a   : > { %441 = vrot.lane.b32.xlu1 %v3011_v1, %s2912_s13 }
  0x84   : > { %v3014_v2 = vpop.permute.xlu0 %519  ;;  %v3019_v4 = vpop.permute.xlu1 %523 }
  0x85   : > { %527 = vrot.lane.b32.xlu0 %v3014_v2, %s2915_s19 }
  0x88   : > { %v3021_v5 = vpop.permute.xlu0 %521  ;;  %v526_v6 = vpop.permute.xlu1 %525 }
  0x89   : > { %531 = vrot.lane.b32.xlu0 %v3019_v4, %s2915_s19  ;;  %529 = vrot.lane.b32.xlu1 %v3021_v5, %s2915_s19  ;;  %s412_s19 = scalar_lea.vmem %s3325_s3, %s2993_s9 }
  0x8c   : > { %v3025_v10 = vpop.permute.xlu1 %441 }
  0xf7   : > { %v528_v15 = vpop.permute.xlu0 %527 }
  0xfb   : > { %v532_v18 = vpop.permute.xlu0 %531  ;;  %v530_v19 = vpop.permute.xlu1 %529 }
  0xfc   : > { %v553_v20 = vcombine.low %v528_v15, %v532_v18  ;;  %v554_v21 = vcombine.high %v528_v15, %v532_v18  ;;  %v537_v22 = vcombine.low %v526_v6, %v530_v19  ;;  %v538_v23 = vcombine.high %v526_v6, %v530_v19 }
  0xfe   : > { %v561_v25 = vrot.slane %v553_v20, %v3031_v17  ;;  %v568_v26 = vrot.slane %v554_v21, %v3031_v17  ;;  %v545_v27 = vrot.slane %v537_v22, %v3031_v17  ;;  %v552_v28 = vrot.slane %v538_v23, %v3031_v17 }
 0x100   : > { %v570_v29 = vcombine.high %v545_v27, %v561_v25  ;;  %v569_v30 = vcombine.low %v545_v27, %v561_v25  ;;  %v585_v33 = vcombine.low %v552_v28, %v568_v26  ;;  %v586_v36 = vcombine.high %v552_v28, %v568_v26 }
 0x102   : > { %v584_v31 = vrot.slane %v570_v29, %v3034_v24  ;;  %v577_v32 = vrot.slane %v569_v30, %v3034_v24  ;;  %v593_v34 = vrot.slane %v585_v33, %v3034_v24  ;;  %v600_v37 = vrot.slane %v586_v36, %v3034_v24 }
 0x104   : > { %817 = vxpose.xlu0.b32.start.end [1/1] (short) (narrow) %v584_v31, 8  ;;  %753 = vxpose.xlu1.b32.start.end [1/1] (short) (narrow) %v577_v32, 8  ;;  %v601_v35 = vcombine.high %v577_v32, %v2916_v3  ;;  %v602_v38 = vcombine.high %v584_v31, %v2916_v3  ;;  %v603_v39 = vcombine.high %v593_v34, %v2916_v3 }
 0x105   : > { %v604_v40 = vcombine.high %v600_v37, %v2916_v3 }
 0x108   : > { %881 = vxpose.xlu1.b32.start.end [1/1] (short) (narrow) %v593_v34, 8  ;;  %785 = vxpose.xlu0.b32.start.end [1/1] (short) (narrow) %v601_v35, 8 }
 0x10c   : > { %945 = vxpose.xlu1.b32.start.end [1/1] (short) (narrow) %v600_v37, 8  ;;  %849 = vxpose.xlu0.b32.start.end [1/1] (short) (narrow) %v602_v38, 8 }
 0x110   : > { %913 = vxpose.xlu0.b32.start.end [1/1] (short) (narrow) %v603_v39, 8 }
 0x114   : > { %977 = vxpose.xlu0.b32.start.end [1/1] (short) (narrow) %v604_v40, 8 }
 0x12a   : > { %447 = vrot.lane.b32.xlu1 %v3011_v1, %s2913_s14  ;;  %s2924_s14 = smov 16  }
 0x13d   : > { %444 = vrot.lane.b32.xlu0 %v3011_v1, %s2914_s18 }
 0x184   : > { %v833_v41 = vpop.trf.xlu0  ;;  %v769_v42 = vpop.trf.xlu1 }
 0x185   : > { %v1009_v49 = vcombine.low %v769_v42, %v833_v41  ;;  %v1010_v61 = vcombine.high %v769_v42, %v833_v41 }
 0x187   : > { %v1017_v53 = vrot.slane %v1009_v49, %v3031_v17  ;;  %v1024_v15 = vrot.slane %v1010_v61, %v3031_v17 }
 0x188   : > { %v801_v43 = vpop.trf.xlu0  ;;  %v897_v44 = vpop.trf.xlu1 }
 0x18c   : > { %v865_v45 = vpop.trf.xlu0  ;;  %v961_v47 = vpop.trf.xlu1 }
 0x18d   : > { %v1025_v46 = vcombine.low %v801_v43, %v865_v45  ;;  %v1041_v51 = vcombine.low %v897_v44, %v961_v47  ;;  %v1026_v56 = vcombine.high %v801_v43, %v865_v45  ;;  %v1042_v58 = vcombine.high %v897_v44, %v961_v47 }
 0x18f   : > { %v1033_v50 = vrot.slane %v1025_v46, %v3031_v17  ;;  %v1049_v59 = vrot.slane %v1041_v51, %v3031_v17  ;;  %v1040_v7 = vrot.slane %v1026_v56, %v3031_v17  ;;  %v1056_v8 = vrot.slane %v1042_v58, %v3031_v17 }
 0x190   : > { %v929_v48 = vpop.trf.xlu0 }
 0x191   : > { %v1073_v57 = vcombine.low %v1017_v53, %v1033_v50  ;;  %v1074_v13 = vcombine.high %v1017_v53, %v1033_v50  ;;  %v1089_v22 = vcombine.low %v1024_v15, %v1040_v7  ;;  %v1090_v29 = vcombine.high %v1024_v15, %v1040_v7 }
 0x193   : > { %v1081_v11 = vrot.slane %v1073_v57, %v3034_v24  ;;  %v1088_v21 = vrot.slane %v1074_v13, %v3034_v24  ;;  %v1097_v28 = vrot.slane %v1089_v22, %v3034_v24  ;;  %v1104_v33 = vrot.slane %v1090_v29, %v3034_v24 }
 0x194   : > { %v993_v52 = vpop.trf.xlu0 }
 0x195   : > { %v1057_v54 = vcombine.low %v929_v48, %v993_v52  ;;  %v1058_v55 = vcombine.high %v929_v48, %v993_v52 }
 0x197   : > { %v1065_v60 = vrot.slane %v1057_v54, %v3031_v17  ;;  %v1072_v62 = vrot.slane %v1058_v55, %v3031_v17 }
 0x199   : > { %v1105_v63 = vcombine.low %v1049_v59, %v1065_v60  ;;  %v1106_v6 = vcombine.high %v1049_v59, %v1065_v60  ;;  %v1121_v20 = vcombine.low %v1056_v8, %v1072_v62  ;;  %v1122_v27 = vcombine.high %v1056_v8, %v1072_v62 }
 0x19b   : > { %v1113_v12 = vrot.slane %v1105_v63, %v3034_v24  ;;  %v1120_v19 = vrot.slane %v1106_v6, %v3034_v24  ;;  %v1129_v26 = vrot.slane %v1121_v20, %v3034_v24  ;;  %v1136_v32 = vrot.slane %v1122_v27, %v3034_v24 }
 0x19c   : > { %v448_v37 = vpop.permute.xlu1 %447 }
 0x19d   : > { %v1138_v16 = vcombine.high %v1081_v11, %v1113_v12  ;;  %v1137_v18 = vcombine.low %v1081_v11, %v1113_v12  ;;  %v1139_v23 = vcombine.low %v1088_v21, %v1120_v19  ;;  %v1140_v25 = vcombine.high %v1088_v21, %v1120_v19 }
 0x19e   : > { %v1141_v30 = vcombine.low %v1097_v28, %v1129_v26  ;;  %v1142_v31 = vcombine.high %v1097_v28, %v1129_v26  ;;  %v1143_v34 = vcombine.low %v1104_v33, %v1136_v32  ;;  %v1144_v35 = vcombine.high %v1104_v33, %v1136_v32 }
 0x19f   : > { %1177 = vxpose.xlu0.b32.start.end [1/1] (short) (narrow) %v1138_v16, 8  ;;  %1145 = vxpose.xlu1.b32.start.end [1/1] (short) (narrow) %v1137_v18, 8  ;;  %v466_v40 = vcombine.low %v3025_v10, %v448_v37  ;;  %v467_v41 = vcombine.high %v3025_v10, %v448_v37 }
 0x1a1   : > { %v474_v44 = vrot.slane %v466_v40, %v3031_v17  ;;  %v481_v45 = vrot.slane %v467_v41, %v3031_v17 }
 0x1a3   : > { %1209 = vxpose.xlu0.b32.start.end [1/1] (short) (narrow) %v1139_v23, 8  ;;  %1241 = vxpose.xlu1.b32.start.end [1/1] (short) (narrow) %v1140_v25, 8 }
 0x1a7   : > { %1273 = vxpose.xlu0.b32.start.end [1/1] (short) (narrow) %v1141_v30, 8  ;;  %1305 = vxpose.xlu1.b32.start.end [1/1] (short) (narrow) %v1142_v31, 8 }
 0x1ab   : > { %1337 = vxpose.xlu0.b32.start.end [1/1] (short) (narrow) %v1143_v34, 8  ;;  %1369 = vxpose.xlu1.b32.start.end [1/1] (short) (narrow) %v1144_v35, 8 }
 0x1af   : > { %v445_v36 = vpop.permute.xlu0 %444 }
 0x1b0   : > { %v450_v38 = vcombine.low %v3011_v1, %v445_v36  ;;  %v451_v39 = vcombine.high %v3011_v1, %v445_v36 }
 0x1b2   : > { %v458_v42 = vrot.slane %v450_v38, %v3031_v17  ;;  %v465_v43 = vrot.slane %v451_v39, %v3031_v17 }
 0x1b4   : > { %v482_v46 = vcombine.low %v458_v42, %v474_v44  ;;  %v483_v47 = vcombine.high %v458_v42, %v474_v44  ;;  %v498_v48 = vcombine.low %v465_v43, %v481_v45  ;;  %v499_v49 = vcombine.high %v465_v43, %v481_v45 }
 0x1b6   : > { %v490_v1 = vrot.slane %v482_v46, %v3034_v24  ;;  %v497_v52 = vrot.slane %v483_v47, %v3034_v24  ;;  %v506_v10 = vrot.slane %v498_v48, %v3034_v24  ;;  %v513_v53 = vrot.slane %v499_v49, %v3034_v24  ;;  %v1766_v49 = vld [vmem:[%s405_s22] sm:$0x1] }
 0x1b7   : > { %v2920_v47 = vmov 0   ;;  %v2921_v48 = vmov -inf   ;;  %vm1767_vm3 = vcmp.eq.f32.partialorder %v1766_v49, 0.0 }
 0x1b8   : > { %v685_v56 = vcombine.low %v490_v1, %v497_v52  ;;  %v2723_v57 = vcombine.high %v490_v1, %v497_v52  ;;  %v701_v58 = vcombine.low %v506_v10, %v513_v53  ;;  %v2724_v59 = vcombine.high %v506_v10, %v513_v53  ;;  %425 = vst.msk [vmem:[#allocation2] sm:$0xff] %vm424_vm2, %v2921_v48 }
 0x1b9   : > { %426 = vst.msk [vmem:[#allocation2 + $0x8] sm:$0xff] %vm424_vm2, %v2921_v48  ;;  %427 = vst.msk [vmem:[#allocation2 + $0x10] sm:$0xff] %vm424_vm2, %v2921_v48  ;;  %v1781_v52 = vand.u32 127, %v455_v9 }
 0x1ba   : > { %v692_v6 = vrot.slane %v685_v56, %v3031_v17  ;;  %v700_v7 = vrot.slane %v2723_v57, %v3031_v17  ;;  %v708_v8 = vrot.slane %v701_v58, %v3031_v17  ;;  %v716_v11 = vrot.slane %v2724_v59, %v3031_v17  ;;  %428 = vst.msk [vmem:[#allocation2 + $0x18] sm:$0xff] %vm424_vm2, %v2921_v48 }
 0x1bb   : > { %vm1784_vm5 = vcmp.gt.s32.totalorder %v1781_v52, %v3028_v14 }
 0x1bc   : > { %v717_v20 = vcombine.low %v692_v6, %v700_v7  ;;  %v733_v21 = vcombine.low %v708_v8, %v716_v11  ;;  %v718_v22 = vcombine.high %v692_v6, %v700_v7  ;;  %v734_v23 = vcombine.high %v708_v8, %v716_v11 }
 0x1be   : > { %v725_v31 = vrot.slane %v717_v20, %v3034_v24  ;;  %v741_v32 = vrot.slane %v733_v21, %v3034_v24  ;;  %v732_v33 = vrot.slane %v718_v22, %v3034_v24  ;;  %v748_v34 = vrot.slane %v734_v23, %v3034_v24 }
 0x1c0   : > { %v749_v41 = vcombine.low %v725_v31, %v741_v32  ;;  %v751_v43 = vcombine.low %v732_v33, %v748_v34  ;;  %v750_v44 = vcombine.high %v725_v31, %v741_v32  ;;  %v752_v46 = vcombine.high %v732_v33, %v748_v34  ;;  %v3170_v20 = vld [vmem:[#allocation2 + $0x8] sm:$0xff] }
 0x1c9   : > { %2860 = vset.pattern.permute.xlu1 %v2920_v47 }
 0x1d4   : > { %2861 = vset.pattern.permute.xlu0 %v2920_v47 }
 0x21f   : > { %v1161_v50 = vpop.trf.xlu1  ;;  %v1193_v51 = vpop.trf.xlu0 }
 0x223   : > { %v1257_v54 = vpop.trf.xlu1  ;;  %v1225_v55 = vpop.trf.xlu0 }
 0x224   : > { %v1409_v60 = vcombine.low %v1193_v51, %v1257_v54  ;;  %v1401_v61 = vcombine.low %v1161_v50, %v1225_v55  ;;  %v1771_v50 = vsub.s32 0, %v3028_v14  ;;  %v1768_v51 = vsel %vm1767_vm3, 1, %v2920_v47 }
 0x226   : > { %v1416_v12 = vrot.slane %v1409_v60, %v3031_v17  ;;  %v1408_v13 = vrot.slane %v1401_v61, %v3031_v17  ;;  %v1772_v1 = vrot.slane %v1768_v51, %v1771_v50 }
 0x227   : > { %v1321_v62 = vpop.trf.xlu1  ;;  %v1289_v63 = vpop.trf.xlu0 }
 0x228   : > { %v1433_v25 = vcombine.low %v1408_v13, %v1416_v12  ;;  %v1434_v26 = vcombine.high %v1408_v13, %v1416_v12  ;;  %vm1773_vm4 = vcmp.eq.s32.totalorder %v1772_v1, 1 }
 0x229   : > { %vm3143_vm6 = vmor %vm1773_vm4, %vm1784_vm5 }
 0x22a   : > { %v1441_v35 = vrot.slane %v1433_v25, %v3034_v24  ;;  %v1448_v37 = vrot.slane %v1434_v26, %v3034_v24  ;;  %v3180_v25 = vld [vmem:[#allocation2 + $0x10] sm:$0xff]  ;;  %v3182_v26 = vld [vmem:[#allocation2 + $0x18] sm:$0xff] }
 0x22b   : > { %v1385_v15 = vpop.trf.xlu1  ;;  %v1353_v16 = vpop.trf.xlu0 }
 0x22c   : > { %v1425_v18 = vcombine.low %v1321_v62, %v1385_v15  ;;  %v1417_v19 = vcombine.low %v1289_v63, %v1353_v16  ;;  %v3165_v16 = vld [vmem:[#allocation2] sm:$0xff] }
 0x22e   : > { %v1432_v27 = vrot.slane %v1425_v18, %v3031_v17  ;;  %v1424_v28 = vrot.slane %v1417_v19, %v3031_v17 }
 0x230   : > { %v1449_v29 = vcombine.low %v1424_v28, %v1432_v27  ;;  %v1450_v30 = vcombine.high %v1424_v28, %v1432_v27 }
 0x232   : > { %v1457_v36 = vrot.slane %v1449_v29, %v3034_v24  ;;  %v1464_v38 = vrot.slane %v1450_v30, %v3034_v24 }
 0x234   : > { %v1465_v39 = vcombine.low %v1441_v35, %v1457_v36  ;;  %v1467_v40 = vcombine.low %v1448_v37, %v1464_v38  ;;  %v1466_v42 = vcombine.high %v1441_v35, %v1457_v36  ;;  %v1468_v45 = vcombine.high %v1448_v37, %v1464_v38 }
 0x236   : > { %2765 = vmatpush3.msra.mxu1 %v1465_v39  ;;  %2775 = vmatpush3.msra.mxu0 %v1467_v40 }
 0x237   : > { %2767 = vmatmul.mubr.msk.f32.vlgmr.msra.gmra.mrb[0].mxu1 %vm433_vm0, %v749_v41  ;;  %2769 = vmatprep.subr.mxu1 %v2916_v3 }
 0x238   : > { %2777 = vmatmul.mubr.msk.f32.vlgmr.msra.gmra.mrb[0].mxu0 %vm433_vm0, %v751_v43  ;;  %2770 = vmatpush3.msra.mxu1 %v1466_v42 }
 0x239   : > { %2771 = vmatprep.mubr.msk.f32.mxu1 %vm2919_vm1, %v2916_v3  ;;  %2779 = vmatprep.subr.mxu1 %v2916_v3 }
 0x23a   : > { %2784 = vmatprep.subr.mxu0 %v2916_v3  ;;  %2786 = vmatprep.mubr.msk.f32.mxu0 %vm2919_vm1, %v2916_v3 }
 0x23b   : > { %2772 = vmatmul.mubr.msk.f32.vlgmr.msra.gmra.mrb[2].mxu1 %vm433_vm0, %v750_v44 }
 0x23c   : > { %2780 = vmatpush3.msra.mxu1 %v1468_v45  ;;  %2781 = vmatprep.mubr.msk.f32.mxu1 %vm2919_vm1, %v2916_v3 }
 0x23d   : > { %2789 = vmatprep.subr.mxu1 %v2916_v3 }
 0x23f   : > { %2782 = vmatmul.mubr.msk.f32.vlgmr.msra.gmra.mrb[4].mxu1 %vm433_vm0, %v752_v46 }
 0x240   : > { %2791 = vmatprep.mubr.msk.f32.mxu1 %vm2919_vm1, %v2916_v3 }
 0x30a   : > { %v1539_v10 = vpop.f32.mrb[0].mxu1 }
 0x30b   : > { %v1762_v54 = vmul.f32 0.35355338, %v1539_v10  ;;  %v1685_v55 = vpop.f32.mrb[0].mxu0  ;;  %v2768_v56 = vpop.f32.mrb[1].mxu1 }
 0x30c   : > { %v1764_v57 = vmul.f32 0.35355338, %v1685_v55  ;;  %v2778_v58 = vpop.f32.mrb[1].mxu0 }
 0x30d   : > { %v1788_v59 = vsel %vm3143_vm6, -1e+10, %v1762_v54 }
 0x30e   : > { %v1612_v60 = vpop.f32.mrb[2].mxu1  ;;  %v1796_v61 = vsel %vm433_vm0, %v1788_v59, -inf  ;;  %v3152_v9 = vsel %vm3143_vm6, -1e+10, %v1764_v57 }
 0x30f   : > { %v1763_v14 = vmul.f32 0.35355338, %v1612_v60  ;;  %1797 = vmax.xlane.f32.xlu0 %v1796_v61  ;;  %v2773_v62 = vpop.f32.mrb[3].mxu1  ;;  %v1802_v13 = vsel %vm433_vm0, %v3152_v9, -inf }
 0x311   : > { %v1789_v63 = vsel %vm3143_vm6, -1e+10, %v1763_v14 }
 0x312   : > { %v1758_v6 = vpop.f32.mrb[4].mxu1  ;;  %v1799_v7 = vsel %vm433_vm0, %v1789_v63, -inf }
 0x313   : > { %v1765_v8 = vmul.f32 0.35355338, %v1758_v6  ;;  %1800 = vmax.xlane.f32.xlu1 %v1799_v7  ;;  %v2783_v11 = vpop.f32.mrb[5].mxu1 }
 0x315   : > { %v3159_v12 = vsel %vm3143_vm6, -1e+10, %v1765_v8 }
 0x316   : > { %v1805_v15 = vsel %vm433_vm0, %v3159_v12, -inf }
 0x317   : > { %1803 = vmax.xlane.f32.xlu1 %v1802_v13  ;;  %1806 = vmax.xlane.f32.xlu0 %v1805_v15 }
 0x39c   : > { %v1798_v18 = vpop.xlane.xlu0 %1797 }
 0x39d   : > { %v3168_v19 = vmax.f32 %v3165_v16, %v1798_v18 }
 0x39f   : > { %v1812_v21 = vsub.f32 %v3165_v16, %v3168_v19  ;;  %2281 = vst.msk [vmem:[#allocation2] sm:$0xff] %vm424_vm2, %v3168_v19  ;;  %1826 = vperm.xlu1 %2860, %v3168_v19  }
 0x3a0   : > { %v1801_v22 = vpop.xlane.xlu1 %1800 }
 0x3a1   : > { %v3178_v23 = vmax.f32 %v3170_v20, %v1801_v22 }
 0x3a3   : > { %v1813_v27 = vsub.f32 %v3170_v20, %v3178_v23  ;;  %2282 = vst.msk [vmem:[#allocation2 + $0x8] sm:$0xff] %vm424_vm2, %v3178_v23  ;;  %605 = vrot.lane.b32.xlu1 %v2999_v0, %s2922_s23  ;;  %1831 = vperm.xlu0 %2861, %v3178_v23  }
 0x3a4   : > { %v1804_v28 = vpop.xlane.xlu1 %1803  ;;  %v1807_v29 = vpop.xlane.xlu0 %1806 }
 0x3a5   : > { %v3191_v30 = vmax.f32 %v3180_v25, %v1804_v28  ;;  %v3194_v31 = vmax.f32 %v3182_v26, %v1807_v29  ;;  %v1818_v19 = vmul.f32 1.442695, %v1813_v27 }
 0x3a7   : > { %v1814_v32 = vsub.f32 %v3180_v25, %v3191_v30  ;;  %2283 = vst.msk [vmem:[#allocation2 + $0x10] sm:$0xff] %vm424_vm2, %v3191_v30  ;;  %v1815_v33 = vsub.f32 %v3182_v26, %v3194_v31  ;;  %2284 = vst.msk [vmem:[#allocation2 + $0x18] sm:$0xff] %vm424_vm2, %v3194_v31  ;;  %607 = vrot.lane.b32.xlu1 %v3014_v2, %s2922_s23  ;;  %v1856_v25 = vld [vmem:[#allocation3] sm:$0xff] }
 0x3a9   : > { %v1822_v16 = vmul.f32 1.442695, %v1815_v33 }
 0x3ab   : > { %609 = vrot.lane.b32.xlu1 %v3021_v5, %s2922_s23 }
 0x3af   : > { %611 = vrot.lane.b32.xlu1 %v3019_v4, %s2922_s23 }
 0x3b3   : > { %1836 = vperm.xlu1 %2860, %v3191_v30  }
 0x3b7   : > { %1841 = vperm.xlu1 %2860, %v3194_v31  }
 0x41e   : > { %v1827_v0 = vpop.permute.xlu1 %1826 }
 0x41f   : > { %v1844_v34 = vsub.f32 %v1788_v59, %v1827_v0 }
 0x421   : > { %v1848_v35 = vmul.f32 1.442695, %v1844_v34 }
 0x422   : > { %v606_v36 = vpop.permute.xlu1 %605  ;;  %v1832_v37 = vpop.permute.xlu0 %1831 }
 0x423   : > { %2862 = vpow2.f32 %v1848_v35  ;;  %v1845_v38 = vsub.f32 %v1789_v63, %v1832_v37 }
 0x425   : > { %v1850_v39 = vmul.f32 1.442695, %v1845_v38 }
 0x426   : > { %v608_v40 = vpop.permute.xlu1 %607 }
 0x427   : > { %2864 = vpow2.f32 %v1850_v39 }
 0x42a   : > { %v610_v41 = vpop.permute.xlu1 %609 }
 0x42b   : > { %v617_v42 = vcombine.low %v606_v36, %v610_v41  ;;  %v618_v5 = vcombine.high %v606_v36, %v610_v41 }
 0x42d   : > { %v2863_v2 = vpop.eup %2862  ;;  %v625_v47 = vrot.slane %v617_v42, %v3031_v17  ;;  %v632_v48 = vrot.slane %v618_v5, %v3031_v17 }
 0x42e   : > { %v612_v43 = vpop.permute.xlu1 %611  ;;  %v1864_v4 = vsel %vm433_vm0, %v2863_v2, 0.0 }
 0x42f   : > { %v633_v44 = vcombine.low %v608_v40, %v612_v43  ;;  %v634_v45 = vcombine.high %v608_v40, %v612_v43  ;;  %1865 = vadd.xlane.f32.xlu1 %v1864_v4  ;;  %v1820_v43 = vmul.f32 1.442695, %v1814_v32 }
 0x431   : > { %v2865_v46 = vpop.eup %2864  ;;  %v641_v49 = vrot.slane %v633_v44, %v3031_v17  ;;  %v648_v50 = vrot.slane %v634_v45, %v3031_v17  ;;  %v1857_v45 = vld [vmem:[#allocation3 + $0x8] sm:$0xff] }
 0x432   : > { %v1837_v51 = vpop.permute.xlu1 %1836  ;;  %v1867_v1 = vsel %vm433_vm0, %v2865_v46, 0.0 }
 0x433   : > { %v649_v52 = vcombine.low %v625_v47, %v641_v49  ;;  %v650_v10 = vcombine.high %v625_v47, %v641_v49  ;;  %v665_v53 = vcombine.low %v632_v48, %v648_v50  ;;  %v666_v54 = vcombine.high %v632_v48, %v648_v50  ;;  %1868 = vadd.xlane.f32.xlu0 %v1867_v1  ;;  %v1859_v49 = vld [vmem:[#allocation3 + $0x18] sm:$0xff] }
 0x434   : > { %v1846_v55 = vsub.f32 %v3152_v9, %v1837_v51 }
 0x435   : > { %v657_v56 = vrot.slane %v649_v52, %v3034_v24  ;;  %v664_v57 = vrot.slane %v650_v10, %v3034_v24  ;;  %v673_v58 = vrot.slane %v665_v53, %v3034_v24  ;;  %v680_v59 = vrot.slane %v666_v54, %v3034_v24  ;;  %v2477_v54 = vld [vmem:[%s3326_s4] sm:$0xff] }
 0x436   : > { %v1852_v60 = vmul.f32 1.442695, %v1846_v55  ;;  %v1842_v61 = vpop.permute.xlu1 %1841  ;;  %v2478_v55 = vld [vmem:[%s3326_s4 + $0x8] sm:$0xff] }
 0x437   : > { %v1913_v14 = vcombine.low %v657_v56, %v664_v57  ;;  %v2729_v62 = vcombine.high %v657_v56, %v664_v57  ;;  %v1929_v63 = vcombine.low %v673_v58, %v680_v59  ;;  %v2730_v6 = vcombine.high %v673_v58, %v680_v59 }
 0x438   : > { %2866 = vpow2.f32 %v1852_v60  ;;  %v1847_v7 = vsub.f32 %v3159_v12, %v1842_v61  ;;  %v2923_v56 = vmov 0.0|0.0   ;;  %v2816_v57 = vpack.c.bf16 %v2478_v55, %v2477_v54  ;;  %v1885_v60 = vld [vmem:[#allocation4] sm:$0xff]  ;;  %v1886_v61 = vld [vmem:[#allocation4 + $0x8] sm:$0xff] }
 0x439   : > { %v1920_v8 = vrot.slane %v1913_v14, %v3031_v17  ;;  %v1928_v9 = vrot.slane %v2729_v62, %v3031_v17  ;;  %v1936_v11 = vrot.slane %v1929_v63, %v3031_v17  ;;  %v1944_v13 = vrot.slane %v2730_v6, %v3031_v17 }
 0x43a   : > { %v1854_v15 = vmul.f32 1.442695, %v1847_v7  ;;  %v1887_v7 = vld [vmem:[#allocation4 + $0x10] sm:$0xff] }
 0x43b   : > { %v1945_v18 = vcombine.low %v1920_v8, %v1928_v9  ;;  %v1961_v22 = vcombine.low %v1936_v11, %v1944_v13  ;;  %v1946_v28 = vcombine.high %v1920_v8, %v1928_v9  ;;  %v1962_v29 = vcombine.high %v1936_v11, %v1944_v13  ;;  %v1888_v11 = vld [vmem:[#allocation4 + $0x18] sm:$0xff] }
 0x43c   : > { %2868 = vpow2.f32 %v1854_v15 }
 0x43d   : > { %v1953_v0 = vrot.slane %v1945_v18, %v3034_v24  ;;  %v1969_v34 = vrot.slane %v1961_v22, %v3034_v24  ;;  %v1960_v12 = vrot.slane %v1946_v28, %v3034_v24  ;;  %v1976_v35 = vrot.slane %v1962_v29, %v3034_v24 }
 0x43f   : > { %v1977_v36 = vcombine.low %v1953_v0, %v1969_v34  ;;  %v1978_v37 = vcombine.high %v1953_v0, %v1969_v34  ;;  %v1979_v39 = vcombine.low %v1960_v12, %v1976_v35  ;;  %v1980_v41 = vcombine.high %v1960_v12, %v1976_v35 }
 0x441   : > { %2785 = vmatpush3.msra.mxu0 %v1977_v36  ;;  %2790 = vmatpush3.msra.mxu1 %v1978_v37 }
 0x442   : > { %v2867_v38 = vpop.eup %2866  ;;  %2787 = vmatmul.mubr.msk.f32.vlgmr.msra.gmra.mrb[2].mxu0 %vm433_vm0, %v2863_v2  ;;  %2792 = vmatmul.mubr.msk.f32.vlgmr.msra.gmra.mrb[6].mxu1 %vm433_vm0, %v2865_v46  ;;  %v1816_v2 = vmul.f32 1.442695, %v1812_v21  ;;  %v1858_v46 = vld [vmem:[#allocation3 + $0x10] sm:$0xff] }
 0x443   : > { %2794 = vmatprep.subr.mxu0 %v2916_v3  ;;  %2799 = vmatprep.subr.mxu1 %v2916_v3  ;;  %v1870_v40 = vsel %vm433_vm0, %v2867_v38, 0.0 }
 0x444   : > { %2795 = vmatpush3.msra.mxu0 %v1979_v39  ;;  %1871 = vadd.xlane.f32.xlu1 %v1870_v40  ;;  %2870 = vpow2.f32 %v1816_v2 }
 0x445   : > { %2800 = vmatpush3.msra.mxu1 %v1980_v41  ;;  %2796 = vmatprep.mubr.msk.f32.mxu0 %vm2919_vm1, %v2916_v3  ;;  %2872 = vpow2.f32 %v1820_v43 }
 0x446   : > { %v2869_v42 = vpop.eup %2868  ;;  %2801 = vmatprep.mubr.msk.f32.mxu1 %vm2919_vm1, %v2916_v3  ;;  %2797 = vmatmul.mubr.msk.f32.vlgmr.msra.gmra.mrb[4].mxu0 %vm433_vm0, %v2867_v38  ;;  %2874 = vpow2.f32 %v1822_v16 }
 0x447   : > { %2802 = vmatmul.mubr.msk.f32.vlgmr.msra.gmra.mrb[8].mxu1 %vm433_vm0, %v2869_v42  ;;  %v1873_v5 = vsel %vm433_vm0, %v2869_v42, 0.0  ;;  %2812 = vmatprep.mubr.msk.f32.mxu0 %vm2919_vm1, %v2916_v3  ;;  %2876 = vpow2.f32 %v1818_v19 }
 0x448   : > { %1874 = vadd.xlane.f32.xlu0 %v1873_v5  ;;  %2815 = vmatprep.subr.bf16.mxu0 %v2923_v56 }
 0x449   : > { %2817 = vmatpush3.bf16.msra.mxu0 %v2816_v57 }
 0x44a   : > { %2818 = vmatprep.subr.bf16.mxu0 %v2923_v56 }
 0x44e   : > { %v2871_v21 = vpop.eup %2870 }
 0x44f   : > { %v2873_v3 = vpop.eup %2872  ;;  %v1860_v30 = vmul.f32 %v2871_v21, %v1856_v25 }
 0x450   : > { %v2875_v4 = vpop.eup %2874  ;;  %v1862_v47 = vmul.f32 %v2873_v3, %v1858_v46 }
 0x451   : > { %v2877_v44 = vpop.eup %2876  ;;  %v1863_v51 = vmul.f32 %v2875_v4, %v1859_v49 }
 0x452   : > { %v1861_v31 = vmul.f32 %v2877_v44, %v1857_v45 }
 0x455   : > { %1891 = vperm.xlu1 %2860, %v2871_v21  }
 0x459   : > { %1901 = vperm.xlu1 %2860, %v2873_v3  }
 0x45d   : > { %1906 = vperm.xlu1 %2860, %v2875_v4  }
 0x45e   : > { %1896 = vperm.xlu0 %2861, %v2877_v44  }
 0x4bc   : > { %v1866_v32 = vpop.xlane.xlu1 %1865 }
 0x4bd   : > { %v1876_v26 = vadd.f32 %v1866_v32, %v1860_v30 }
 0x4bf   : > { %1881 = vst.msk [vmem:[#allocation3] sm:$0xff] %vm424_vm2, %v1876_v26 }
 0x4c0   : > { %v1869_v20 = vpop.xlane.xlu0 %1868 }
 0x4c1   : > { %v1877_v23 = vadd.f32 %v1869_v20, %v1861_v31 }
 0x4c3   : > { %1882 = vst.msk [vmem:[#allocation3 + $0x8] sm:$0xff] %vm424_vm2, %v1877_v23 }
 0x4c6   : > { %v2292_v27 = vld [vmem:[#allocation3] sm:$0xff] }
 0x4c7   : > { %2298 = vperm.xlu0 %2861, %v2292_v27  }
 0x4ca   : > { %v2293_v33 = vld [vmem:[#allocation3 + $0x8] sm:$0xff] }
 0x4cb   : > { %2303 = vperm.xlu1 %2860, %v2293_v33  }
 0x4d1   : > { %v1872_v48 = vpop.xlane.xlu1 %1871 }
 0x4d2   : > { %v1878_v50 = vadd.f32 %v1872_v48, %v1862_v47 }
 0x4d4   : > { %1883 = vst.msk [vmem:[#allocation3 + $0x10] sm:$0xff] %vm424_vm2, %v1878_v50  ;;  %v2479_v50 = vld [vmem:[%s3326_s4 + $0x10] sm:$0xff] }
 0x4d5   : > { %v1875_v1 = vpop.xlane.xlu0 %1874  ;;  %v1892_v58 = vpop.permute.xlu1 %1891 }
 0x4d6   : > { %v1879_v52 = vadd.f32 %v1875_v1, %v1863_v51  ;;  %v1909_v62 = vmul.f32 %v1892_v58, %v1885_v60  ;;  %v2480_v51 = vld [vmem:[%s3326_s4 + $0x18] sm:$0xff] }
 0x4d7   : > { %v2819_v54 = vpack.c.bf16 %v2480_v51, %v2479_v50 }
 0x4d8   : > { %1884 = vst.msk [vmem:[#allocation3 + $0x18] sm:$0xff] %vm424_vm2, %v1879_v52 }
 0x4d9   : > { %v1902_v59 = vpop.permute.xlu1 %1901  ;;  %2820 = vmatpush3.bf16.msra.mxu0 %v2819_v54 }
 0x4da   : > { %v1911_v28 = vmul.f32 %v1902_v59, %v1887_v7 }
 0x4db   : > { %v2294_v10 = vld [vmem:[#allocation3 + $0x10] sm:$0xff] }
 0x4dc   : > { %2308 = vperm.xlu0 %2861, %v2294_v10  }
 0x4dd   : > { %v1897_v14 = vpop.permute.xlu0 %1896  ;;  %v1907_v63 = vpop.permute.xlu1 %1906 }
 0x4de   : > { %v1910_v6 = vmul.f32 %v1897_v14, %v1886_v61  ;;  %v1912_v29 = vmul.f32 %v1907_v63, %v1888_v11 }
 0x4df   : > { %v2295_v53 = vld [vmem:[#allocation3 + $0x18] sm:$0xff] }
 0x4e0   : > { %2313 = vperm.xlu1 %2860, %v2295_v53  }
 0x515   : > { %v2050_v8 = vpop.f32.mrb[2].mxu0  ;;  %v2123_v9 = vpop.f32.mrb[6].mxu1 }
 0x516   : > { %v2273_v13 = vadd.f32 %v2050_v8, %v1909_v62  ;;  %v2274_v15 = vadd.f32 %v2123_v9, %v1910_v6  ;;  %v2788_v18 = vpop.f32.mrb[3].mxu0  ;;  %v2793_v22 = vpop.f32.mrb[7].mxu1 }
 0x518   : > { %2277 = vst.msk [vmem:[#allocation4] sm:$0xff] %vm433_vm0, %v2273_v13  ;;  %2278 = vst.msk [vmem:[#allocation4 + $0x8] sm:$0xff] %vm433_vm0, %v2274_v15 }
 0x519   : > { %v2196_v0 = vpop.f32.mrb[4].mxu0 }
 0x51a   : > { %v2275_v34 = vadd.f32 %v2196_v0, %v1911_v28  ;;  %v2269_v12 = vpop.f32.mrb[8].mxu1  ;;  %v2798_v35 = vpop.f32.mrb[5].mxu0 }
 0x51b   : > { %v2276_v36 = vadd.f32 %v2269_v12, %v1912_v29  ;;  %v2803_v37 = vpop.f32.mrb[9].mxu1  ;;  %v2737_v35 = vld [vmem:[%s3327_s5] ss:$0 sm:$0xff] }
 0x51c   : > { %2279 = vst.msk [vmem:[#allocation4 + $0x10] sm:$0xff] %vm433_vm0, %v2275_v34  ;;  %v2562_v37 = vld [vmem:[%s412_s19] sm:$0xff] }
 0x51d   : > { %2280 = vst.msk [vmem:[#allocation4 + $0x18] sm:$0xff] %vm433_vm0, %v2276_v36 }
 0x51f   : > { %v2288_v19 = vld [vmem:[#allocation4] sm:$0xff]  ;;  %v2289_v4 = vld [vmem:[#allocation4 + $0x8] sm:$0xff] }
 0x523   : > { %v2290_v5 = vld [vmem:[#allocation4 + $0x10] sm:$0xff] }
 0x524   : > { %v2291_v44 = vld [vmem:[#allocation4 + $0x18] sm:$0xff] }
 0x546   : > { %v2299_v38 = vpop.permute.xlu0 %2298 }
 0x547   : > { %2878 = vrcp.f32 %v2299_v38 }
 0x54a   : > { %v2304_v39 = vpop.permute.xlu1 %2303 }
 0x551   : > { %v2879_v42 = vpop.eup %2878 }
 0x552   : > { %v2317_v21 = vmul.f32 %v2879_v42, %v2288_v19 }
 0x55b   : > { %v2309_v40 = vpop.permute.xlu0 %2308 }
 0x55c   : > { %2880 = vrcp.f32 %v2309_v40 }
 0x55d   : > { %2882 = vrcp.f32 %v2304_v39 }
 0x55f   : > { %v2314_v41 = vpop.permute.xlu1 %2313 }
 0x560   : > { %2884 = vrcp.f32 %v2314_v41 }
 0x566   : > { %v2881_v2 = vpop.eup %2880 }
 0x567   : > { %v2321_v43 = vmul.f32 %v2881_v2, %v2290_v5  ;;  %v2883_v16 = vpop.eup %2882 }
 0x568   : > { %v2319_v25 = vmul.f32 %v2883_v16, %v2289_v4 }
 0x569   : > { %v2324_v30 = vcombine.low %v2317_v21, %v2321_v43  ;;  %v2325_v32 = vcombine.high %v2317_v21, %v2321_v43 }
 0x56a   : > { %v2885_v3 = vpop.eup %2884 }
 0x56b   : > { %v2323_v45 = vmul.f32 %v2885_v3, %v2291_v44  ;;  %v2332_v20 = vrot.slane %v2324_v30, %v3031_v17  ;;  %v2339_v23 = vrot.slane %v2325_v32, %v3031_v17  ;;  %v2739_v44 = vld [vmem:[%s3328_s6] ss:$0 sm:$0xff] }
 0x56c   : > { %v2740_v30 = vld [vmem:[%s3329_s7] ss:$0 sm:$0xff] }
 0x56d   : > { %v2340_v26 = vcombine.low %v2319_v25, %v2323_v45  ;;  %v2341_v31 = vcombine.high %v2319_v25, %v2323_v45 }
 0x56f   : > { %v2348_v27 = vrot.slane %v2340_v26, %v3031_v17  ;;  %v2355_v33 = vrot.slane %v2341_v31, %v3031_v17 }
 0x571   : > { %v2356_v46 = vcombine.low %v2332_v20, %v2348_v27  ;;  %v2357_v47 = vcombine.high %v2332_v20, %v2348_v27  ;;  %v2372_v48 = vcombine.low %v2339_v23, %v2355_v33  ;;  %v2373_v49 = vcombine.high %v2339_v23, %v2355_v33 }
 0x573   : > { %v2364_v1 = vrot.slane %v2356_v46, %v3034_v24  ;;  %v2371_v52 = vrot.slane %v2357_v47, %v3034_v24  ;;  %v2380_v10 = vrot.slane %v2372_v48, %v3034_v24  ;;  %v2387_v53 = vrot.slane %v2373_v49, %v3034_v24 }
 0x575   : > { %v2392_v55 = vcombine.low %v2364_v1, %v2371_v52  ;;  %v2735_v56 = vcombine.high %v2364_v1, %v2371_v52  ;;  %v2408_v57 = vcombine.low %v2380_v10, %v2387_v53  ;;  %v2736_v58 = vcombine.high %v2380_v10, %v2387_v53 }
 0x577   : > { %v2399_v59 = vrot.slane %v2392_v55, %v3031_v17  ;;  %v2407_v60 = vrot.slane %v2735_v56, %v3031_v17  ;;  %v2415_v61 = vrot.slane %v2408_v57, %v3031_v17  ;;  %v2423_v14 = vrot.slane %v2736_v58, %v3031_v17 }
 0x579   : > { %v2425_v62 = vcombine.high %v2399_v59, %v2407_v60  ;;  %v2441_v63 = vcombine.high %v2415_v61, %v2423_v14  ;;  %v2424_v6 = vcombine.low %v2399_v59, %v2407_v60  ;;  %v2440_v7 = vcombine.low %v2415_v61, %v2423_v14 }
 0x57b   : > { %v2439_v8 = vrot.slane %v2425_v62, %v3034_v24  ;;  %v2455_v9 = vrot.slane %v2441_v63, %v3034_v24  ;;  %v2432_v11 = vrot.slane %v2424_v6, %v3034_v24  ;;  %v2448_v13 = vrot.slane %v2440_v7, %v3034_v24 }
 0x57d   : > { %v2458_v15 = vcombine.low %v2439_v8, %v2455_v9  ;;  %v2457_v18 = vcombine.high %v2432_v11, %v2448_v13  ;;  %v2456_v22 = vcombine.low %v2432_v11, %v2448_v13  ;;  %v2459_v17 = vcombine.high %v2439_v8, %v2455_v9 }
 0x57f   : > { %2465 = vrot.lane.b32.xlu1 %v2458_v15, %s2924_s14  ;;  %2461 = vrot.lane.b32.xlu0 %v2457_v18, %s2925_s15 }
 0x583   : > { %2469 = vrot.lane.b32.xlu0 %v2459_v17, %s2926_s16 }
 0x5f1   : > { %v2462_v28 = vpop.permute.xlu0 %2461  ;;  %v2466_v29 = vpop.permute.xlu1 %2465 }
 0x5f2   : > { %v2472_v0 = vsel %vm433_vm0, %v2456_v22, %v2462_v28 }
 0x5f3   : > { %v2474_v24 = vsel %vm2473_vm7, %v2472_v0, %v2466_v29 }
 0x5f5   : > { %v2470_v34 = vpop.permute.xlu0 %2469 }
 0x5f6   : > { %v2476_v12 = vsel %vm2475_vm8, %v2474_v24, %v2470_v34 }
 0x5f7   : > { %2813 = vmatmul.mubr.msk.f32.vlgmr.msra.gmra.mrb[6].mxu0 %vm2488_vm9, %v2476_v12 }
 0x6ca   : > { %v2558_v36 = vpop.f32.mrb[6].mxu0 }
 0x6cb   : > { %v2559_v38 = vadd.f32 %v2737_v35, %v2558_v36  ;;  %v2814_v39 = vpop.f32.mrb[7].mxu0 }
 0x6cd   : > { %v2563_v40 = vadd.f32 %v2562_v37, %v2559_v38 }
 0x6cf   : > { %v2564_v41 = vsel %vm2488_vm9, %v2563_v40, 0.0 }
 0x6d0   : > { %2565 = vadd.xlane.f32.xlu1 %v2564_v41 }
 0x75d   : > { %v2566_v42 = vpop.xlane.xlu1 %2565 }
 0x75e   : > { %v2568_v2 = vmul.f32 0.03125, %v2566_v42 }
 0x760   : > { %v2569_v5 = vsub.f32 %v2563_v40, %v2568_v2 }
 0x762   : > { %v2570_v43 = vmul.f32 %v2569_v5, %v2569_v5 }
 0x764   : > { %v2571_v16 = vsel %vm2488_vm9, %v2570_v43, 0.0 }
 0x765   : > { %2572 = vadd.xlane.f32.xlu0 %v2571_v16 }
 0x7f2   : > { %v2573_v19 = vpop.xlane.xlu0 %2572 }
 0x7f3   : > { %v2574_v21 = vmul.f32 0.03125, %v2573_v19 }
 0x7f5   : > { %v2575_v3 = vadd.f32 1e-05, %v2574_v21 }
 0x7f7   : > { %2886 = vrsqrt.f32 %v2575_v3 }
 0x801   : > { %v2887_v4 = vpop.eup %2886 }
 0x802   : > { %v2577_v25 = vmul.f32 %v2887_v4, %v2569_v5 }
 0x804   : > { %v2585_v32 = vmul.f32 %v2739_v44, %v2577_v25 }
 0x806   : > { %v2593_v45 = vadd.f32 %v2740_v30, %v2585_v32 }
 0x808   : > { %2594 = vst.msk [vmem:[%s419_s10] sm:$0xff] %vm2488_vm9, %v2593_v45 }
 0x809 PF: > { %s18_s29 = sadd.s32 1, %s2910_s29   ;;  %s3333_s27 = smov %s2906_s28 }
 0x80a   : > { %p15_p5 = scmp.ge.s32.totalorder %s18_s29, 4   ;;  %s3334_s28 = smov %s3336_s30 }
 0x80c   :  { %17 = sbr.rel (!%p15_p5) target bundleno = 2 (0x2), region = 99 }

// kernel: transformer_forward.35
= control target key start
LH: loop header
LB: loop body
LE: loop exit
PB: predicated region body
PF: predicated region fallthrough
CT: control target
= control target key end

     0   :  { %s2947_s27 = smov 0   ;;  %s2949_s28 = smov 0   ;;  %s3290_s0 = inlined_call_operand.vmem [shape: f32[2,8,32], index: 0, kind: input, shape index: {}]   ;;  %s3291_s1 = inlined_call_operand.vmem [shape: f32[2,8,64], index: 1, kind: input, shape index: {}]   ;;  %s3292_s2 = inlined_call_operand.vmem [shape: f32[2,1,8], index: 2, kind: input, shape index: {}]   ;;  %s3293_s3 = inlined_call_operand.vmem [shape: f32[2,8,32], index: 3, kind: input, shape index: {}]   ;;  %s3294_s4 = inlined_call_operand.vmem [shape: f32[32,32], index: 4, kind: input, shape index: {}]   ;;  %s3295_s5 = inlined_call_operand.vmem [shape: f32[1,32], index: 5, kind: input, shape index: {}]   ;;  %s3296_s6 = inlined_call_operand.vmem [shape: f32[1,32], index: 6, kind: input, shape index: {}]   ;;  %s3297_s7 = inlined_call_operand.vmem [shape: f32[1,32], index: 7, kind: input, shape index: {}]   ;;  %s3298_s8 = inlined_call_operand.vmem [shape: f32[2,8,32], index: 8, kind: output, shape index: {}]  }
   0x1   :  { %s2951_s29 = smov 0  }
   0x2 LB: > { %s37_s30 = sadd.s32 1, %s2882_s28  ;;  %p2695_p0 = scmp.ge.s32.totalorder %s2886_s29, 1  ;;  %s2886_s29 = sphi %s2951_s29, %s18_s29   ;;  %s2882_s28 = sphi %s2949_s28, %s3300_s28   ;;  %s2878_s27 = sphi %s2947_s27, %s3299_s27  }
   0x3   : > { %p39_p1 = scmp.ge.s32.totalorder %s37_s30, 2  ;;  %p328_p2 = scmp.lt.s32.totalorder %s2886_s29, 3 }
   0x5   : > { %s3302_s30 = smov (%p39_p1, %s37_s30), 0  ;;  %p329_p3 = pnand %p2695_p0, %p328_p2 }
   0x6   : > { %p386_p4 = scmp.lt.s32.totalorder (!%p329_p3), %s2878_s27, 1  ;;  %v2888_v1 = vmov (!%p329_p3), 0.0   ;;  %s2889_s16 = smov (!%p329_p3), 104   ;;  %v2892_v3 = vmov (!%p329_p3), 1983009808   ;;  %v455_v5 = vlaneseq (!%p329_p3)  ;;  %vm433_vm0 = vcmask (!%p329_p3), 64512  }
   0x7   : > { %332 = sbr.rel (%p329_p3) target bundleno = 1942 (0x796), region = 52  ;;  %2741 = vmatprep.subr.mxu1 (!%p329_p3), %v2888_v1  ;;  %2751 = vmatprep.subr.mxu0 (!%p329_p3), %v2888_v1  ;;  %s2890_s17 = smov (!%p329_p3), 120   ;;  %v453_v4 = vunpack.c.l.s4 (!%p329_p3), %v2892_v3  ;;  %v2893_v8 = vmov (!%p329_p3), 1934713408   ;;  %vm2894_vm1 = vmmov (!%p329_p3), 0   ;;  %434 = vst.msk [vmem:[#allocation4] sm:$0xff] (!%p329_p3), %vm433_vm0, %v2888_v1 }
   0x8   : > { %s2891_s18 = smov (!%p329_p3), 112   ;;  %v2990_v7 = vshrl.u32 (!%p329_p3), %v455_v5, 7  ;;  %v485_v9 = vunpack.c.l.s4 (!%p329_p3), %v2893_v8  ;;  %2743 = vmatprep.mubr.msk.f32.mxu1 (!%p329_p3), %vm2894_vm1, %v2888_v1  ;;  %435 = vst.msk [vmem:[#allocation4 + $0x8] sm:$0xff] (!%p329_p3), %vm433_vm0, %v2888_v1  ;;  %436 = vst.msk [vmem:[#allocation4 + $0x10] sm:$0xff] (!%p329_p3), %vm433_vm0, %v2888_v1  ;;  %2753 = vmatprep.mubr.msk.f32.mxu0 (!%p329_p3), %vm2894_vm1, %v2888_v1  ;;  %vm424_vm2 = vcmask (!%p329_p3), 7168   ;;  %s2897_s22 = smov (!%p329_p3), 96  }
   0x9   : > { %v454_v6 = vunpack.c.0.s8 (!%p329_p3), %v453_v4  ;;  %437 = vst.msk [vmem:[#allocation4 + $0x18] sm:$0xff] (!%p329_p3), %vm433_vm0, %v2888_v1  ;;  %s2899_s13 = smov (!%p329_p3), 16   ;;  %s2900_s14 = smov (!%p329_p3), 8   ;;  %vm2450_vm5 = vcmask (!%p329_p3), 130048   ;;  %vm2452_vm6 = vcmask (!%p329_p3), 195584   ;;  %vm2465_vm7 = vcmask (!%p329_p3), 261120  }
   0xa   : > { %v486_v14 = vunpack.c.0.s8 (!%p329_p3), %v485_v9  ;;  %429 = vst.msk [vmem:[#allocation3] sm:$0xff] (!%p329_p3), %vm424_vm2, %v2888_v1  ;;  %430 = vst.msk [vmem:[#allocation3 + $0x8] sm:$0xff] (!%p329_p3), %vm424_vm2, %v2888_v1 }
   0xb   : > { %v2999_v13 = vsub.s32 (!%p329_p3), %v454_v6, %v2990_v7  ;;  %431 = vst.msk [vmem:[#allocation3 + $0x10] sm:$0xff] (!%p329_p3), %vm424_vm2, %v2888_v1  ;;  %432 = vst.msk [vmem:[#allocation3 + $0x18] sm:$0xff] (!%p329_p3), %vm424_vm2, %v2888_v1 }
   0xc   : > { %v3010_v19 = vsub.s32 (!%p329_p3), %v486_v14, %v2990_v7 }
   0xe   : > { %s3304_s27 = smov (!%p386_p4, %s2878_s27), 1 }
   0xf   : > { %s2968_s9 = sshll.u32 %s3304_s27, 3  ;;  %s405_s21 = scalar_lea.vmem %s3292_s2, %s3304_s27 }
  0x10   : > { %s399_s12 = scalar_lea.vmem %s3291_s1, %s2968_s9  ;;  %s392_s15 = scalar_lea.vmem %s3290_s0, %s2968_s9 }
  0x11   : > { %v2974_v0 = vld [vmem:[%s399_s12] sm:$0xff]  ;;  %s419_s27 = scalar_lea.vmem %s3298_s8, %s2968_s9 }
  0x12   : > { %525 = vrot.lane.b32.xlu1 %v2974_v0, %s2889_s16  ;;  %519 = vrot.lane.b32.xlu0 %v2974_v0, %s2890_s17  ;;  %v2985_v2 = vld [vmem:[%s392_s15] sm:$0xff]  ;;  %s2901_s15 = smov 24  }
  0x16   : > { %522 = vrot.lane.b32.xlu0 %v2974_v0, %s2891_s18  ;;  %441 = vrot.lane.b32.xlu1 %v2985_v2, %s2890_s17 }
  0x84   : > { %v2992_v10 = vpop.permute.xlu1 %525  ;;  %v2994_v11 = vpop.permute.xlu0 %519 }
  0x85   : > { %v544_v12 = vcombine.low %v2994_v11, %v2992_v10  ;;  %v545_v16 = vcombine.high %v2994_v11, %v2992_v10 }
  0x87   : > { %v552_v21 = vrot.slane %v544_v12, %v2999_v13  ;;  %v559_v25 = vrot.slane %v545_v16, %v2999_v13 }
  0x88   : > { %v3001_v15 = vpop.permute.xlu0 %522  ;;  %v3028_v36 = vpop.permute.xlu1 %441 }
  0x89   : > { %v528_v17 = vcombine.low %v2974_v0, %v3001_v15  ;;  %v529_v18 = vcombine.high %v2974_v0, %v3001_v15 }
  0x8b   : > { %v536_v20 = vrot.slane %v528_v17, %v2999_v13  ;;  %v543_v22 = vrot.slane %v529_v18, %v2999_v13 }
  0x8d   : > { %v561_v23 = vcombine.high %v536_v20, %v552_v21  ;;  %v560_v24 = vcombine.low %v536_v20, %v552_v21  ;;  %v576_v28 = vcombine.low %v543_v22, %v559_v25  ;;  %v577_v31 = vcombine.high %v543_v22, %v559_v25 }
  0x8f   : > { %v575_v26 = vrot.slane %v561_v23, %v3010_v19  ;;  %v568_v27 = vrot.slane %v560_v24, %v3010_v19  ;;  %v584_v30 = vrot.slane %v576_v28, %v3010_v19  ;;  %v591_v33 = vrot.slane %v577_v31, %v3010_v19 }
  0x91   : > { %808 = vxpose.xlu0.b32.start.end [1/1] (short) (narrow) %v575_v26, 8  ;;  %744 = vxpose.xlu1.b32.start.end [1/1] (short) (narrow) %v568_v27, 8  ;;  %v592_v29 = vcombine.high %v568_v27, %v2888_v1  ;;  %v593_v32 = vcombine.high %v575_v26, %v2888_v1  ;;  %v594_v34 = vcombine.high %v584_v30, %v2888_v1 }
  0x92   : > { %v595_v35 = vcombine.high %v591_v33, %v2888_v1 }
  0x95   : > { %776 = vxpose.xlu0.b32.start.end [1/1] (short) (narrow) %v592_v29, 8  ;;  %872 = vxpose.xlu1.b32.start.end [1/1] (short) (narrow) %v584_v30, 8 }
  0x99   : > { %840 = vxpose.xlu0.b32.start.end [1/1] (short) (narrow) %v593_v32, 8  ;;  %936 = vxpose.xlu1.b32.start.end [1/1] (short) (narrow) %v591_v33, 8 }
  0x9d   : > { %904 = vxpose.xlu0.b32.start.end [1/1] (short) (narrow) %v594_v34, 8 }
  0xa1   : > { %968 = vxpose.xlu0.b32.start.end [1/1] (short) (narrow) %v595_v35, 8 }
  0xb7   : > { %447 = vrot.lane.b32.xlu1 %v2985_v2, %s2889_s16 }
  0xca   : > { %444 = vrot.lane.b32.xlu0 %v2985_v2, %s2891_s18  ;;  %s412_s18 = scalar_lea.vmem %s3293_s3, %s2968_s9 }
 0x111   : > { %v824_v37 = vpop.trf.xlu0  ;;  %v760_v38 = vpop.trf.xlu1 }
 0x112   : > { %v1000_v45 = vcombine.low %v760_v38, %v824_v37  ;;  %v1001_v57 = vcombine.high %v760_v38, %v824_v37 }
 0x114   : > { %v1008_v49 = vrot.slane %v1000_v45, %v2999_v13  ;;  %v1015_v5 = vrot.slane %v1001_v57, %v2999_v13 }
 0x115   : > { %v792_v39 = vpop.trf.xlu0  ;;  %v888_v40 = vpop.trf.xlu1 }
 0x119   : > { %v856_v41 = vpop.trf.xlu0  ;;  %v952_v44 = vpop.trf.xlu1 }
 0x11a   : > { %v1016_v42 = vcombine.low %v792_v39, %v856_v41  ;;  %v1032_v47 = vcombine.low %v888_v40, %v952_v44  ;;  %v1017_v52 = vcombine.high %v792_v39, %v856_v41  ;;  %v1033_v54 = vcombine.high %v888_v40, %v952_v44 }
 0x11c   : > { %v1024_v46 = vrot.slane %v1016_v42, %v2999_v13  ;;  %v1040_v55 = vrot.slane %v1032_v47, %v2999_v13  ;;  %v1031_v61 = vrot.slane %v1017_v52, %v2999_v13  ;;  %v1047_v62 = vrot.slane %v1033_v54, %v2999_v13 }
 0x11d   : > { %v920_v43 = vpop.trf.xlu0 }
 0x11e   : > { %v1064_v53 = vcombine.low %v1008_v49, %v1024_v46  ;;  %v1065_v4 = vcombine.high %v1008_v49, %v1024_v46  ;;  %v1080_v16 = vcombine.low %v1015_v5, %v1031_v61  ;;  %v1081_v23 = vcombine.high %v1015_v5, %v1031_v61 }
 0x120   : > { %v1072_v63 = vrot.slane %v1064_v53, %v3010_v19  ;;  %v1079_v14 = vrot.slane %v1065_v4, %v3010_v19  ;;  %v1088_v22 = vrot.slane %v1080_v16, %v3010_v19  ;;  %v1095_v27 = vrot.slane %v1081_v23, %v3010_v19 }
 0x121   : > { %v984_v48 = vpop.trf.xlu0 }
 0x122   : > { %v1048_v50 = vcombine.low %v920_v43, %v984_v48  ;;  %v1049_v51 = vcombine.high %v920_v43, %v984_v48 }
 0x124   : > { %v1056_v56 = vrot.slane %v1048_v50, %v2999_v13  ;;  %v1063_v58 = vrot.slane %v1049_v51, %v2999_v13 }
 0x126   : > { %v1096_v59 = vcombine.low %v1040_v55, %v1056_v56  ;;  %v1097_v60 = vcombine.high %v1040_v55, %v1056_v56  ;;  %v1112_v12 = vcombine.low %v1047_v62, %v1063_v58  ;;  %v1113_v21 = vcombine.high %v1047_v62, %v1063_v58 }
 0x128   : > { %v1104_v3 = vrot.slane %v1096_v59, %v3010_v19  ;;  %v1111_v9 = vrot.slane %v1097_v60, %v3010_v19  ;;  %v1120_v20 = vrot.slane %v1112_v12, %v3010_v19  ;;  %v1127_v26 = vrot.slane %v1113_v21, %v3010_v19 }
 0x129   : > { %v448_v31 = vpop.permute.xlu1 %447 }
 0x12a   : > { %v1129_v6 = vcombine.high %v1072_v63, %v1104_v3  ;;  %v1128_v8 = vcombine.low %v1072_v63, %v1104_v3  ;;  %v1130_v17 = vcombine.low %v1079_v14, %v1111_v9  ;;  %v1131_v18 = vcombine.high %v1079_v14, %v1111_v9 }
 0x12b   : > { %v1132_v24 = vcombine.low %v1088_v22, %v1120_v20  ;;  %v1133_v25 = vcombine.high %v1088_v22, %v1120_v20  ;;  %v1134_v28 = vcombine.low %v1095_v27, %v1127_v26  ;;  %v1135_v29 = vcombine.high %v1095_v27, %v1127_v26 }
 0x12c   : > { %1168 = vxpose.xlu0.b32.start.end [1/1] (short) (narrow) %v1129_v6, 8  ;;  %1136 = vxpose.xlu1.b32.start.end [1/1] (short) (narrow) %v1128_v8, 8  ;;  %v466_v34 = vcombine.low %v3028_v36, %v448_v31  ;;  %v467_v35 = vcombine.high %v3028_v36, %v448_v31 }
 0x12e   : > { %v474_v39 = vrot.slane %v466_v34, %v2999_v13  ;;  %v481_v40 = vrot.slane %v467_v35, %v2999_v13 }
 0x130   : > { %1200 = vxpose.xlu0.b32.start.end [1/1] (short) (narrow) %v1130_v17, 8  ;;  %1232 = vxpose.xlu1.b32.start.end [1/1] (short) (narrow) %v1131_v18, 8 }
 0x134   : > { %1264 = vxpose.xlu0.b32.start.end [1/1] (short) (narrow) %v1132_v24, 8  ;;  %1296 = vxpose.xlu1.b32.start.end [1/1] (short) (narrow) %v1133_v25, 8 }
 0x138   : > { %1328 = vxpose.xlu0.b32.start.end [1/1] (short) (narrow) %v1134_v28, 8  ;;  %1360 = vxpose.xlu1.b32.start.end [1/1] (short) (narrow) %v1135_v29, 8 }
 0x13c   : > { %v445_v30 = vpop.permute.xlu0 %444 }
 0x13d   : > { %v450_v32 = vcombine.low %v2985_v2, %v445_v30  ;;  %v451_v33 = vcombine.high %v2985_v2, %v445_v30 }
 0x13f   : > { %v458_v37 = vrot.slane %v450_v32, %v2999_v13  ;;  %v465_v38 = vrot.slane %v451_v33, %v2999_v13 }
 0x141   : > { %v482_v41 = vcombine.low %v458_v37, %v474_v39  ;;  %v483_v42 = vcombine.high %v458_v37, %v474_v39  ;;  %v498_v43 = vcombine.low %v465_v38, %v481_v40  ;;  %v499_v44 = vcombine.high %v465_v38, %v481_v40 }
 0x143   : > { %v490_v2 = vrot.slane %v482_v41, %v3010_v19  ;;  %v497_v47 = vrot.slane %v483_v42, %v3010_v19  ;;  %v506_v36 = vrot.slane %v498_v43, %v3010_v19  ;;  %v513_v48 = vrot.slane %v499_v44, %v3010_v19  ;;  %v1757_v43 = vld [vmem:[%s405_s21] sm:$0x1] }
 0x144   : > { %v2895_v41 = vmov 0   ;;  %v2896_v42 = vmov -inf   ;;  %vm1758_vm3 = vcmp.eq.f32.partialorder %v1757_v43, 0.0  ;;  %v1762_v44 = vsub.s32 0, %v2990_v7 }
 0x145   : > { %v676_v51 = vcombine.low %v490_v2, %v497_v47  ;;  %v2700_v52 = vcombine.high %v490_v2, %v497_v47  ;;  %v692_v53 = vcombine.low %v506_v36, %v513_v48  ;;  %v2701_v54 = vcombine.high %v506_v36, %v513_v48  ;;  %425 = vst.msk [vmem:[#allocation2] sm:$0xff] %vm424_vm2, %v2896_v42 }
 0x146   : > { %426 = vst.msk [vmem:[#allocation2 + $0x8] sm:$0xff] %vm424_vm2, %v2896_v42  ;;  %427 = vst.msk [vmem:[#allocation2 + $0x10] sm:$0xff] %vm424_vm2, %v2896_v42 }
 0x147   : > { %v683_v59 = vrot.slane %v676_v51, %v2999_v13  ;;  %v691_v60 = vrot.slane %v2700_v52, %v2999_v13  ;;  %v699_v61 = vrot.slane %v692_v53, %v2999_v13  ;;  %v707_v62 = vrot.slane %v2701_v54, %v2999_v13  ;;  %428 = vst.msk [vmem:[#allocation2 + $0x18] sm:$0xff] %vm424_vm2, %v2896_v42 }
 0x149   : > { %v708_v9 = vcombine.low %v683_v59, %v691_v60  ;;  %v724_v12 = vcombine.low %v699_v61, %v707_v62  ;;  %v709_v14 = vcombine.high %v683_v59, %v691_v60  ;;  %v725_v16 = vcombine.high %v699_v61, %v707_v62 }
 0x14b   : > { %v716_v24 = vrot.slane %v708_v9, %v3010_v19  ;;  %v732_v25 = vrot.slane %v724_v12, %v3010_v19  ;;  %v723_v26 = vrot.slane %v709_v14, %v3010_v19  ;;  %v739_v27 = vrot.slane %v725_v16, %v3010_v19 }
 0x14d   : > { %v740_v34 = vcombine.low %v716_v24, %v732_v25  ;;  %v742_v37 = vcombine.low %v723_v26, %v739_v27  ;;  %v741_v38 = vcombine.high %v716_v24, %v732_v25  ;;  %v743_v40 = vcombine.high %v723_v26, %v739_v27  ;;  %v3148_v14 = vld [vmem:[#allocation2 + $0x10] sm:$0xff] }
 0x14e   : > { %v3150_v16 = vld [vmem:[#allocation2 + $0x18] sm:$0xff] }
 0x156   : > { %2836 = vset.pattern.permute.xlu1 %v2895_v41 }
 0x161   : > { %2837 = vset.pattern.permute.xlu0 %v2895_v41 }
 0x1ac   : > { %v1184_v45 = vpop.trf.xlu0  ;;  %v1152_v46 = vpop.trf.xlu1 }
 0x1b0   : > { %v1216_v49 = vpop.trf.xlu0  ;;  %v1248_v50 = vpop.trf.xlu1 }
 0x1b1   : > { %v1392_v55 = vcombine.low %v1152_v46, %v1216_v49  ;;  %v1400_v56 = vcombine.low %v1184_v45, %v1248_v50  ;;  %v1759_v45 = vsel %vm1758_vm3, 1, %v2895_v41 }
 0x1b2   : > { %v1763_v46 = vrot.slane %v1759_v45, %v1762_v44 }
 0x1b3   : > { %v1399_v63 = vrot.slane %v1392_v55, %v2999_v13  ;;  %v1407_v3 = vrot.slane %v1400_v56, %v2999_v13 }
 0x1b4   : > { %v1280_v57 = vpop.trf.xlu0  ;;  %v1312_v58 = vpop.trf.xlu1  ;;  %vm1764_vm4 = vcmp.eq.s32.totalorder %v1763_v46, 1 }
 0x1b5   : > { %v1424_v17 = vcombine.low %v1399_v63, %v1407_v3  ;;  %v1425_v18 = vcombine.high %v1399_v63, %v1407_v3  ;;  %v3133_v3 = vld [vmem:[#allocation2] sm:$0xff] }
 0x1b7   : > { %v1432_v28 = vrot.slane %v1424_v17, %v3010_v19  ;;  %v1439_v30 = vrot.slane %v1425_v18, %v3010_v19 }
 0x1b8   : > { %v1344_v4 = vpop.trf.xlu0  ;;  %v1376_v5 = vpop.trf.xlu1 }
 0x1b9   : > { %v1408_v6 = vcombine.low %v1280_v57, %v1344_v4  ;;  %v1416_v8 = vcombine.low %v1312_v58, %v1376_v5 }
 0x1bb   : > { %v1415_v20 = vrot.slane %v1408_v6, %v2999_v13  ;;  %v1423_v21 = vrot.slane %v1416_v8, %v2999_v13  ;;  %v3138_v6 = vld [vmem:[#allocation2 + $0x8] sm:$0xff] }
 0x1bd   : > { %v1440_v22 = vcombine.low %v1415_v20, %v1423_v21  ;;  %v1441_v23 = vcombine.high %v1415_v20, %v1423_v21 }
 0x1bf   : > { %v1448_v29 = vrot.slane %v1440_v22, %v3010_v19  ;;  %v1455_v31 = vrot.slane %v1441_v23, %v3010_v19 }
 0x1c1   : > { %v1456_v32 = vcombine.low %v1432_v28, %v1448_v29  ;;  %v1458_v33 = vcombine.low %v1439_v30, %v1455_v31  ;;  %v1457_v35 = vcombine.high %v1432_v28, %v1448_v29  ;;  %v1459_v39 = vcombine.high %v1439_v30, %v1455_v31 }
 0x1c3   : > { %2742 = vmatpush3.msra.mxu1 %v1456_v32  ;;  %2752 = vmatpush3.msra.mxu0 %v1458_v33 }
 0x1c4   : > { %2744 = vmatmul.mubr.msk.f32.vlgmr.msra.gmra.mrb[0].mxu1 %vm433_vm0, %v740_v34  ;;  %2746 = vmatprep.subr.mxu1 %v2888_v1 }
 0x1c5   : > { %2754 = vmatmul.mubr.msk.f32.vlgmr.msra.gmra.mrb[0].mxu0 %vm433_vm0, %v742_v37  ;;  %2747 = vmatpush3.msra.mxu1 %v1457_v35 }
 0x1c6   : > { %2748 = vmatprep.mubr.msk.f32.mxu1 %vm2894_vm1, %v2888_v1  ;;  %2756 = vmatprep.subr.mxu1 %v2888_v1 }
 0x1c7   : > { %2761 = vmatprep.subr.mxu0 %v2888_v1  ;;  %2763 = vmatprep.mubr.msk.f32.mxu0 %vm2894_vm1, %v2888_v1 }
 0x1c8   : > { %2749 = vmatmul.mubr.msk.f32.vlgmr.msra.gmra.mrb[2].mxu1 %vm433_vm0, %v741_v38 }
 0x1c9   : > { %2757 = vmatpush3.msra.mxu1 %v1459_v39  ;;  %2758 = vmatprep.mubr.msk.f32.mxu1 %vm2894_vm1, %v2888_v1 }
 0x1ca   : > { %2766 = vmatprep.subr.mxu1 %v2888_v1 }
 0x1cc   : > { %2759 = vmatmul.mubr.msk.f32.vlgmr.msra.gmra.mrb[4].mxu1 %vm433_vm0, %v743_v40 }
 0x1cd   : > { %2768 = vmatprep.mubr.msk.f32.mxu1 %vm2894_vm1, %v2888_v1 }
 0x297   : > { %v1530_v2 = vpop.f32.mrb[0].mxu1 }
 0x298   : > { %v1753_v47 = vmul.f32 0.35355338, %v1530_v2  ;;  %v1676_v36 = vpop.f32.mrb[0].mxu0  ;;  %v2745_v48 = vpop.f32.mrb[1].mxu1 }
 0x299   : > { %v1755_v49 = vmul.f32 0.35355338, %v1676_v36  ;;  %v2755_v50 = vpop.f32.mrb[1].mxu0 }
 0x29a   : > { %v1765_v51 = vsel %vm1764_vm4, -1e+10, %v1753_v47 }
 0x29b   : > { %v1603_v52 = vpop.f32.mrb[2].mxu1  ;;  %v1773_v53 = vsel %vm433_vm0, %v1765_v51, -inf  ;;  %v3122_v54 = vsel %vm1764_vm4, -1e+10, %v1755_v49 }
 0x29c   : > { %v1754_v55 = vmul.f32 0.35355338, %v1603_v52  ;;  %1774 = vmax.xlane.f32.xlu0 %v1773_v53  ;;  %v2750_v7 = vpop.f32.mrb[3].mxu1  ;;  %v1779_v62 = vsel %vm433_vm0, %v3122_v54, -inf }
 0x29e   : > { %v1766_v56 = vsel %vm1764_vm4, -1e+10, %v1754_v55 }
 0x29f   : > { %v1749_v57 = vpop.f32.mrb[4].mxu1  ;;  %v1776_v58 = vsel %vm433_vm0, %v1766_v56, -inf }
 0x2a0   : > { %v1756_v59 = vmul.f32 0.35355338, %v1749_v57  ;;  %1777 = vmax.xlane.f32.xlu1 %v1776_v58  ;;  %v2760_v60 = vpop.f32.mrb[5].mxu1 }
 0x2a2   : > { %v3127_v61 = vsel %vm1764_vm4, -1e+10, %v1756_v59 }
 0x2a3   : > { %v1782_v63 = vsel %vm433_vm0, %v3127_v61, -inf }
 0x2a4   : > { %1780 = vmax.xlane.f32.xlu1 %v1779_v62  ;;  %1783 = vmax.xlane.f32.xlu0 %v1782_v63 }
 0x329   : > { %v1775_v4 = vpop.xlane.xlu0 %1774 }
 0x32a   : > { %v3136_v5 = vmax.f32 %v3133_v3, %v1775_v4 }
 0x32c   : > { %v1789_v8 = vsub.f32 %v3133_v3, %v3136_v5  ;;  %2258 = vst.msk [vmem:[#allocation2] sm:$0xff] %vm424_vm2, %v3136_v5  ;;  %1803 = vperm.xlu1 %2836, %v3136_v5  }
 0x32d   : > { %v1778_v9 = vpop.xlane.xlu1 %1777 }
 0x32e   : > { %v3146_v12 = vmax.f32 %v3138_v6, %v1778_v9 }
 0x330   : > { %v1790_v17 = vsub.f32 %v3138_v6, %v3146_v12  ;;  %2259 = vst.msk [vmem:[#allocation2 + $0x8] sm:$0xff] %vm424_vm2, %v3146_v12  ;;  %596 = vrot.lane.b32.xlu1 %v2974_v0, %s2897_s22  ;;  %1808 = vperm.xlu0 %2837, %v3146_v12  }
 0x331   : > { %v1781_v18 = vpop.xlane.xlu1 %1780  ;;  %v1784_v20 = vpop.xlane.xlu0 %1783 }
 0x332   : > { %v3159_v21 = vmax.f32 %v3148_v14, %v1781_v18  ;;  %v3162_v22 = vmax.f32 %v3150_v16, %v1784_v20  ;;  %v1795_v5 = vmul.f32 1.442695, %v1790_v17 }
 0x334   : > { %v1791_v23 = vsub.f32 %v3148_v14, %v3159_v21  ;;  %2260 = vst.msk [vmem:[#allocation2 + $0x10] sm:$0xff] %vm424_vm2, %v3159_v21  ;;  %v1792_v24 = vsub.f32 %v3150_v16, %v3162_v22  ;;  %2261 = vst.msk [vmem:[#allocation2 + $0x18] sm:$0xff] %vm424_vm2, %v3162_v22  ;;  %598 = vrot.lane.b32.xlu1 %v2994_v11, %s2897_s22  ;;  %v1833_v14 = vld [vmem:[#allocation3] sm:$0xff] }
 0x336   : > { %v1799_v3 = vmul.f32 1.442695, %v1792_v24 }
 0x338   : > { %600 = vrot.lane.b32.xlu1 %v3001_v15, %s2897_s22 }
 0x33c   : > { %602 = vrot.lane.b32.xlu1 %v2992_v10, %s2897_s22 }
 0x340   : > { %1813 = vperm.xlu1 %2836, %v3159_v21  }
 0x344   : > { %1818 = vperm.xlu1 %2836, %v3162_v22  }
 0x3ab   : > { %v1804_v0 = vpop.permute.xlu1 %1803 }
 0x3ac   : > { %v1821_v25 = vsub.f32 %v1765_v51, %v1804_v0 }
 0x3ae   : > { %v1825_v26 = vmul.f32 1.442695, %v1821_v25 }
 0x3af   : > { %v597_v27 = vpop.permute.xlu1 %596  ;;  %v1809_v28 = vpop.permute.xlu0 %1808 }
 0x3b0   : > { %2838 = vpow2.f32 %v1825_v26  ;;  %v1822_v29 = vsub.f32 %v1766_v56, %v1809_v28 }
 0x3b2   : > { %v1827_v30 = vmul.f32 1.442695, %v1822_v29 }
 0x3b3   : > { %v599_v31 = vpop.permute.xlu1 %598 }
 0x3b4   : > { %2840 = vpow2.f32 %v1827_v30 }
 0x3b7   : > { %v601_v32 = vpop.permute.xlu1 %600 }
 0x3b8   : > { %v608_v33 = vcombine.low %v597_v27, %v601_v32  ;;  %v609_v15 = vcombine.high %v597_v27, %v601_v32 }
 0x3ba   : > { %v2839_v11 = vpop.eup %2838  ;;  %v616_v39 = vrot.slane %v608_v33, %v2999_v13  ;;  %v623_v40 = vrot.slane %v609_v15, %v2999_v13 }
 0x3bb   : > { %v603_v34 = vpop.permute.xlu1 %602  ;;  %v1841_v10 = vsel %vm433_vm0, %v2839_v11, 0.0 }
 0x3bc   : > { %v624_v35 = vcombine.low %v599_v31, %v603_v34  ;;  %v625_v37 = vcombine.high %v599_v31, %v603_v34  ;;  %1842 = vadd.xlane.f32.xlu1 %v1841_v10  ;;  %v1797_v34 = vmul.f32 1.442695, %v1791_v23 }
 0x3be   : > { %v2841_v38 = vpop.eup %2840  ;;  %v632_v41 = vrot.slane %v624_v35, %v2999_v13  ;;  %v639_v42 = vrot.slane %v625_v37, %v2999_v13  ;;  %v1834_v37 = vld [vmem:[#allocation3 + $0x8] sm:$0xff] }
 0x3bf   : > { %v1814_v43 = vpop.permute.xlu1 %1813  ;;  %v1844_v44 = vsel %vm433_vm0, %v2841_v38, 0.0 }
 0x3c0   : > { %v640_v45 = vcombine.low %v616_v39, %v632_v41  ;;  %v641_v46 = vcombine.high %v616_v39, %v632_v41  ;;  %v656_v2 = vcombine.low %v623_v40, %v639_v42  ;;  %v657_v47 = vcombine.high %v623_v40, %v639_v42  ;;  %1845 = vadd.xlane.f32.xlu0 %v1844_v44  ;;  %v1836_v41 = vld [vmem:[#allocation3 + $0x18] sm:$0xff] }
 0x3c1   : > { %v1823_v36 = vsub.f32 %v3122_v54, %v1814_v43 }
 0x3c2   : > { %v648_v48 = vrot.slane %v640_v45, %v3010_v19  ;;  %v655_v49 = vrot.slane %v641_v46, %v3010_v19  ;;  %v664_v50 = vrot.slane %v656_v2, %v3010_v19  ;;  %v671_v51 = vrot.slane %v657_v47, %v3010_v19  ;;  %v2454_v47 = vld [vmem:[%s3294_s4] sm:$0xff] }
 0x3c3   : > { %v1829_v52 = vmul.f32 1.442695, %v1823_v36  ;;  %v1819_v53 = vpop.permute.xlu1 %1818  ;;  %v2455_v36 = vld [vmem:[%s3294_s4 + $0x8] sm:$0xff] }
 0x3c4   : > { %v1890_v55 = vcombine.low %v648_v48, %v655_v49  ;;  %v2706_v7 = vcombine.high %v648_v48, %v655_v49  ;;  %v1906_v56 = vcombine.low %v664_v50, %v671_v51  ;;  %v2707_v57 = vcombine.high %v664_v50, %v671_v51 }
 0x3c5   : > { %2842 = vpow2.f32 %v1829_v52  ;;  %v1824_v58 = vsub.f32 %v3127_v61, %v1819_v53  ;;  %v2898_v48 = vmov 0.0|0.0   ;;  %v2793_v49 = vpack.c.bf16 %v2455_v36, %v2454_v47  ;;  %v1862_v52 = vld [vmem:[#allocation4] sm:$0xff]  ;;  %v1863_v53 = vld [vmem:[#allocation4 + $0x8] sm:$0xff] }
 0x3c6   : > { %v1897_v59 = vrot.slane %v1890_v55, %v2999_v13  ;;  %v1905_v54 = vrot.slane %v2706_v7, %v2999_v13  ;;  %v1913_v60 = vrot.slane %v1906_v56, %v2999_v13  ;;  %v1921_v62 = vrot.slane %v2707_v57, %v2999_v13 }
 0x3c7   : > { %v1831_v63 = vmul.f32 1.442695, %v1824_v58  ;;  %v1864_v58 = vld [vmem:[#allocation4 + $0x10] sm:$0xff] }
 0x3c8   : > { %v1922_v4 = vcombine.low %v1897_v59, %v1905_v54  ;;  %v1938_v9 = vcombine.low %v1913_v60, %v1921_v62  ;;  %v1923_v18 = vcombine.high %v1897_v59, %v1905_v54  ;;  %v1939_v20 = vcombine.high %v1913_v60, %v1921_v62  ;;  %v1865_v60 = vld [vmem:[#allocation4 + $0x18] sm:$0xff] }
 0x3c9   : > { %2844 = vpow2.f32 %v1831_v63 }
 0x3ca   : > { %v1930_v0 = vrot.slane %v1922_v4, %v3010_v19  ;;  %v1946_v25 = vrot.slane %v1938_v9, %v3010_v19  ;;  %v1937_v61 = vrot.slane %v1923_v18, %v3010_v19  ;;  %v1953_v26 = vrot.slane %v1939_v20, %v3010_v19 }
 0x3cc   : > { %v1954_v27 = vcombine.low %v1930_v0, %v1946_v25  ;;  %v1955_v28 = vcombine.high %v1930_v0, %v1946_v25  ;;  %v1956_v30 = vcombine.low %v1937_v61, %v1953_v26  ;;  %v1957_v32 = vcombine.high %v1937_v61, %v1953_v26 }
 0x3ce   : > { %2762 = vmatpush3.msra.mxu0 %v1954_v27  ;;  %2767 = vmatpush3.msra.mxu1 %v1955_v28 }
 0x3cf   : > { %v2843_v29 = vpop.eup %2842  ;;  %2764 = vmatmul.mubr.msk.f32.vlgmr.msra.gmra.mrb[2].mxu0 %vm433_vm0, %v2839_v11  ;;  %2769 = vmatmul.mubr.msk.f32.vlgmr.msra.gmra.mrb[6].mxu1 %vm433_vm0, %v2841_v38  ;;  %v1793_v11 = vmul.f32 1.442695, %v1789_v8  ;;  %v1835_v38 = vld [vmem:[#allocation3 + $0x10] sm:$0xff] }
 0x3d0   : > { %2771 = vmatprep.subr.mxu0 %v2888_v1  ;;  %2776 = vmatprep.subr.mxu1 %v2888_v1  ;;  %v1847_v31 = vsel %vm433_vm0, %v2843_v29, 0.0 }
 0x3d1   : > { %2772 = vmatpush3.msra.mxu0 %v1956_v30  ;;  %1848 = vadd.xlane.f32.xlu1 %v1847_v31  ;;  %2846 = vpow2.f32 %v1793_v11 }
 0x3d2   : > { %2777 = vmatpush3.msra.mxu1 %v1957_v32  ;;  %2773 = vmatprep.mubr.msk.f32.mxu0 %vm2894_vm1, %v2888_v1  ;;  %2848 = vpow2.f32 %v1797_v34 }
 0x3d3   : > { %v2845_v33 = vpop.eup %2844  ;;  %2778 = vmatprep.mubr.msk.f32.mxu1 %vm2894_vm1, %v2888_v1  ;;  %2774 = vmatmul.mubr.msk.f32.vlgmr.msra.gmra.mrb[4].mxu0 %vm433_vm0, %v2843_v29  ;;  %2850 = vpow2.f32 %v1799_v3 }
 0x3d4   : > { %2779 = vmatmul.mubr.msk.f32.vlgmr.msra.gmra.mrb[8].mxu1 %vm433_vm0, %v2845_v33  ;;  %v1850_v15 = vsel %vm433_vm0, %v2845_v33, 0.0  ;;  %2789 = vmatprep.mubr.msk.f32.mxu0 %vm2894_vm1, %v2888_v1  ;;  %2852 = vpow2.f32 %v1795_v5 }
 0x3d5   : > { %1851 = vadd.xlane.f32.xlu0 %v1850_v15  ;;  %2792 = vmatprep.subr.bf16.mxu0 %v2898_v48 }
 0x3d6   : > { %2794 = vmatpush3.bf16.msra.mxu0 %v2793_v49 }
 0x3d7   : > { %2795 = vmatprep.subr.bf16.mxu0 %v2898_v48 }
 0x3db   : > { %v2847_v8 = vpop.eup %2846 }
 0x3dc   : > { %v2849_v1 = vpop.eup %2848  ;;  %v1837_v21 = vmul.f32 %v2847_v8, %v1833_v14 }
 0x3dd   : > { %v2851_v10 = vpop.eup %2850  ;;  %v1839_v39 = vmul.f32 %v2849_v1, %v1835_v38 }
 0x3de   : > { %v2853_v35 = vpop.eup %2852  ;;  %v1840_v43 = vmul.f32 %v2851_v10, %v1836_v41 }
 0x3df   : > { %v1838_v22 = vmul.f32 %v2853_v35, %v1834_v37 }
 0x3e2   : > { %1868 = vperm.xlu1 %2836, %v2847_v8  }
 0x3e6   : > { %1878 = vperm.xlu1 %2836, %v2849_v1  }
 0x3ea   : > { %1883 = vperm.xlu1 %2836, %v2851_v10  }
 0x3eb   : > { %1873 = vperm.xlu0 %2837, %v2853_v35  }
 0x449   : > { %v1843_v23 = vpop.xlane.xlu1 %1842 }
 0x44a   : > { %v1853_v16 = vadd.f32 %v1843_v23, %v1837_v21 }
 0x44c   : > { %1858 = vst.msk [vmem:[#allocation3] sm:$0xff] %vm424_vm2, %v1853_v16 }
 0x44d   : > { %v1846_v6 = vpop.xlane.xlu0 %1845 }
 0x44e   : > { %v1854_v12 = vadd.f32 %v1846_v6, %v1838_v22 }
 0x450   : > { %1859 = vst.msk [vmem:[#allocation3 + $0x8] sm:$0xff] %vm424_vm2, %v1854_v12 }
 0x453   : > { %v2269_v17 = vld [vmem:[#allocation3] sm:$0xff] }
 0x454   : > { %2275 = vperm.xlu0 %2837, %v2269_v17  }
 0x457   : > { %v2270_v24 = vld [vmem:[#allocation3 + $0x8] sm:$0xff] }
 0x458   : > { %2280 = vperm.xlu1 %2836, %v2270_v24  }
 0x45e   : > { %v1849_v40 = vpop.xlane.xlu1 %1848 }
 0x45f   : > { %v1855_v42 = vadd.f32 %v1849_v40, %v1839_v39 }
 0x461   : > { %1860 = vst.msk [vmem:[#allocation3 + $0x10] sm:$0xff] %vm424_vm2, %v1855_v42  ;;  %v2456_v42 = vld [vmem:[%s3294_s4 + $0x10] sm:$0xff] }
 0x462   : > { %v1852_v44 = vpop.xlane.xlu0 %1851  ;;  %v1869_v50 = vpop.permute.xlu1 %1868 }
 0x463   : > { %v1856_v45 = vadd.f32 %v1852_v44, %v1840_v43  ;;  %v1886_v7 = vmul.f32 %v1869_v50, %v1862_v52  ;;  %v2457_v43 = vld [vmem:[%s3294_s4 + $0x18] sm:$0xff] }
 0x464   : > { %v2796_v47 = vpack.c.bf16 %v2457_v43, %v2456_v42 }
 0x465   : > { %1861 = vst.msk [vmem:[#allocation3 + $0x18] sm:$0xff] %vm424_vm2, %v1856_v45 }
 0x466   : > { %v1879_v51 = vpop.permute.xlu1 %1878  ;;  %2797 = vmatpush3.bf16.msra.mxu0 %v2796_v47 }
 0x467   : > { %v1888_v18 = vmul.f32 %v1879_v51, %v1864_v58 }
 0x468   : > { %v2271_v46 = vld [vmem:[#allocation3 + $0x10] sm:$0xff] }
 0x469   : > { %2285 = vperm.xlu0 %2837, %v2271_v46  }
 0x46a   : > { %v1874_v55 = vpop.permute.xlu0 %1873  ;;  %v1884_v56 = vpop.permute.xlu1 %1883 }
 0x46b   : > { %v1887_v57 = vmul.f32 %v1874_v55, %v1863_v53  ;;  %v1889_v20 = vmul.f32 %v1884_v56, %v1865_v60 }
 0x46c   : > { %v2272_v2 = vld [vmem:[#allocation3 + $0x18] sm:$0xff] }
 0x46d   : > { %2290 = vperm.xlu1 %2836, %v2272_v2  }
 0x4a2   : > { %v2027_v59 = vpop.f32.mrb[2].mxu0  ;;  %v2100_v54 = vpop.f32.mrb[6].mxu1 }
 0x4a3   : > { %v2250_v62 = vadd.f32 %v2027_v59, %v1886_v7  ;;  %v2251_v63 = vadd.f32 %v2100_v54, %v1887_v57  ;;  %v2765_v4 = vpop.f32.mrb[3].mxu0  ;;  %v2770_v9 = vpop.f32.mrb[7].mxu1 }
 0x4a5   : > { %2254 = vst.msk [vmem:[#allocation4] sm:$0xff] %vm433_vm0, %v2250_v62  ;;  %2255 = vst.msk [vmem:[#allocation4 + $0x8] sm:$0xff] %vm433_vm0, %v2251_v63 }
 0x4a6   : > { %v2173_v0 = vpop.f32.mrb[4].mxu0 }
 0x4a7   : > { %v2252_v25 = vadd.f32 %v2173_v0, %v1888_v18  ;;  %v2246_v61 = vpop.f32.mrb[8].mxu1  ;;  %v2775_v26 = vpop.f32.mrb[5].mxu0 }
 0x4a8   : > { %v2253_v27 = vadd.f32 %v2246_v61, %v1889_v20  ;;  %v2780_v28 = vpop.f32.mrb[9].mxu1  ;;  %v2714_v26 = vld [vmem:[%s3295_s5] ss:$0 sm:$0xff] }
 0x4a9   : > { %2256 = vst.msk [vmem:[#allocation4 + $0x10] sm:$0xff] %vm433_vm0, %v2252_v25  ;;  %v2539_v28 = vld [vmem:[%s412_s18] sm:$0xff] }
 0x4aa   : > { %2257 = vst.msk [vmem:[#allocation4 + $0x18] sm:$0xff] %vm433_vm0, %v2253_v27 }
 0x4ac   : > { %v2265_v5 = vld [vmem:[#allocation4] sm:$0xff]  ;;  %v2266_v10 = vld [vmem:[#allocation4 + $0x8] sm:$0xff] }
 0x4b0   : > { %v2267_v15 = vld [vmem:[#allocation4 + $0x10] sm:$0xff] }
 0x4b1   : > { %v2268_v35 = vld [vmem:[#allocation4 + $0x18] sm:$0xff] }
 0x4d3   : > { %v2276_v29 = vpop.permute.xlu0 %2275 }
 0x4d4   : > { %2854 = vrcp.f32 %v2276_v29 }
 0x4d7   : > { %v2281_v30 = vpop.permute.xlu1 %2280 }
 0x4de   : > { %v2855_v33 = vpop.eup %2854 }
 0x4df   : > { %v2294_v8 = vmul.f32 %v2855_v33, %v2265_v5 }
 0x4e8   : > { %v2286_v31 = vpop.permute.xlu0 %2285 }
 0x4e9   : > { %2856 = vrcp.f32 %v2286_v31 }
 0x4ea   : > { %2858 = vrcp.f32 %v2281_v30 }
 0x4ec   : > { %v2291_v32 = vpop.permute.xlu1 %2290 }
 0x4ed   : > { %2860 = vrcp.f32 %v2291_v32 }
 0x4f3   : > { %v2857_v11 = vpop.eup %2856 }
 0x4f4   : > { %v2298_v34 = vmul.f32 %v2857_v11, %v2267_v15  ;;  %v2859_v3 = vpop.eup %2858 }
 0x4f5   : > { %v2296_v14 = vmul.f32 %v2859_v3, %v2266_v10 }
 0x4f6   : > { %v2301_v21 = vcombine.low %v2294_v8, %v2298_v34  ;;  %v2302_v23 = vcombine.high %v2294_v8, %v2298_v34 }
 0x4f7   : > { %v2861_v1 = vpop.eup %2860 }
 0x4f8   : > { %v2300_v37 = vmul.f32 %v2861_v1, %v2268_v35  ;;  %v2309_v6 = vrot.slane %v2301_v21, %v2999_v13  ;;  %v2316_v12 = vrot.slane %v2302_v23, %v2999_v13  ;;  %v2716_v35 = vld [vmem:[%s3296_s6] ss:$0 sm:$0xff] }
 0x4f9   : > { %v2717_v21 = vld [vmem:[%s3297_s7] ss:$0 sm:$0xff] }
 0x4fa   : > { %v2317_v16 = vcombine.low %v2296_v14, %v2300_v37  ;;  %v2318_v22 = vcombine.high %v2296_v14, %v2300_v37 }
 0x4fc   : > { %v2325_v17 = vrot.slane %v2317_v16, %v2999_v13  ;;  %v2332_v24 = vrot.slane %v2318_v22, %v2999_v13 }
 0x4fe   : > { %v2333_v38 = vcombine.low %v2309_v6, %v2325_v17  ;;  %v2334_v39 = vcombine.high %v2309_v6, %v2325_v17  ;;  %v2349_v40 = vcombine.low %v2316_v12, %v2332_v24  ;;  %v2350_v41 = vcombine.high %v2316_v12, %v2332_v24 }
 0x500   : > { %v2341_v44 = vrot.slane %v2333_v38, %v3010_v19  ;;  %v2348_v45 = vrot.slane %v2334_v39, %v3010_v19  ;;  %v2357_v46 = vrot.slane %v2349_v40, %v3010_v19  ;;  %v2364_v2 = vrot.slane %v2350_v41, %v3010_v19 }
 0x502   : > { %v2369_v36 = vcombine.low %v2341_v44, %v2348_v45  ;;  %v2712_v48 = vcombine.high %v2341_v44, %v2348_v45  ;;  %v2385_v49 = vcombine.low %v2357_v46, %v2364_v2  ;;  %v2713_v50 = vcombine.high %v2357_v46, %v2364_v2 }
 0x504   : > { %v2376_v51 = vrot.slane %v2369_v36, %v2999_v13  ;;  %v2384_v52 = vrot.slane %v2712_v48, %v2999_v13  ;;  %v2392_v53 = vrot.slane %v2385_v49, %v2999_v13  ;;  %v2400_v55 = vrot.slane %v2713_v50, %v2999_v13 }
 0x506   : > { %v2402_v7 = vcombine.high %v2376_v51, %v2384_v52  ;;  %v2418_v56 = vcombine.high %v2392_v53, %v2400_v55  ;;  %v2401_v57 = vcombine.low %v2376_v51, %v2384_v52  ;;  %v2417_v58 = vcombine.low %v2392_v53, %v2400_v55 }
 0x508   : > { %v2416_v59 = vrot.slane %v2402_v7, %v3010_v19  ;;  %v2432_v54 = vrot.slane %v2418_v56, %v3010_v19  ;;  %v2409_v60 = vrot.slane %v2401_v57, %v3010_v19  ;;  %v2425_v62 = vrot.slane %v2417_v58, %v3010_v19 }
 0x50a   : > { %v2435_v63 = vcombine.low %v2416_v59, %v2432_v54  ;;  %v2434_v4 = vcombine.high %v2409_v60, %v2425_v62  ;;  %v2433_v9 = vcombine.low %v2409_v60, %v2425_v62  ;;  %v2436_v13 = vcombine.high %v2416_v59, %v2432_v54 }
 0x50c   : > { %2442 = vrot.lane.b32.xlu1 %v2435_v63, %s2899_s13  ;;  %2438 = vrot.lane.b32.xlu0 %v2434_v4, %s2900_s14 }
 0x510   : > { %2446 = vrot.lane.b32.xlu0 %v2436_v13, %s2901_s15 }
 0x57e   : > { %v2439_v18 = vpop.permute.xlu0 %2438  ;;  %v2443_v20 = vpop.permute.xlu1 %2442 }
 0x57f   : > { %v2449_v0 = vsel %vm433_vm0, %v2433_v9, %v2439_v18 }
 0x580   : > { %v2451_v19 = vsel %vm2450_vm5, %v2449_v0, %v2443_v20 }
 0x582   : > { %v2447_v25 = vpop.permute.xlu0 %2446 }
 0x583   : > { %v2453_v61 = vsel %vm2452_vm6, %v2451_v19, %v2447_v25 }
 0x584   : > { %2790 = vmatmul.mubr.msk.f32.vlgmr.msra.gmra.mrb[6].mxu0 %vm2465_vm7, %v2453_v61 }
 0x657   : > { %v2535_v27 = vpop.f32.mrb[6].mxu0 }
 0x658   : > { %v2536_v29 = vadd.f32 %v2714_v26, %v2535_v27  ;;  %v2791_v30 = vpop.f32.mrb[7].mxu0 }
 0x65a   : > { %v2540_v31 = vadd.f32 %v2539_v28, %v2536_v29 }
 0x65c   : > { %v2541_v32 = vsel %vm2465_vm7, %v2540_v31, 0.0 }
 0x65d   : > { %2542 = vadd.xlane.f32.xlu1 %v2541_v32 }
 0x6ea   : > { %v2543_v33 = vpop.xlane.xlu1 %2542 }
 0x6eb   : > { %v2545_v11 = vmul.f32 0.03125, %v2543_v33 }
 0x6ed   : > { %v2546_v15 = vsub.f32 %v2540_v31, %v2545_v11 }
 0x6ef   : > { %v2547_v34 = vmul.f32 %v2546_v15, %v2546_v15 }
 0x6f1   : > { %v2548_v3 = vsel %vm2465_vm7, %v2547_v34, 0.0 }
 0x6f2   : > { %2549 = vadd.xlane.f32.xlu0 %v2548_v3 }
 0x77f   : > { %v2550_v5 = vpop.xlane.xlu0 %2549 }
 0x780   : > { %v2551_v8 = vmul.f32 0.03125, %v2550_v5 }
 0x782   : > { %v2552_v1 = vadd.f32 1e-05, %v2551_v8 }
 0x784   : > { %2862 = vrsqrt.f32 %v2552_v1 }
 0x78e   : > { %v2863_v10 = vpop.eup %2862 }
 0x78f   : > { %v2554_v14 = vmul.f32 %v2863_v10, %v2546_v15 }
 0x791   : > { %v2562_v23 = vmul.f32 %v2716_v35, %v2554_v14 }
 0x793   : > { %v2570_v37 = vadd.f32 %v2717_v21, %v2562_v23 }
 0x795   : > { %2571 = vst.msk [vmem:[%s419_s27] sm:$0xff] %vm2465_vm7, %v2570_v37 }
 0x796 PF: > { %s18_s29 = sadd.s32 1, %s2886_s29   ;;  %s3299_s27 = smov %s2882_s28 }
 0x797   : > { %p15_p5 = scmp.ge.s32.totalorder %s18_s29, 4   ;;  %s3300_s28 = smov %s3302_s30 }
 0x799   :  { %17 = sbr.rel (!%p15_p5) target bundleno = 2 (0x2), region = 99 }

</bundles_post_ra>
